<compile_context>
chip_gen: v6e
topology: v6e:2x2x1
jax: 0.10.0
libtpu: 0.0.40
codegen_flags: <defaults>
</compile_context>

<pallas_src>
import math
import functools

import jax
import jax.numpy as jnp
from jax.experimental import pallas as pl
from jax.experimental.pallas import tpu as pltpu

# -------------------- configuration (small, forward-consistent shapes) -----
INPUT_SIZE = 16      # acoustic feature dim
HIDDEN = 32          # model dim
NUM_HEADS = 4
KERNEL_SIZE = 3      # depthwise conv kernel (odd => 'same' length)
NUM_BLOCKS = 2
LN_EPS = 1e-5
BN_EPS = 1e-5

_PARALLEL1 = pltpu.CompilerParams(dimension_semantics=("parallel",))


def _round_up(n, m):
    return ((n + m - 1) // m) * m


def _rep(shape):
    """BlockSpec for a small weight replicated across the grid."""
    n = len(shape)
    return pl.BlockSpec(shape, lambda *_: (0,) * n)


def _ln(x, g, b):
    """LayerNorm over the last axis; g/b broadcast from (1, C)."""
    mu = jnp.mean(x, axis=-1, keepdims=True)
    xc = x - mu
    var = jnp.mean(xc * xc, axis=-1, keepdims=True)
    return xc * jax.lax.rsqrt(var + LN_EPS) * g + b


# ============================ generic matmul kernel =========================

def _mm_kernel(x_ref, w_ref, b_ref, o_ref, *, act):
    y = jnp.dot(x_ref[...], w_ref[...], preferred_element_type=jnp.float32)
    y = y + b_ref[...]
    if act == "relu":
        y = jnp.maximum(y, 0.0)
    o_ref[...] = y


def matmul_bias(x, w, b, act="none"):
    """Row-tiled x @ w + b (+activation); two balanced tiles for v7x megacore."""
    M, K = x.shape
    N = w.shape[1]
    tm = max(8, _round_up(pl.cdiv(M, 2), 8))
    return pl.pallas_call(
        functools.partial(_mm_kernel, act=act),
        out_shape=jax.ShapeDtypeStruct((M, N), jnp.float32),
        grid=(pl.cdiv(M, tm),),
        in_specs=[pl.BlockSpec((tm, K), lambda i: (i, 0)),
                  _rep((K, N)),
                  _rep((1, N))],
        out_specs=pl.BlockSpec((tm, N), lambda i: (i, 0)),
        compiler_params=_PARALLEL1,
    )(x, w, b.reshape(1, N))


# ============================ fused conformer block =========================
# Packed (NV, C) vector-parameter rows (see init_params):
#   0 ffn1.ln_g   1 ffn1.ln_b   2 ffn1.b2
#   3 mhsa.ln_g   4 mhsa.ln_b   5 mhsa.bo    6 mhsa.u    7 mhsa.v
#   8 conv.ln_g   9 conv.ln_b  10 conv.dw_b
#  11 conv.bn_g  12 conv.bn_b  13 conv.bn_mean  14 conv.bn_var  15 conv.pw2_b
#  16 ffn2.ln_g  17 ffn2.ln_b  18 ffn2.b2
#  19 final.ln_g 20 final.ln_b

def _block_kernel(x_ref, mask_ref, pe_ref, vc_ref, b1s_ref, bqkv_ref, pw1b_ref,
                  fw1_ref, fw2_ref, wqkv_ref, wp_ref, wo_ref,
                  pw1w_ref, dww_ref, pw2w_ref, o_ref, *, H, D, scale):
    C = H * D
    x = x_ref[0]                                   # (T, C)
    T = x.shape[0]
    L = 2 * T - 1

    def vp(i):                                     # (1, C) packed vector param
        return vc_ref[i:i + 1, :]

    # iotas hoisted: reused by the rel-pos skew and the depthwise conv taps
    rows = jax.lax.broadcasted_iota(jnp.int32, (T, T), 0)
    cols = jax.lax.broadcasted_iota(jnp.int32, (T, T), 1)

    # ---- FFN1: x = x + 0.5 * FFN(LN(x)) ------------------------------------
    h = _ln(x, vp(0), vp(1))
    h = jnp.dot(h, fw1_ref[0], preferred_element_type=jnp.float32) + b1s_ref[0:1, :]
    h = h * jax.nn.sigmoid(h)                      # SiLU
    h = jnp.dot(h, fw2_ref[0], preferred_element_type=jnp.float32) + vp(2)
    x = x + 0.5 * h

    # ---- MHSA (Transformer-XL relative positions): x = x + Attn(LN(x)) -----
    hn = _ln(x, vp(3), vp(4))
    qkv = jnp.dot(hn, wqkv_ref[...], preferred_element_type=jnp.float32) + bqkv_ref[...]
    q = qkv[:, :C]
    k = qkv[:, C:2 * C]
    val = qkv[:, 2 * C:]
    qu = q + vp(6)                                 # content bias u
    qv = q + vp(7)                                 # position bias v
    pproj = jnp.dot(pe_ref[...], wp_ref[...],
                    preferred_element_type=jnp.float32)          # (L, C)
    kmask = mask_ref[0]                            # (1, T) key mask
    rel = cols - rows                              # relative position j - i
    attn = jnp.zeros((T, C), jnp.float32)
    for hh in range(H):                            # static head loop (H = 4)
        sl = slice(hh * D, (hh + 1) * D)
        ac = jax.lax.dot_general(qu[:, sl], k[:, sl], (((1,), (1,)), ((), ())),
                                 preferred_element_type=jnp.float32)        # (T, T)
        bd_full = jax.lax.dot_general(qv[:, sl], pproj[:, sl],
                                      (((1,), (1,)), ((), ())),
                                      preferred_element_type=jnp.float32)   # (T, L)
        # in-kernel rel-pos skew: bd[i, j] = bd_full[i, (j - i) + (T - 1)]
        bd = jnp.zeros((T, T), jnp.float32)
        for r in range(L):
            bd = bd + jnp.where(rel == (r - (T - 1)), bd_full[:, r:r + 1], 0.0)
        s = (ac + bd) * scale
        s = jnp.where(kmask > 0.5, s, -1e9)
        s = s - jnp.max(s, axis=-1, keepdims=True)
        e = jnp.exp(s)
        p = e * pl.reciprocal(jnp.sum(e, axis=-1, keepdims=True), approx=True)
        ho = jnp.dot(p, val[:, sl], preferred_element_type=jnp.float32)      # (T, D)
        # accumulate through Wo's per-head row slice (no concatenate)
        attn = attn + jnp.dot(ho, wo_ref[sl, :],
                              preferred_element_type=jnp.float32)
    x = x + attn + vp(5)

    # ---- Convolution module: x = x + Conv(x) -------------------------------
    # NOTE: padded timesteps are not masked, matching the reference PyTorch
    # ConvolutionModule (it receives no mask).
    hc = _ln(x, vp(8), vp(9))
    hc = jnp.dot(hc, pw1w_ref[...], preferred_element_type=jnp.float32) + pw1b_ref[...]
    glu = hc[:, :C] * jax.nn.sigmoid(hc[:, C:])                              # GLU
    K = dww_ref.shape[0]
    pad = K // 2
    acc = jnp.zeros((T, C), jnp.float32)
    for kk in range(K):                            # depthwise 'same' conv taps
        off = kk - pad
        shift_mat = (cols == rows + off).astype(jnp.float32)   # zero rows at edges
        acc = acc + jnp.dot(shift_mat, glu,
                            preferred_element_type=jnp.float32) * dww_ref[kk:kk + 1, :]
    acc = acc + vp(10)
    # BatchNorm1d (eval mode, running stats) + SiLU
    bn_scale = vp(11) * jax.lax.rsqrt(vp(14) + BN_EPS)
    acc = (acc - vp(13)) * bn_scale + vp(12)
    acc = acc * jax.nn.sigmoid(acc)
    y = jnp.dot(acc, pw2w_ref[...], preferred_element_type=jnp.float32) + vp(15)
    x = x + y

    # ---- FFN2 + final block LayerNorm ---------------------------------------
    h2 = _ln(x, vp(16), vp(17))
    h2 = jnp.dot(h2, fw1_ref[1], preferred_element_type=jnp.float32) + b1s_ref[1:2, :]
    h2 = h2 * jax.nn.sigmoid(h2)
    h2 = jnp.dot(h2, fw2_ref[1], preferred_element_type=jnp.float32) + vp(18)
    x = x + 0.5 * h2
    o_ref[0] = _ln(x, vp(19), vp(20))


def conformer_block(bp, x, mask3, pe):
    """One Conformer block as a single fused pallas_call (grid over batch)."""
    B, T, C = x.shape
    H = NUM_HEADS
    D = C // H
    L = 2 * T - 1
    NV = bp['vec_c'].shape[0]
    Dh = bp['ffn_w1'].shape[2]
    bspec = pl.BlockSpec((1, T, C), lambda b: (b, 0, 0))
    return pl.pallas_call(
        functools.partial(_block_kernel, H=H, D=D, scale=1.0 / math.sqrt(D)),
        out_shape=jax.ShapeDtypeStruct((B, T, C), jnp.float32),
        grid=(B,),
        in_specs=[bspec,
                  pl.BlockSpec((1, 1, T), lambda b: (b, 0, 0)),
                  _rep((L, C)),
                  _rep((NV, C)),
                  _rep((2, Dh)),
                  _rep((1, 3 * C)),
                  _rep((1, 2 * C)),
                  _rep((2, C, Dh)),
                  _rep((2, Dh, C)),
                  _rep((C, 3 * C)),
                  _rep((C, C)),
                  _rep((C, C)),
                  _rep((C, 2 * C)),
                  _rep((KERNEL_SIZE, C)),
                  _rep((C, C))],
        out_specs=bspec,
        compiler_params=_PARALLEL1,
    )(x, mask3, pe, bp['vec_c'], bp['b1s'], bp['bqkv'], bp['pw1_b'],
      bp['ffn_w1'], bp['ffn_w2'], bp['wqkv'], bp['wp'], bp['wo'],
      bp['pw1_w'], bp['dw_w'], bp['pw2_w'])


# ============================ subsampling frontend ==========================

def _patches_s2(x):
    """im2col patches of a 3x3 stride-2 VALID conv (NHWC): (B,H,W,Cin)->(B,Ho,Wo,9*Cin)."""
    B, Hin, Win, Cin = x.shape
    Ho = (Hin - 3) // 2 + 1
    Wo = (Win - 3) // 2 + 1
    cols = []
    for kh in range(3):
        for kw in range(3):
            cols.append(x[:, kh:kh + 2 * (Ho - 1) + 1:2,
                             kw:kw + 2 * (Wo - 1) + 1:2, :])
    return jnp.concatenate(cols, axis=-1)


def _sub2_kernel(p_ref, w2_ref, b2_ref, wl_ref, bl_ref, o_ref, *, Fp):
    """Fused subsampling conv2 (im2col matmul) + ReLU + output Linear, one batch."""
    C = wl_ref.shape[1]
    Tp = p_ref.shape[2]
    acc = jnp.zeros((Tp, C), jnp.float32) + bl_ref[...]
    for f in range(Fp):                            # per output-frequency column
        hf = jnp.dot(p_ref[0, f], w2_ref[...],
                     preferred_element_type=jnp.float32) + b2_ref[...]
        hf = jnp.maximum(hf, 0.0)                  # ReLU
        acc = acc + jnp.dot(hf, wl_ref[f * C:(f + 1) * C, :],
                            preferred_element_type=jnp.float32)
    o_ref[0] = acc


def sub2_and_linear(params, p2):
    B, Fp, Tp, K9 = p2.shape
    C = HIDDEN
    return pl.pallas_call(
        functools.partial(_sub2_kernel, Fp=Fp),
        out_shape=jax.ShapeDtypeStruct((B, Tp, C), jnp.float32),
        grid=(B,),
        in_specs=[pl.BlockSpec((1, Fp, Tp, K9), lambda b: (b, 0, 0, 0)),
                  _rep((K9, C)), _rep((1, C)),
                  _rep((Fp * C, C)), _rep((1, C))],
        out_specs=pl.BlockSpec((1, Tp, C), lambda b: (b, 0, 0)),
        compiler_params=_PARALLEL1,
    )(p2, params['conv2_wm'], params['conv2_b'], params['lin_w'], params['lin_b'])


# ============================ relative positional encodings =================

def _rel_sinusoid(T, C):
    """Sinusoidal relative-position encodings for rel = -(T-1) .. (T-1)."""
    L = 2 * T - 1
    rel = jnp.arange(-(T - 1), T, dtype=jnp.float32)
    inv = jnp.exp(-jnp.arange(0, C, 2, dtype=jnp.float32) * (math.log(10000.0) / C))
    ang = rel[:, None] * inv[None, :]
    pe = jnp.zeros((L, C), jnp.float32)
    pe = pe.at[:, 0::2].set(jnp.sin(ang))
    pe = pe.at[:, 1::2].set(jnp.cos(ang))
    return pe


# ============================ full forward ==================================

def conformer_forward(params, x, mask):
    """x: (B, T, INPUT_SIZE) float32, mask: (B, T) {0,1}."""
    B, T, F = x.shape
    # --- convolution subsampling ---------------------------------------------
    # conv1: im2col in XLA (Cin=1, tiny), matmul+bias+ReLU in Pallas.
    p1 = _patches_s2(x[:, :, :, None])
    _, To1, Fo1, _ = p1.shape
    h1 = matmul_bias(p1.reshape(B * To1 * Fo1, 9), params['conv1_wm'],
                     params['conv1_b'], act="relu").reshape(B, To1, Fo1, HIDDEN)
    # conv2 + output Linear fused in one Pallas call; patch rows are freq-major
    # so the per-frequency accumulation inside the kernel needs no reshapes.
    # NOTE: lin_w is stored in the matching freq-major layout (a fixed
    # permutation of the PyTorch flatten; weights are initialized in this layout).
    p2 = _patches_s2(h1).transpose(0, 2, 1, 3)                 # (B, Fp, Tp, 9*HIDDEN)
    h = sub2_and_linear(params, p2)                            # (B, Tp, HIDDEN)
    _, Tp, _ = h.shape
    # --- subsampled mask -------------------------------------------------------
    lengths = mask.astype(jnp.int32).sum(-1)
    new_len = ((lengths - 1) // 2 - 1) // 2
    new_mask = jnp.arange(Tp)[None, :] < new_len[:, None]      # (B, Tp) bool
    mask3 = new_mask.astype(jnp.float32)[:, None, :]           # (B, 1, Tp) key mask
    # --- conformer blocks (one fused pallas_call each) -------------------------
    pe = _rel_sinusoid(Tp, HIDDEN)                              # trace-time constant
    for bp in params['blocks']:
        h = conformer_block(bp, h, mask3, pe)
    return h, new_mask


# ============================ deterministic init ============================

def init_params(key):
    keys = jax.random.split(key, 256)
    it = iter(range(256))

    def nxt():
        return keys[next(it)]

    def unif(shape, bound):
        return jax.random.uniform(nxt(), shape, jnp.float32, -bound, bound)

    def lin(din, dout):
        bound = 1.0 / math.sqrt(din)
        return unif((din, dout), bound), unif((1, dout), bound)

    C = HIDDEN
    D = C // NUM_HEADS
    p = {}
    # subsampling conv weights pre-transposed to im2col matrices (channels-last)
    f1 = 1.0 / math.sqrt(1 * 9)
    w1 = unif((C, 1, 3, 3), f1)
    p['conv1_wm'] = w1.transpose(2, 3, 1, 0).reshape(9, C)
    p['conv1_b'] = unif((C,), f1)
    f2 = 1.0 / math.sqrt(C * 9)
    w2 = unif((C, C, 3, 3), f2)
    p['conv2_wm'] = w2.transpose(2, 3, 1, 0).reshape(9 * C, C)
    p['conv2_b'] = unif((1, C), f2)
    Fp = ((INPUT_SIZE - 1) // 2 - 1) // 2
    p['lin_w'], p['lin_b'] = lin(C * Fp, C)

    ones = jnp.ones((1, C), jnp.float32)
    zeros = jnp.zeros((1, C), jnp.float32)

    blocks = []
    for _ in range(NUM_BLOCKS):
        bp = {}
        # feed-forward packs (ffn1 = index 0, ffn2 = index 1)
        w1a, b1a = lin(C, 4 * C)
        w2a, b2a = lin(4 * C, C)
        w1b, b1b = lin(C, 4 * C)
        w2b, b2b = lin(4 * C, C)
        bp['ffn_w1'] = jnp.stack([w1a, w1b])               # (2, C, 4C)
        bp['ffn_w2'] = jnp.stack([w2a, w2b])               # (2, 4C, C)
        bp['b1s'] = jnp.concatenate([b1a, b1b], axis=0)    # (2, 4C)
        # attention (fused QKV weight / bias)
        wq, bq = lin(C, C)
        wk, bk = lin(C, C)
        wv, bv = lin(C, C)
        wo, bo = lin(C, C)
        wp_, _ = lin(C, C)
        bp['wqkv'] = jnp.concatenate([wq, wk, wv], axis=1)  # (C, 3C)
        bp['bqkv'] = jnp.concatenate([bq, bk, bv], axis=1)  # (1, 3C)
        bp['wp'] = wp_
        bp['wo'] = wo
        u = (0.02 * jax.random.normal(nxt(), (NUM_HEADS, D))).reshape(1, C)
        v = (0.02 * jax.random.normal(nxt(), (NUM_HEADS, D))).reshape(1, C)
        # convolution module
        pw1_w, pw1_b = lin(C, 2 * C)
        pw2_w, pw2_b = lin(C, C)
        fd = 1.0 / math.sqrt(KERNEL_SIZE)
        dw_w = unif((KERNEL_SIZE, C), fd)
        dw_b = unif((1, C), fd)
        bp['pw1_w'] = pw1_w
        bp['pw1_b'] = pw1_b
        bp['pw2_w'] = pw2_w
        bp['dw_w'] = dw_w
        # packed (NV, C) vector parameters -- row order documented at _block_kernel
        bp['vec_c'] = jnp.concatenate([
            ones, zeros, b2a,                 # 0-2   ffn1: ln_g, ln_b, b2
            ones, zeros, bo, u, v,            # 3-7   mhsa: ln_g, ln_b, bo, u, v
            ones, zeros, dw_b,                # 8-10  conv: ln_g, ln_b, dw_b
            ones, zeros, zeros, ones,         # 11-14 conv: bn_g, bn_b, bn_mean, bn_var
            pw2_b,                            # 15    conv: pw2_b
            ones, zeros, b2b,                 # 16-18 ffn2: ln_g, ln_b, b2
            ones, zeros,                      # 19-20 final ln_g, ln_b
        ], axis=0)
        blocks.append(bp)
    p['blocks'] = blocks
    return p


# ================================== main ====================================

if __name__ == "__main__":
    key = jax.random.PRNGKey(0)
    kp, kx = jax.random.split(key)
    params = init_params(kp)

    B, T = 2, 16
    x = jax.random.normal(kx, (B, T, INPUT_SIZE), jnp.float32)
    mask = jnp.array([[1] * 16, [1] * 13 + [0] * 3], dtype=jnp.int32)

    fwd = jax.jit(conformer_forward)
    out, out_mask = fwd(params, x, mask)
    out = jax.block_until_ready(out)
    out_mask = jax.block_until_ready(out_mask)

    Tp = ((T - 1) // 2 - 1) // 2
    assert out.shape == (B, Tp, HIDDEN), out.shape
    assert out_mask.shape == (B, Tp), out_mask.shape
    assert bool(jnp.all(jnp.isfinite(out)))
    print("KERNEL_OK")
</pallas_src>

<mosaic_0001>
module attributes {stable_mosaic.version = 11 : i64} {
  func.func @_mm_kernel(%arg0: i32, %arg1: memref<56x9xf32, #tpu.memory_space<vmem>>, %arg2: memref<9x32xf32, #tpu.memory_space<vmem>>, %arg3: memref<1x32xf32, #tpu.memory_space<vmem>>, %arg4: memref<56x32xf32, #tpu.memory_space<vmem>>) attributes {dimension_semantics = [#tpu.dimension_semantics<parallel>], iteration_bounds = array<i64: 2>, scalar_prefetch = 0 : i64, scratch_operands = 0 : i64, tpu.core_type = #tpu.core_type<tc>, window_params = [{transform_indices = @transform_0, window_bounds = array<i64: 56, 9>}, {pipeline_mode = #tpu.pipeline_mode<synchronous>, transform_indices = @transform_1, window_bounds = array<i64: 9, 32>}, {pipeline_mode = #tpu.pipeline_mode<synchronous>, transform_indices = @transform_2, window_bounds = array<i64: 1, 32>}, {transform_indices = @transform_3, window_bounds = array<i64: 56, 32>}]} {
    %c0 = arith.constant 0 : index
    %c0_0 = arith.constant 0 : index
    %0 = vector.load %arg1[%c0, %c0_0] : memref<56x9xf32, #tpu.memory_space<vmem>>, vector<56x9xf32>
    %c0_1 = arith.constant 0 : index
    %c0_2 = arith.constant 0 : index
    %1 = vector.load %arg2[%c0_1, %c0_2] : memref<9x32xf32, #tpu.memory_space<vmem>>, vector<9x32xf32>
    %cst = arith.constant dense<0.000000e+00> : vector<56x32xf32>
    %2 = tpu.matmul %0, %1, %cst {dimension_numbers = #tpu.dot_dimension_numbers<[1], [0], [0], [1], [0, 0, 1, 1], [], []>} : vector<56x9xf32>, vector<9x32xf32>, vector<56x32xf32> -> vector<56x32xf32>
    %c0_3 = arith.constant 0 : index
    %c0_4 = arith.constant 0 : index
    %3 = vector.load %arg3[%c0_3, %c0_4] : memref<1x32xf32, #tpu.memory_space<vmem>>, vector<1x32xf32>
    %4 = vector.broadcast %3 : vector<1x32xf32> to vector<56x32xf32>
    %5 = arith.addf %2, %4 : vector<56x32xf32>
    %cst_5 = arith.constant 0.000000e+00 : f32
    %6 = vector.broadcast %cst_5 : f32 to vector<56x32xf32>
    %7 = arith.maximumf %5, %6 : vector<56x32xf32>
    %c0_6 = arith.constant 0 : index
    %c0_7 = arith.constant 0 : index
    %8 = vector.load %arg4[%c0_6, %c0_7] : memref<56x32xf32, #tpu.memory_space<vmem>>, vector<56x32xf32>
    tpu.vector_store %arg4[%c0_6, %c0_7], %7 {strides = array<i32>} : memref<56x32xf32, #tpu.memory_space<vmem>>, vector<56x32xf32>,
    return
  }
  func.func @transform_0(%arg0: i32) -> (i32, i32) {
    %c0_i32 = arith.constant 0 : i32
    %c0_i32_0 = arith.constant 0 : i32
    return %arg0, %c0_i32 : i32, i32
  }
  func.func @transform_1(%arg0: i32) -> (i32, i32) {
    %c0_i32 = arith.constant 0 : i32
    %c0_i32_0 = arith.constant 0 : i32
    %c0_i32_1 = arith.constant 0 : i32
    return %c0_i32, %c0_i32_0 : i32, i32
  }
  func.func @transform_2(%arg0: i32) -> (i32, i32) {
    %c0_i32 = arith.constant 0 : i32
    %c0_i32_0 = arith.constant 0 : i32
    %c0_i32_1 = arith.constant 0 : i32
    return %c0_i32, %c0_i32_0 : i32, i32
  }
  func.func @transform_3(%arg0: i32) -> (i32, i32) {
    %c0_i32 = arith.constant 0 : i32
    %c0_i32_0 = arith.constant 0 : i32
    return %arg0, %c0_i32 : i32, i32
  }
}

module attributes {stable_mosaic.version = 11 : i64} {
  func.func @_sub2_kernel(%arg0: i32, %arg1: memref<1x3x3x288xf32, #tpu.memory_space<vmem>>, %arg2: memref<288x32xf32, #tpu.memory_space<vmem>>, %arg3: memref<1x32xf32, #tpu.memory_space<vmem>>, %arg4: memref<96x32xf32, #tpu.memory_space<vmem>>, %arg5: memref<1x32xf32, #tpu.memory_space<vmem>>, %arg6: memref<1x3x32xf32, #tpu.memory_space<vmem>>) attributes {dimension_semantics = [#tpu.dimension_semantics<parallel>], iteration_bounds = array<i64: 2>, scalar_prefetch = 0 : i64, scratch_operands = 0 : i64, tpu.core_type = #tpu.core_type<tc>, window_params = [{transform_indices = @transform_0, window_bounds = array<i64: 1, 3, 3, 288>}, {pipeline_mode = #tpu.pipeline_mode<synchronous>, transform_indices = @transform_1, window_bounds = array<i64: 288, 32>}, {pipeline_mode = #tpu.pipeline_mode<synchronous>, transform_indices = @transform_2, window_bounds = array<i64: 1, 32>}, {pipeline_mode = #tpu.pipeline_mode<synchronous>, transform_indices = @transform_3, window_bounds = array<i64: 96, 32>}, {pipeline_mode = #tpu.pipeline_mode<synchronous>, transform_indices = @transform_4, window_bounds = array<i64: 1, 32>}, {transform_indices = @transform_5, window_bounds = array<i64: 1, 3, 32>}]} {
    %cst = arith.constant 0.000000e+00 : f32
    %0 = vector.broadcast %cst : f32 to vector<3x32xf32>
    %c0 = arith.constant 0 : index
    %c0_0 = arith.constant 0 : index
    %1 = vector.load %arg5[%c0, %c0_0] : memref<1x32xf32, #tpu.memory_space<vmem>>, vector<1x32xf32>
    %2 = vector.broadcast %1 : vector<1x32xf32> to vector<3x32xf32>
    %3 = arith.addf %0, %2 : vector<3x32xf32>
    %c0_1 = arith.constant 0 : index
    %c0_2 = arith.constant 0 : index
    %c0_3 = arith.constant 0 : index
    %c0_4 = arith.constant 0 : index
    %4 = vector.load %arg1[%c0_1, %c0_2, %c0_3, %c0_4] : memref<1x3x3x288xf32, #tpu.memory_space<vmem>>, vector<1x1x3x288xf32>
    %5 = vector.shape_cast %4 : vector<1x1x3x288xf32> to vector<3x288xf32>
    %c0_5 = arith.constant 0 : index
    %c0_6 = arith.constant 0 : index
    %6 = vector.load %arg2[%c0_5, %c0_6] : memref<288x32xf32, #tpu.memory_space<vmem>>, vector<288x32xf32>
    %cst_7 = arith.constant dense<0.000000e+00> : vector<3x32xf32>
    %7 = tpu.matmul %5, %6, %cst_7 {dimension_numbers = #tpu.dot_dimension_numbers<[1], [0], [0], [1], [0, 0, 1, 1], [], []>} : vector<3x288xf32>, vector<288x32xf32>, vector<3x32xf32> -> vector<3x32xf32>
    %c0_8 = arith.constant 0 : index
    %c0_9 = arith.constant 0 : index
    %8 = vector.load %arg3[%c0_8, %c0_9] : memref<1x32xf32, #tpu.memory_space<vmem>>, vector<1x32xf32>
    %9 = vector.broadcast %8 : vector<1x32xf32> to vector<3x32xf32>
    %10 = arith.addf %7, %9 : vector<3x32xf32>
    %cst_10 = arith.constant 0.000000e+00 : f32
    %11 = vector.broadcast %cst_10 : f32 to vector<3x32xf32>
    %12 = arith.maximumf %10, %11 : vector<3x32xf32>
    %c0_11 = arith.constant 0 : index
    %c0_12 = arith.constant 0 : index
    %13 = vector.load %arg4[%c0_11, %c0_12] : memref<96x32xf32, #tpu.memory_space<vmem>>, vector<32x32xf32>
    %cst_13 = arith.constant dense<0.000000e+00> : vector<3x32xf32>
    %14 = tpu.matmul %12, %13, %cst_13 {dimension_numbers = #tpu.dot_dimension_numbers<[1], [0], [0], [1], [0, 0, 1, 1], [], []>} : vector<3x32xf32>, vector<32x32xf32>, vector<3x32xf32> -> vector<3x32xf32>
    %15 = arith.addf %3, %14 : vector<3x32xf32>
    %c0_14 = arith.constant 0 : index
    %c1 = arith.constant 1 : index
    %c0_15 = arith.constant 0 : index
    %c0_16 = arith.constant 0 : index
    %16 = vector.load %arg1[%c0_14, %c1, %c0_15, %c0_16] : memref<1x3x3x288xf32, #tpu.memory_space<vmem>>, vector<1x1x3x288xf32>
    %17 = vector.shape_cast %16 : vector<1x1x3x288xf32> to vector<3x288xf32>
    %c0_17 = arith.constant 0 : index
    %c0_18 = arith.constant 0 : index
    %18 = vector.load %arg2[%c0_17, %c0_18] : memref<288x32xf32, #tpu.memory_space<vmem>>, vector<288x32xf32>
    %cst_19 = arith.constant dense<0.000000e+00> : vector<3x32xf32>
    %19 = tpu.matmul %17, %18, %cst_19 {dimension_numbers = #tpu.dot_dimension_numbers<[1], [0], [0], [1], [0, 0, 1, 1], [], []>} : vector<3x288xf32>, vector<288x32xf32>, vector<3x32xf32> -> vector<3x32xf32>
    %c0_20 = arith.constant 0 : index
    %c0_21 = arith.constant 0 : index
    %20 = vector.load %arg3[%c0_20, %c0_21] : memref<1x32xf32, #tpu.memory_space<vmem>>, vector<1x32xf32>
    %21 = vector.broadcast %20 : vector<1x32xf32> to vector<3x32xf32>
    %22 = arith.addf %19, %21 : vector<3x32xf32>
    %cst_22 = arith.constant 0.000000e+00 : f32
    %23 = vector.broadcast %cst_22 : f32 to vector<3x32xf32>
    %24 = arith.maximumf %22, %23 : vector<3x32xf32>
    %c32 = arith.constant 32 : index
    %c0_23 = arith.constant 0 : index
    %25 = vector.load %arg4[%c32, %c0_23] : memref<96x32xf32, #tpu.memory_space<vmem>>, vector<32x32xf32>
    %cst_24 = arith.constant dense<0.000000e+00> : vector<3x32xf32>
    %26 = tpu.matmul %24, %25, %cst_24 {dimension_numbers = #tpu.dot_dimension_numbers<[1], [0], [0], [1], [0, 0, 1, 1], [], []>} : vector<3x32xf32>, vector<32x32xf32>, vector<3x32xf32> -> vector<3x32xf32>
    %27 = arith.addf %15, %26 : vector<3x32xf32>
    %c0_25 = arith.constant 0 : index
    %c2 = arith.constant 2 : index
    %c0_26 = arith.constant 0 : index
    %c0_27 = arith.constant 0 : index
    %28 = vector.load %arg1[%c0_25, %c2, %c0_26, %c0_27] : memref<1x3x3x288xf32, #tpu.memory_space<vmem>>, vector<1x1x3x288xf32>
    %29 = vector.shape_cast %28 : vector<1x1x3x288xf32> to vector<3x288xf32>
    %c0_28 = arith.constant 0 : index
    %c0_29 = arith.constant 0 : index
    %30 = vector.load %arg2[%c0_28, %c0_29] : memref<288x32xf32, #tpu.memory_space<vmem>>, vector<288x32xf32>
    %cst_30 = arith.constant dense<0.000000e+00> : vector<3x32xf32>
    %31 = tpu.matmul %29, %30, %cst_30 {dimension_numbers = #tpu.dot_dimension_numbers<[1], [0], [0], [1], [0, 0, 1, 1], [], []>} : vector<3x288xf32>, vector<288x32xf32>, vector<3x32xf32> -> vector<3x32xf32>
    %c0_31 = arith.constant 0 : index
    %c0_32 = arith.constant 0 : index
    %32 = vector.load %arg3[%c0_31, %c0_32] : memref<1x32xf32, #tpu.memory_space<vmem>>, vector<1x32xf32>
    %33 = vector.broadcast %32 : vector<1x32xf32> to vector<3x32xf32>
    %34 = arith.addf %31, %33 : vector<3x32xf32>
    %cst_33 = arith.constant 0.000000e+00 : f32
    %35 = vector.broadcast %cst_33 : f32 to vector<3x32xf32>
    %36 = arith.maximumf %34, %35 : vector<3x32xf32>
    %c64 = arith.constant 64 : index
    %c0_34 = arith.constant 0 : index
    %37 = vector.load %arg4[%c64, %c0_34] : memref<96x32xf32, #tpu.memory_space<vmem>>, vector<32x32xf32>
    %cst_35 = arith.constant dense<0.000000e+00> : vector<3x32xf32>
    %38 = tpu.matmul %36, %37, %cst_35 {dimension_numbers = #tpu.dot_dimension_numbers<[1], [0], [0], [1], [0, 0, 1, 1], [], []>} : vector<3x32xf32>, vector<32x32xf32>, vector<3x32xf32> -> vector<3x32xf32>
    %39 = arith.addf %27, %38 : vector<3x32xf32>
    %c0_36 = arith.constant 0 : index
    %c0_37 = arith.constant 0 : index
    %c0_38 = arith.constant 0 : index
    %40 = vector.load %arg6[%c0_36, %c0_37, %c0_38] : memref<1x3x32xf32, #tpu.memory_space<vmem>>, vector<1x3x32xf32>
    %41 = vector.shape_cast %40 : vector<1x3x32xf32> to vector<3x32xf32>
    %42 = vector.shape_cast %39 : vector<3x32xf32> to vector<1x3x32xf32>
    tpu.vector_store %arg6[%c0_36, %c0_37, %c0_38], %42 {strides = array<i32>} : memref<1x3x32xf32, #tpu.memory_space<vmem>>, vector<1x3x32xf32>,
    return
  }
  func.func @transform_0(%arg0: i32) -> (i32, i32, i32, i32) {
    %c0_i32 = arith.constant 0 : i32
    %c0_i32_0 = arith.constant 0 : i32
    %c0_i32_1 = arith.constant 0 : i32
    %c0_i32_2 = arith.constant 0 : i32
    return %arg0, %c0_i32, %c0_i32_0, %c0_i32_1 : i32, i32, i32, i32
  }
  func.func @transform_1(%arg0: i32) -> (i32, i32) {
    %c0_i32 = arith.constant 0 : i32
    %c0_i32_0 = arith.constant 0 : i32
    %c0_i32_1 = arith.constant 0 : i32
    return %c0_i32, %c0_i32_0 : i32, i32
  }
  func.func @transform_2(%arg0: i32) -> (i32, i32) {
    %c0_i32 = arith.constant 0 : i32
    %c0_i32_0 = arith.constant 0 : i32
    %c0_i32_1 = arith.constant 0 : i32
    return %c0_i32, %c0_i32_0 : i32, i32
  }
  func.func @transform_3(%arg0: i32) -> (i32, i32) {
    %c0_i32 = arith.constant 0 : i32
    %c0_i32_0 = arith.constant 0 : i32
    %c0_i32_1 = arith.constant 0 : i32
    return %c0_i32, %c0_i32_0 : i32, i32
  }
  func.func @transform_4(%arg0: i32) -> (i32, i32) {
    %c0_i32 = arith.constant 0 : i32
    %c0_i32_0 = arith.constant 0 : i32
    %c0_i32_1 = arith.constant 0 : i32
    return %c0_i32, %c0_i32_0 : i32, i32
  }
  func.func @transform_5(%arg0: i32) -> (i32, i32, i32) {
    %c0_i32 = arith.constant 0 : i32
    %c0_i32_0 = arith.constant 0 : i32
    %c0_i32_1 = arith.constant 0 : i32
    return %arg0, %c0_i32, %c0_i32_0 : i32, i32, i32
  }
}

module attributes {stable_mosaic.version = 11 : i64} {
  func.func @_block_kernel(%arg0: i32, %arg1: memref<1x3x32xf32, #tpu.memory_space<vmem>>, %arg2: memref<1x1x3xf32, #tpu.memory_space<vmem>>, %arg3: memref<5x32xf32, #tpu.memory_space<vmem>>, %arg4: memref<21x32xf32, #tpu.memory_space<vmem>>, %arg5: memref<2x128xf32, #tpu.memory_space<vmem>>, %arg6: memref<1x96xf32, #tpu.memory_space<vmem>>, %arg7: memref<1x64xf32, #tpu.memory_space<vmem>>, %arg8: memref<2x32x128xf32, #tpu.memory_space<vmem>>, %arg9: memref<2x128x32xf32, #tpu.memory_space<vmem>>, %arg10: memref<32x96xf32, #tpu.memory_space<vmem>>, %arg11: memref<32x32xf32, #tpu.memory_space<vmem>>, %arg12: memref<32x32xf32, #tpu.memory_space<vmem>>, %arg13: memref<32x64xf32, #tpu.memory_space<vmem>>, %arg14: memref<3x32xf32, #tpu.memory_space<vmem>>, %arg15: memref<32x32xf32, #tpu.memory_space<vmem>>, %arg16: memref<1x3x32xf32, #tpu.memory_space<vmem>>) attributes {dimension_semantics = [#tpu.dimension_semantics<parallel>], iteration_bounds = array<i64: 2>, scalar_prefetch = 0 : i64, scratch_operands = 0 : i64, tpu.core_type = #tpu.core_type<tc>, window_params = [{transform_indices = @transform_0, window_bounds = array<i64: 1, 3, 32>}, {transform_indices = @transform_1, window_bounds = array<i64: 1, 1, 3>}, {pipeline_mode = #tpu.pipeline_mode<synchronous>, transform_indices = @transform_2, window_bounds = array<i64: 5, 32>}, {pipeline_mode = #tpu.pipeline_mode<synchronous>, transform_indices = @transform_3, window_bounds = array<i64: 21, 32>}, {pipeline_mode = #tpu.pipeline_mode<synchronous>, transform_indices = @transform_4, window_bounds = array<i64: 2, 128>}, {pipeline_mode = #tpu.pipeline_mode<synchronous>, transform_indices = @transform_5, window_bounds = array<i64: 1, 96>}, {pipeline_mode = #tpu.pipeline_mode<synchronous>, transform_indices = @transform_6, window_bounds = array<i64: 1, 64>}, {pipeline_mode = #tpu.pipeline_mode<synchronous>, transform_indices = @transform_7, window_bounds = array<i64: 2, 32, 128>}, {pipeline_mode = #tpu.pipeline_mode<synchronous>, transform_indices = @transform_8, window_bounds = array<i64: 2, 128, 32>}, {pipeline_mode = #tpu.pipeline_mode<synchronous>, transform_indices = @transform_9, window_bounds = array<i64: 32, 96>}, {pipeline_mode = #tpu.pipeline_mode<synchronous>, transform_indices = @transform_10, window_bounds = array<i64: 32, 32>}, {pipeline_mode = #tpu.pipeline_mode<synchronous>, transform_indices = @transform_11, window_bounds = array<i64: 32, 32>}, {pipeline_mode = #tpu.pipeline_mode<synchronous>, transform_indices = @transform_12, window_bounds = array<i64: 32, 64>}, {pipeline_mode = #tpu.pipeline_mode<synchronous>, transform_indices = @transform_13, window_bounds = array<i64: 3, 32>}, {pipeline_mode = #tpu.pipeline_mode<synchronous>, transform_indices = @transform_14, window_bounds = array<i64: 32, 32>}, {transform_indices = @transform_15, window_bounds = array<i64: 1, 3, 32>}]} {
    %c0 = arith.constant 0 : index
    %c0_0 = arith.constant 0 : index
    %c0_1 = arith.constant 0 : index
    %0 = vector.load %arg1[%c0, %c0_0, %c0_1] : memref<1x3x32xf32, #tpu.memory_space<vmem>>, vector<1x3x32xf32>
    %1 = vector.shape_cast %0 : vector<1x3x32xf32> to vector<3x32xf32>
    %2 = tpu.iota {dimensions = array<i32: 0>} : vector<3x3xi32>
    %3 = tpu.iota {dimensions = array<i32: 1>} : vector<3x3xi32>
    %c0_2 = arith.constant 0 : index
    %c0_3 = arith.constant 0 : index
    %4 = vector.load %arg4[%c0_2, %c0_3] : memref<21x32xf32, #tpu.memory_space<vmem>>, vector<1x32xf32>
    %c1 = arith.constant 1 : index
    %c0_4 = arith.constant 0 : index
    %5 = vector.load %arg4[%c1, %c0_4] : memref<21x32xf32, #tpu.memory_space<vmem>>, vector<1x32xf32>
    %cst = arith.constant dense<0.000000e+00> : vector<3xf32>
    %6 = vector.multi_reduction <add>, %1, %cst [1] : vector<3x32xf32> to vector<3xf32>
    %7 = vector.shape_cast %6 : vector<3xf32> to vector<3x1xf32>
    %cst_5 = arith.constant 3.200000e+01 : f32
    %8 = vector.broadcast %cst_5 : f32 to vector<3x1xf32>
    %9 = arith.divf %7, %8 : vector<3x1xf32>
    %10 = vector.broadcast %9 : vector<3x1xf32> to vector<3x32xf32>
    %11 = arith.subf %1, %10 : vector<3x32xf32>
    %12 = arith.mulf %11, %11 : vector<3x32xf32>
    %cst_6 = arith.constant dense<0.000000e+00> : vector<3xf32>
    %13 = vector.multi_reduction <add>, %12, %cst_6 [1] : vector<3x32xf32> to vector<3xf32>
    %14 = vector.shape_cast %13 : vector<3xf32> to vector<3x1xf32>
    %cst_7 = arith.constant 3.200000e+01 : f32
    %15 = vector.broadcast %cst_7 : f32 to vector<3x1xf32>
    %16 = arith.divf %14, %15 : vector<3x1xf32>
    %cst_8 = arith.constant 9.99999974E-6 : f32
    %17 = vector.broadcast %cst_8 : f32 to vector<3x1xf32>
    %18 = arith.addf %16, %17 : vector<3x1xf32>
    %19 = math.rsqrt %18 : vector<3x1xf32>
    %20 = vector.broadcast %19 : vector<3x1xf32> to vector<3x32xf32>
    %21 = arith.mulf %11, %20 : vector<3x32xf32>
    %22 = vector.broadcast %4 : vector<1x32xf32> to vector<3x32xf32>
    %23 = arith.mulf %21, %22 : vector<3x32xf32>
    %24 = vector.broadcast %5 : vector<1x32xf32> to vector<3x32xf32>
    %25 = arith.addf %23, %24 : vector<3x32xf32>
    %c0_9 = arith.constant 0 : index
    %c0_10 = arith.constant 0 : index
    %c0_11 = arith.constant 0 : index
    %26 = vector.load %arg8[%c0_9, %c0_10, %c0_11] : memref<2x32x128xf32, #tpu.memory_space<vmem>>, vector<1x32x128xf32>
    %27 = vector.shape_cast %26 : vector<1x32x128xf32> to vector<32x128xf32>
    %cst_12 = arith.constant dense<0.000000e+00> : vector<3x128xf32>
    %28 = tpu.matmul %25, %27, %cst_12 {dimension_numbers = #tpu.dot_dimension_numbers<[1], [0], [0], [1], [0, 0, 1, 1], [], []>} : vector<3x32xf32>, vector<32x128xf32>, vector<3x128xf32> -> vector<3x128xf32>
    %c0_13 = arith.constant 0 : index
    %c0_14 = arith.constant 0 : index
    %29 = vector.load %arg5[%c0_13, %c0_14] : memref<2x128xf32, #tpu.memory_space<vmem>>, vector<1x128xf32>
    %30 = vector.broadcast %29 : vector<1x128xf32> to vector<3x128xf32>
    %31 = arith.addf %28, %30 : vector<3x128xf32>
    %32 = arith.negf %31 : vector<3x128xf32>
    %33 = math.exp %32 : vector<3x128xf32>
    %cst_15 = arith.constant 1.000000e+00 : f32
    %34 = vector.broadcast %cst_15 : f32 to vector<3x128xf32>
    %35 = arith.addf %34, %33 : vector<3x128xf32>
    %36 = arith.divf %34, %35 : vector<3x128xf32>
    %37 = arith.mulf %31, %36 : vector<3x128xf32>
    %c0_16 = arith.constant 0 : index
    %c0_17 = arith.constant 0 : index
    %c0_18 = arith.constant 0 : index
    %38 = vector.load %arg9[%c0_16, %c0_17, %c0_18] : memref<2x128x32xf32, #tpu.memory_space<vmem>>, vector<1x128x32xf32>
    %39 = vector.shape_cast %38 : vector<1x128x32xf32> to vector<128x32xf32>
    %cst_19 = arith.constant dense<0.000000e+00> : vector<3x32xf32>
    %40 = tpu.matmul %37, %39, %cst_19 {dimension_numbers = #tpu.dot_dimension_numbers<[1], [0], [0], [1], [0, 0, 1, 1], [], []>} : vector<3x128xf32>, vector<128x32xf32>, vector<3x32xf32> -> vector<3x32xf32>
    %c2 = arith.constant 2 : index
    %c0_20 = arith.constant 0 : index
    %41 = vector.load %arg4[%c2, %c0_20] : memref<21x32xf32, #tpu.memory_space<vmem>>, vector<1x32xf32>
    %42 = vector.broadcast %41 : vector<1x32xf32> to vector<3x32xf32>
    %43 = arith.addf %40, %42 : vector<3x32xf32>
    %cst_21 = arith.constant 5.000000e-01 : f32
    %44 = vector.broadcast %cst_21 : f32 to vector<3x32xf32>
    %45 = arith.mulf %44, %43 : vector<3x32xf32>
    %46 = arith.addf %1, %45 : vector<3x32xf32>
    %c3 = arith.constant 3 : index
    %c0_22 = arith.constant 0 : index
    %47 = vector.load %arg4[%c3, %c0_22] : memref<21x32xf32, #tpu.memory_space<vmem>>, vector<1x32xf32>
    %c4 = arith.constant 4 : index
    %c0_23 = arith.constant 0 : index
    %48 = vector.load %arg4[%c4, %c0_23] : memref<21x32xf32, #tpu.memory_space<vmem>>, vector<1x32xf32>
    %cst_24 = arith.constant dense<0.000000e+00> : vector<3xf32>
    %49 = vector.multi_reduction <add>, %46, %cst_24 [1] : vector<3x32xf32> to vector<3xf32>
    %50 = vector.shape_cast %49 : vector<3xf32> to vector<3x1xf32>
    %cst_25 = arith.constant 3.200000e+01 : f32
    %51 = vector.broadcast %cst_25 : f32 to vector<3x1xf32>
    %52 = arith.divf %50, %51 : vector<3x1xf32>
    %53 = vector.broadcast %52 : vector<3x1xf32> to vector<3x32xf32>
    %54 = arith.subf %46, %53 : vector<3x32xf32>
    %55 = arith.mulf %54, %54 : vector<3x32xf32>
    %cst_26 = arith.constant dense<0.000000e+00> : vector<3xf32>
    %56 = vector.multi_reduction <add>, %55, %cst_26 [1] : vector<3x32xf32> to vector<3xf32>
    %57 = vector.shape_cast %56 : vector<3xf32> to vector<3x1xf32>
    %cst_27 = arith.constant 3.200000e+01 : f32
    %58 = vector.broadcast %cst_27 : f32 to vector<3x1xf32>
    %59 = arith.divf %57, %58 : vector<3x1xf32>
    %cst_28 = arith.constant 9.99999974E-6 : f32
    %60 = vector.broadcast %cst_28 : f32 to vector<3x1xf32>
    %61 = arith.addf %59, %60 : vector<3x1xf32>
    %62 = math.rsqrt %61 : vector<3x1xf32>
    %63 = vector.broadcast %62 : vector<3x1xf32> to vector<3x32xf32>
    %64 = arith.mulf %54, %63 : vector<3x32xf32>
    %65 = vector.broadcast %47 : vector<1x32xf32> to vector<3x32xf32>
    %66 = arith.mulf %64, %65 : vector<3x32xf32>
    %67 = vector.broadcast %48 : vector<1x32xf32> to vector<3x32xf32>
    %68 = arith.addf %66, %67 : vector<3x32xf32>
    %c0_29 = arith.constant 0 : index
    %c0_30 = arith.constant 0 : index
    %69 = vector.load %arg10[%c0_29, %c0_30] : memref<32x96xf32, #tpu.memory_space<vmem>>, vector<32x96xf32>
    %cst_31 = arith.constant dense<0.000000e+00> : vector<3x96xf32>
    %70 = tpu.matmul %68, %69, %cst_31 {dimension_numbers = #tpu.dot_dimension_numbers<[1], [0], [0], [1], [0, 0, 1, 1], [], []>} : vector<3x32xf32>, vector<32x96xf32>, vector<3x96xf32> -> vector<3x96xf32>
    %c0_32 = arith.constant 0 : index
    %c0_33 = arith.constant 0 : index
    %71 = vector.load %arg6[%c0_32, %c0_33] : memref<1x96xf32, #tpu.memory_space<vmem>>, vector<1x96xf32>
    %72 = vector.broadcast %71 : vector<1x96xf32> to vector<3x96xf32>
    %73 = arith.addf %70, %72 : vector<3x96xf32>
    %74 = vector.extract_strided_slice %73 {offsets = [0, 0], sizes = [3, 32], strides = [1, 1]} : vector<3x96xf32> to vector<3x32xf32>
    %75 = vector.extract_strided_slice %73 {offsets = [0, 32], sizes = [3, 32], strides = [1, 1]} : vector<3x96xf32> to vector<3x32xf32>
    %76 = vector.extract_strided_slice %73 {offsets = [0, 64], sizes = [3, 32], strides = [1, 1]} : vector<3x96xf32> to vector<3x32xf32>
    %c6 = arith.constant 6 : index
    %c0_34 = arith.constant 0 : index
    %77 = vector.load %arg4[%c6, %c0_34] : memref<21x32xf32, #tpu.memory_space<vmem>>, vector<1x32xf32>
    %78 = vector.broadcast %77 : vector<1x32xf32> to vector<3x32xf32>
    %79 = arith.addf %74, %78 : vector<3x32xf32>
    %c7 = arith.constant 7 : index
    %c0_35 = arith.constant 0 : index
    %80 = vector.load %arg4[%c7, %c0_35] : memref<21x32xf32, #tpu.memory_space<vmem>>, vector<1x32xf32>
    %81 = vector.broadcast %80 : vector<1x32xf32> to vector<3x32xf32>
    %82 = arith.addf %74, %81 : vector<3x32xf32>
    %c0_36 = arith.constant 0 : index
    %c0_37 = arith.constant 0 : index
    %83 = vector.load %arg3[%c0_36, %c0_37] : memref<5x32xf32, #tpu.memory_space<vmem>>, vector<5x32xf32>
    %c0_38 = arith.constant 0 : index
    %c0_39 = arith.constant 0 : index
    %84 = vector.load %arg11[%c0_38, %c0_39] : memref<32x32xf32, #tpu.memory_space<vmem>>, vector<32x32xf32>
    %cst_40 = arith.constant dense<0.000000e+00> : vector<5x32xf32>
    %85 = tpu.matmul %83, %84, %cst_40 {dimension_numbers = #tpu.dot_dimension_numbers<[1], [0], [0], [1], [0, 0, 1, 1], [], []>} : vector<5x32xf32>, vector<32x32xf32>, vector<5x32xf32> -> vector<5x32xf32>
    %c0_41 = arith.constant 0 : index
    %c0_42 = arith.constant 0 : index
    %c0_43 = arith.constant 0 : index
    %86 = vector.load %arg2[%c0_41, %c0_42, %c0_43] : memref<1x1x3xf32, #tpu.memory_space<vmem>>, vector<1x1x3xf32>
    %87 = vector.shape_cast %86 : vector<1x1x3xf32> to vector<1x3xf32>
    %88 = arith.subi %3, %2 : vector<3x3xi32>
    %cst_44 = arith.constant 0.000000e+00 : f32
    %89 = vector.broadcast %cst_44 : f32 to vector<3x32xf32>
    %90 = vector.extract_strided_slice %79 {offsets = [0, 0], sizes = [3, 8], strides = [1, 1]} : vector<3x32xf32> to vector<3x8xf32>
    %91 = vector.extract_strided_slice %75 {offsets = [0, 0], sizes = [3, 8], strides = [1, 1]} : vector<3x32xf32> to vector<3x8xf32>
    %cst_45 = arith.constant dense<0.000000e+00> : vector<3x3xf32>
    %92 = tpu.matmul %90, %91, %cst_45 {dimension_numbers = #tpu.dot_dimension_numbers<[1], [1], [0], [0], [0, 0, 1, 0], [], []>} : vector<3x8xf32>, vector<3x8xf32>, vector<3x3xf32> -> vector<3x3xf32>
    %93 = vector.extract_strided_slice %82 {offsets = [0, 0], sizes = [3, 8], strides = [1, 1]} : vector<3x32xf32> to vector<3x8xf32>
    %94 = vector.extract_strided_slice %85 {offsets = [0, 0], sizes = [5, 8], strides = [1, 1]} : vector<5x32xf32> to vector<5x8xf32>
    %cst_46 = arith.constant dense<0.000000e+00> : vector<3x5xf32>
    %95 = tpu.matmul %93, %94, %cst_46 {dimension_numbers = #tpu.dot_dimension_numbers<[1], [1], [0], [0], [0, 0, 1, 0], [], []>} : vector<3x8xf32>, vector<5x8xf32>, vector<3x5xf32> -> vector<3x5xf32>
    %cst_47 = arith.constant 0.000000e+00 : f32
    %96 = vector.broadcast %cst_47 : f32 to vector<3x3xf32>
    %c-2_i32 = arith.constant -2 : i32
    %97 = vector.broadcast %c-2_i32 : i32 to vector<3x3xi32>
    %98 = arith.cmpi eq, %88, %97 : vector<3x3xi32>
    %99 = vector.extract_strided_slice %95 {offsets = [0, 0], sizes = [3, 1], strides = [1, 1]} : vector<3x5xf32> to vector<3x1xf32>
    %cst_48 = arith.constant 0.000000e+00 : f32
    %100 = vector.shape_cast %99 : vector<3x1xf32> to vector<3x1xf32>
    %101 = vector.broadcast %100 : vector<3x1xf32> to vector<3x3xf32>
    %102 = vector.broadcast %cst_48 : f32 to vector<3x3xf32>
    %103 = arith.select %98, %101, %102 : vector<3x3xi1>, vector<3x3xf32>
    %104 = arith.addf %96, %103 : vector<3x3xf32>
    %c-1_i32 = arith.constant -1 : i32
    %105 = vector.broadcast %c-1_i32 : i32 to vector<3x3xi32>
    %106 = arith.cmpi eq, %88, %105 : vector<3x3xi32>
    %107 = vector.extract_strided_slice %95 {offsets = [0, 1], sizes = [3, 1], strides = [1, 1]} : vector<3x5xf32> to vector<3x1xf32>
    %cst_49 = arith.constant 0.000000e+00 : f32
    %108 = vector.shape_cast %107 : vector<3x1xf32> to vector<3x1xf32>
    %109 = vector.broadcast %108 : vector<3x1xf32> to vector<3x3xf32>
    %110 = vector.broadcast %cst_49 : f32 to vector<3x3xf32>
    %111 = arith.select %106, %109, %110 : vector<3x3xi1>, vector<3x3xf32>
    %112 = arith.addf %104, %111 : vector<3x3xf32>
    %c0_i32 = arith.constant 0 : i32
    %113 = vector.broadcast %c0_i32 : i32 to vector<3x3xi32>
    %114 = arith.cmpi eq, %88, %113 : vector<3x3xi32>
    %115 = vector.extract_strided_slice %95 {offsets = [0, 2], sizes = [3, 1], strides = [1, 1]} : vector<3x5xf32> to vector<3x1xf32>
    %cst_50 = arith.constant 0.000000e+00 : f32
    %116 = vector.shape_cast %115 : vector<3x1xf32> to vector<3x1xf32>
    %117 = vector.broadcast %116 : vector<3x1xf32> to vector<3x3xf32>
    %118 = vector.broadcast %cst_50 : f32 to vector<3x3xf32>
    %119 = arith.select %114, %117, %118 : vector<3x3xi1>, vector<3x3xf32>
    %120 = arith.addf %112, %119 : vector<3x3xf32>
    %c1_i32 = arith.constant 1 : i32
    %121 = vector.broadcast %c1_i32 : i32 to vector<3x3xi32>
    %122 = arith.cmpi eq, %88, %121 : vector<3x3xi32>
    %123 = vector.extract_strided_slice %95 {offsets = [0, 3], sizes = [3, 1], strides = [1, 1]} : vector<3x5xf32> to vector<3x1xf32>
    %cst_51 = arith.constant 0.000000e+00 : f32
    %124 = vector.shape_cast %123 : vector<3x1xf32> to vector<3x1xf32>
    %125 = vector.broadcast %124 : vector<3x1xf32> to vector<3x3xf32>
    %126 = vector.broadcast %cst_51 : f32 to vector<3x3xf32>
    %127 = arith.select %122, %125, %126 : vector<3x3xi1>, vector<3x3xf32>
    %128 = arith.addf %120, %127 : vector<3x3xf32>
    %c2_i32 = arith.constant 2 : i32
    %129 = vector.broadcast %c2_i32 : i32 to vector<3x3xi32>
    %130 = arith.cmpi eq, %88, %129 : vector<3x3xi32>
    %131 = vector.extract_strided_slice %95 {offsets = [0, 4], sizes = [3, 1], strides = [1, 1]} : vector<3x5xf32> to vector<3x1xf32>
    %cst_52 = arith.constant 0.000000e+00 : f32
    %132 = vector.shape_cast %131 : vector<3x1xf32> to vector<3x1xf32>
    %133 = vector.broadcast %132 : vector<3x1xf32> to vector<3x3xf32>
    %134 = vector.broadcast %cst_52 : f32 to vector<3x3xf32>
    %135 = arith.select %130, %133, %134 : vector<3x3xi1>, vector<3x3xf32>
    %136 = arith.addf %128, %135 : vector<3x3xf32>
    %137 = arith.addf %92, %136 : vector<3x3xf32>
    %cst_53 = arith.constant 0.353553385 : f32
    %138 = vector.broadcast %cst_53 : f32 to vector<3x3xf32>
    %139 = arith.mulf %137, %138 : vector<3x3xf32>
    %cst_54 = arith.constant 5.000000e-01 : f32
    %140 = vector.broadcast %cst_54 : f32 to vector<1x3xf32>
    %141 = arith.cmpf ogt, %87, %140 : vector<1x3xf32>
    %cst_55 = arith.constant -1.000000e+09 : f32
    %142 = vector.shape_cast %141 : vector<1x3xi1> to vector<1x3xi1>
    %143 = vector.broadcast %142 : vector<1x3xi1> to vector<3x3xi1>
    %144 = vector.broadcast %cst_55 : f32 to vector<3x3xf32>
    %145 = arith.select %143, %139, %144 : vector<3x3xi1>, vector<3x3xf32>
    %cst_56 = arith.constant dense<0xFF800000> : vector<3xf32>
    %146 = vector.multi_reduction <maximumf>, %145, %cst_56 [1] : vector<3x3xf32> to vector<3xf32>
    %147 = vector.shape_cast %146 : vector<3xf32> to vector<3x1xf32>
    %148 = vector.broadcast %147 : vector<3x1xf32> to vector<3x3xf32>
    %149 = arith.subf %145, %148 : vector<3x3xf32>
    %150 = math.exp %149 : vector<3x3xf32>
    %cst_57 = arith.constant dense<0.000000e+00> : vector<3xf32>
    %151 = vector.multi_reduction <add>, %150, %cst_57 [1] : vector<3x3xf32> to vector<3xf32>
    %152 = vector.shape_cast %151 : vector<3xf32> to vector<3x1xf32>
    %153 = tpu.reciprocal %152 {approx = true} : vector<3x1xf32> -> vector<3x1xf32>
    %154 = vector.broadcast %153 : vector<3x1xf32> to vector<3x3xf32>
    %155 = arith.mulf %150, %154 : vector<3x3xf32>
    %156 = vector.extract_strided_slice %76 {offsets = [0, 0], sizes = [3, 8], strides = [1, 1]} : vector<3x32xf32> to vector<3x8xf32>
    %cst_58 = arith.constant dense<0.000000e+00> : vector<3x8xf32>
    %157 = tpu.matmul %155, %156, %cst_58 {dimension_numbers = #tpu.dot_dimension_numbers<[1], [0], [0], [1], [0, 0, 1, 1], [], []>} : vector<3x3xf32>, vector<3x8xf32>, vector<3x8xf32> -> vector<3x8xf32>
    %c0_59 = arith.constant 0 : index
    %c0_60 = arith.constant 0 : index
    %158 = vector.load %arg12[%c0_59, %c0_60] : memref<32x32xf32, #tpu.memory_space<vmem>>, vector<8x32xf32>
    %cst_61 = arith.constant dense<0.000000e+00> : vector<3x32xf32>
    %159 = tpu.matmul %157, %158, %cst_61 {dimension_numbers = #tpu.dot_dimension_numbers<[1], [0], [0], [1], [0, 0, 1, 1], [], []>} : vector<3x8xf32>, vector<8x32xf32>, vector<3x32xf32> -> vector<3x32xf32>
    %160 = arith.addf %89, %159 : vector<3x32xf32>
    %161 = vector.extract_strided_slice %79 {offsets = [0, 8], sizes = [3, 8], strides = [1, 1]} : vector<3x32xf32> to vector<3x8xf32>
    %162 = vector.extract_strided_slice %75 {offsets = [0, 8], sizes = [3, 8], strides = [1, 1]} : vector<3x32xf32> to vector<3x8xf32>
    %cst_62 = arith.constant dense<0.000000e+00> : vector<3x3xf32>
    %163 = tpu.matmul %161, %162, %cst_62 {dimension_numbers = #tpu.dot_dimension_numbers<[1], [1], [0], [0], [0, 0, 1, 0], [], []>} : vector<3x8xf32>, vector<3x8xf32>, vector<3x3xf32> -> vector<3x3xf32>
    %164 = vector.extract_strided_slice %82 {offsets = [0, 8], sizes = [3, 8], strides = [1, 1]} : vector<3x32xf32> to vector<3x8xf32>
    %165 = vector.extract_strided_slice %85 {offsets = [0, 8], sizes = [5, 8], strides = [1, 1]} : vector<5x32xf32> to vector<5x8xf32>
    %cst_63 = arith.constant dense<0.000000e+00> : vector<3x5xf32>
    %166 = tpu.matmul %164, %165, %cst_63 {dimension_numbers = #tpu.dot_dimension_numbers<[1], [1], [0], [0], [0, 0, 1, 0], [], []>} : vector<3x8xf32>, vector<5x8xf32>, vector<3x5xf32> -> vector<3x5xf32>
    %cst_64 = arith.constant 0.000000e+00 : f32
    %167 = vector.broadcast %cst_64 : f32 to vector<3x3xf32>
    %c-2_i32_65 = arith.constant -2 : i32
    %168 = vector.broadcast %c-2_i32_65 : i32 to vector<3x3xi32>
    %169 = arith.cmpi eq, %88, %168 : vector<3x3xi32>
    %170 = vector.extract_strided_slice %166 {offsets = [0, 0], sizes = [3, 1], strides = [1, 1]} : vector<3x5xf32> to vector<3x1xf32>
    %cst_66 = arith.constant 0.000000e+00 : f32
    %171 = vector.shape_cast %170 : vector<3x1xf32> to vector<3x1xf32>
    %172 = vector.broadcast %171 : vector<3x1xf32> to vector<3x3xf32>
    %173 = vector.broadcast %cst_66 : f32 to vector<3x3xf32>
    %174 = arith.select %169, %172, %173 : vector<3x3xi1>, vector<3x3xf32>
    %175 = arith.addf %167, %174 : vector<3x3xf32>
    %c-1_i32_67 = arith.constant -1 : i32
    %176 = vector.broadcast %c-1_i32_67 : i32 to vector<3x3xi32>
    %177 = arith.cmpi eq, %88, %176 : vector<3x3xi32>
    %178 = vector.extract_strided_slice %166 {offsets = [0, 1], sizes = [3, 1], strides = [1, 1]} : vector<3x5xf32> to vector<3x1xf32>
    %cst_68 = arith.constant 0.000000e+00 : f32
    %179 = vector.shape_cast %178 : vector<3x1xf32> to vector<3x1xf32>
    %180 = vector.broadcast %179 : vector<3x1xf32> to vector<3x3xf32>
    %181 = vector.broadcast %cst_68 : f32 to vector<3x3xf32>
    %182 = arith.select %177, %180, %181 : vector<3x3xi1>, vector<3x3xf32>
    %183 = arith.addf %175, %182 : vector<3x3xf32>
    %c0_i32_69 = arith.constant 0 : i32
    %184 = vector.broadcast %c0_i32_69 : i32 to vector<3x3xi32>
    %185 = arith.cmpi eq, %88, %184 : vector<3x3xi32>
    %186 = vector.extract_strided_slice %166 {offsets = [0, 2], sizes = [3, 1], strides = [1, 1]} : vector<3x5xf32> to vector<3x1xf32>
    %cst_70 = arith.constant 0.000000e+00 : f32
    %187 = vector.shape_cast %186 : vector<3x1xf32> to vector<3x1xf32>
    %188 = vector.broadcast %187 : vector<3x1xf32> to vector<3x3xf32>
    %189 = vector.broadcast %cst_70 : f32 to vector<3x3xf32>
    %190 = arith.select %185, %188, %189 : vector<3x3xi1>, vector<3x3xf32>
    %191 = arith.addf %183, %190 : vector<3x3xf32>
    %c1_i32_71 = arith.constant 1 : i32
    %192 = vector.broadcast %c1_i32_71 : i32 to vector<3x3xi32>
    %193 = arith.cmpi eq, %88, %192 : vector<3x3xi32>
    %194 = vector.extract_strided_slice %166 {offsets = [0, 3], sizes = [3, 1], strides = [1, 1]} : vector<3x5xf32> to vector<3x1xf32>
    %cst_72 = arith.constant 0.000000e+00 : f32
    %195 = vector.shape_cast %194 : vector<3x1xf32> to vector<3x1xf32>
    %196 = vector.broadcast %195 : vector<3x1xf32> to vector<3x3xf32>
    %197 = vector.broadcast %cst_72 : f32 to vector<3x3xf32>
    %198 = arith.select %193, %196, %197 : vector<3x3xi1>, vector<3x3xf32>
    %199 = arith.addf %191, %198 : vector<3x3xf32>
    %c2_i32_73 = arith.constant 2 : i32
    %200 = vector.broadcast %c2_i32_73 : i32 to vector<3x3xi32>
    %201 = arith.cmpi eq, %88, %200 : vector<3x3xi32>
    %202 = vector.extract_strided_slice %166 {offsets = [0, 4], sizes = [3, 1], strides = [1, 1]} : vector<3x5xf32> to vector<3x1xf32>
    %cst_74 = arith.constant 0.000000e+00 : f32
    %203 = vector.shape_cast %202 : vector<3x1xf32> to vector<3x1xf32>
    %204 = vector.broadcast %203 : vector<3x1xf32> to vector<3x3xf32>
    %205 = vector.broadcast %cst_74 : f32 to vector<3x3xf32>
    %206 = arith.select %201, %204, %205 : vector<3x3xi1>, vector<3x3xf32>
    %207 = arith.addf %199, %206 : vector<3x3xf32>
    %208 = arith.addf %163, %207 : vector<3x3xf32>
    %cst_75 = arith.constant 0.353553385 : f32
    %209 = vector.broadcast %cst_75 : f32 to vector<3x3xf32>
    %210 = arith.mulf %208, %209 : vector<3x3xf32>
    %cst_76 = arith.constant 5.000000e-01 : f32
    %211 = vector.broadcast %cst_76 : f32 to vector<1x3xf32>
    %212 = arith.cmpf ogt, %87, %211 : vector<1x3xf32>
    %cst_77 = arith.constant -1.000000e+09 : f32
    %213 = vector.shape_cast %212 : vector<1x3xi1> to vector<1x3xi1>
    %214 = vector.broadcast %213 : vector<1x3xi1> to vector<3x3xi1>
    %215 = vector.broadcast %cst_77 : f32 to vector<3x3xf32>
    %216 = arith.select %214, %210, %215 : vector<3x3xi1>, vector<3x3xf32>
    %cst_78 = arith.constant dense<0xFF800000> : vector<3xf32>
    %217 = vector.multi_reduction <maximumf>, %216, %cst_78 [1] : vector<3x3xf32> to vector<3xf32>
    %218 = vector.shape_cast %217 : vector<3xf32> to vector<3x1xf32>
    %219 = vector.broadcast %218 : vector<3x1xf32> to vector<3x3xf32>
    %220 = arith.subf %216, %219 : vector<3x3xf32>
    %221 = math.exp %220 : vector<3x3xf32>
    %cst_79 = arith.constant dense<0.000000e+00> : vector<3xf32>
    %222 = vector.multi_reduction <add>, %221, %cst_79 [1] : vector<3x3xf32> to vector<3xf32>
    %223 = vector.shape_cast %222 : vector<3xf32> to vector<3x1xf32>
    %224 = tpu.reciprocal %223 {approx = true} : vector<3x1xf32> -> vector<3x1xf32>
    %225 = vector.broadcast %224 : vector<3x1xf32> to vector<3x3xf32>
    %226 = arith.mulf %221, %225 : vector<3x3xf32>
    %227 = vector.extract_strided_slice %76 {offsets = [0, 8], sizes = [3, 8], strides = [1, 1]} : vector<3x32xf32> to vector<3x8xf32>
    %cst_80 = arith.constant dense<0.000000e+00> : vector<3x8xf32>
    %228 = tpu.matmul %226, %227, %cst_80 {dimension_numbers = #tpu.dot_dimension_numbers<[1], [0], [0], [1], [0, 0, 1, 1], [], []>} : vector<3x3xf32>, vector<3x8xf32>, vector<3x8xf32> -> vector<3x8xf32>
    %c8 = arith.constant 8 : index
    %c0_81 = arith.constant 0 : index
    %229 = vector.load %arg12[%c8, %c0_81] : memref<32x32xf32, #tpu.memory_space<vmem>>, vector<8x32xf32>
    %cst_82 = arith.constant dense<0.000000e+00> : vector<3x32xf32>
    %230 = tpu.matmul %228, %229, %cst_82 {dimension_numbers = #tpu.dot_dimension_numbers<[1], [0], [0], [1], [0, 0, 1, 1], [], []>} : vector<3x8xf32>, vector<8x32xf32>, vector<3x32xf32> -> vector<3x32xf32>
    %231 = arith.addf %160, %230 : vector<3x32xf32>
    %232 = vector.extract_strided_slice %79 {offsets = [0, 16], sizes = [3, 8], strides = [1, 1]} : vector<3x32xf32> to vector<3x8xf32>
    %233 = vector.extract_strided_slice %75 {offsets = [0, 16], sizes = [3, 8], strides = [1, 1]} : vector<3x32xf32> to vector<3x8xf32>
    %cst_83 = arith.constant dense<0.000000e+00> : vector<3x3xf32>
    %234 = tpu.matmul %232, %233, %cst_83 {dimension_numbers = #tpu.dot_dimension_numbers<[1], [1], [0], [0], [0, 0, 1, 0], [], []>} : vector<3x8xf32>, vector<3x8xf32>, vector<3x3xf32> -> vector<3x3xf32>
    %235 = vector.extract_strided_slice %82 {offsets = [0, 16], sizes = [3, 8], strides = [1, 1]} : vector<3x32xf32> to vector<3x8xf32>
    %236 = vector.extract_strided_slice %85 {offsets = [0, 16], sizes = [5, 8], strides = [1, 1]} : vector<5x32xf32> to vector<5x8xf32>
    %cst_84 = arith.constant dense<0.000000e+00> : vector<3x5xf32>
    %237 = tpu.matmul %235, %236, %cst_84 {dimension_numbers = #tpu.dot_dimension_numbers<[1], [1], [0], [0], [0, 0, 1, 0], [], []>} : vector<3x8xf32>, vector<5x8xf32>, vector<3x5xf32> -> vector<3x5xf32>
    %cst_85 = arith.constant 0.000000e+00 : f32
    %238 = vector.broadcast %cst_85 : f32 to vector<3x3xf32>
    %c-2_i32_86 = arith.constant -2 : i32
    %239 = vector.broadcast %c-2_i32_86 : i32 to vector<3x3xi32>
    %240 = arith.cmpi eq, %88, %239 : vector<3x3xi32>
    %241 = vector.extract_strided_slice %237 {offsets = [0, 0], sizes = [3, 1], strides = [1, 1]} : vector<3x5xf32> to vector<3x1xf32>
    %cst_87 = arith.constant 0.000000e+00 : f32
    %242 = vector.shape_cast %241 : vector<3x1xf32> to vector<3x1xf32>
    %243 = vector.broadcast %242 : vector<3x1xf32> to vector<3x3xf32>
    %244 = vector.broadcast %cst_87 : f32 to vector<3x3xf32>
    %245 = arith.select %240, %243, %244 : vector<3x3xi1>, vector<3x3xf32>
    %246 = arith.addf %238, %245 : vector<3x3xf32>
    %c-1_i32_88 = arith.constant -1 : i32
    %247 = vector.broadcast %c-1_i32_88 : i32 to vector<3x3xi32>
    %248 = arith.cmpi eq, %88, %247 : vector<3x3xi32>
    %249 = vector.extract_strided_slice %237 {offsets = [0, 1], sizes = [3, 1], strides = [1, 1]} : vector<3x5xf32> to vector<3x1xf32>
    %cst_89 = arith.constant 0.000000e+00 : f32
    %250 = vector.shape_cast %249 : vector<3x1xf32> to vector<3x1xf32>
    %251 = vector.broadcast %250 : vector<3x1xf32> to vector<3x3xf32>
    %252 = vector.broadcast %cst_89 : f32 to vector<3x3xf32>
    %253 = arith.select %248, %251, %252 : vector<3x3xi1>, vector<3x3xf32>
    %254 = arith.addf %246, %253 : vector<3x3xf32>
    %c0_i32_90 = arith.constant 0 : i32
    %255 = vector.broadcast %c0_i32_90 : i32 to vector<3x3xi32>
    %256 = arith.cmpi eq, %88, %255 : vector<3x3xi32>
    %257 = vector.extract_strided_slice %237 {offsets = [0, 2], sizes = [3, 1], strides = [1, 1]} : vector<3x5xf32> to vector<3x1xf32>
    %cst_91 = arith.constant 0.000000e+00 : f32
    %258 = vector.shape_cast %257 : vector<3x1xf32> to vector<3x1xf32>
    %259 = vector.broadcast %258 : vector<3x1xf32> to vector<3x3xf32>
    %260 = vector.broadcast %cst_91 : f32 to vector<3x3xf32>
    %261 = arith.select %256, %259, %260 : vector<3x3xi1>, vector<3x3xf32>
    %262 = arith.addf %254, %261 : vector<3x3xf32>
    %c1_i32_92 = arith.constant 1 : i32
    %263 = vector.broadcast %c1_i32_92 : i32 to vector<3x3xi32>
    %264 = arith.cmpi eq, %88, %263 : vector<3x3xi32>
    %265 = vector.extract_strided_slice %237 {offsets = [0, 3], sizes = [3, 1], strides = [1, 1]} : vector<3x5xf32> to vector<3x1xf32>
    %cst_93 = arith.constant 0.000000e+00 : f32
    %266 = vector.shape_cast %265 : vector<3x1xf32> to vector<3x1xf32>
    %267 = vector.broadcast %266 : vector<3x1xf32> to vector<3x3xf32>
    %268 = vector.broadcast %cst_93 : f32 to vector<3x3xf32>
    %269 = arith.select %264, %267, %268 : vector<3x3xi1>, vector<3x3xf32>
    %270 = arith.addf %262, %269 : vector<3x3xf32>
    %c2_i32_94 = arith.constant 2 : i32
    %271 = vector.broadcast %c2_i32_94 : i32 to vector<3x3xi32>
    %272 = arith.cmpi eq, %88, %271 : vector<3x3xi32>
    %273 = vector.extract_strided_slice %237 {offsets = [0, 4], sizes = [3, 1], strides = [1, 1]} : vector<3x5xf32> to vector<3x1xf32>
    %cst_95 = arith.constant 0.000000e+00 : f32
    %274 = vector.shape_cast %273 : vector<3x1xf32> to vector<3x1xf32>
    %275 = vector.broadcast %274 : vector<3x1xf32> to vector<3x3xf32>
    %276 = vector.broadcast %cst_95 : f32 to vector<3x3xf32>
    %277 = arith.select %272, %275, %276 : vector<3x3xi1>, vector<3x3xf32>
    %278 = arith.addf %270, %277 : vector<3x3xf32>
    %279 = arith.addf %234, %278 : vector<3x3xf32>
    %cst_96 = arith.constant 0.353553385 : f32
    %280 = vector.broadcast %cst_96 : f32 to vector<3x3xf32>
    %281 = arith.mulf %279, %280 : vector<3x3xf32>
    %cst_97 = arith.constant 5.000000e-01 : f32
    %282 = vector.broadcast %cst_97 : f32 to vector<1x3xf32>
    %283 = arith.cmpf ogt, %87, %282 : vector<1x3xf32>
    %cst_98 = arith.constant -1.000000e+09 : f32
    %284 = vector.shape_cast %283 : vector<1x3xi1> to vector<1x3xi1>
    %285 = vector.broadcast %284 : vector<1x3xi1> to vector<3x3xi1>
    %286 = vector.broadcast %cst_98 : f32 to vector<3x3xf32>
    %287 = arith.select %285, %281, %286 : vector<3x3xi1>, vector<3x3xf32>
    %cst_99 = arith.constant dense<0xFF800000> : vector<3xf32>
    %288 = vector.multi_reduction <maximumf>, %287, %cst_99 [1] : vector<3x3xf32> to vector<3xf32>
    %289 = vector.shape_cast %288 : vector<3xf32> to vector<3x1xf32>
    %290 = vector.broadcast %289 : vector<3x1xf32> to vector<3x3xf32>
    %291 = arith.subf %287, %290 : vector<3x3xf32>
    %292 = math.exp %291 : vector<3x3xf32>
    %cst_100 = arith.constant dense<0.000000e+00> : vector<3xf32>
    %293 = vector.multi_reduction <add>, %292, %cst_100 [1] : vector<3x3xf32> to vector<3xf32>
    %294 = vector.shape_cast %293 : vector<3xf32> to vector<3x1xf32>
    %295 = tpu.reciprocal %294 {approx = true} : vector<3x1xf32> -> vector<3x1xf32>
    %296 = vector.broadcast %295 : vector<3x1xf32> to vector<3x3xf32>
    %297 = arith.mulf %292, %296 : vector<3x3xf32>
    %298 = vector.extract_strided_slice %76 {offsets = [0, 16], sizes = [3, 8], strides = [1, 1]} : vector<3x32xf32> to vector<3x8xf32>
    %cst_101 = arith.constant dense<0.000000e+00> : vector<3x8xf32>
    %299 = tpu.matmul %297, %298, %cst_101 {dimension_numbers = #tpu.dot_dimension_numbers<[1], [0], [0], [1], [0, 0, 1, 1], [], []>} : vector<3x3xf32>, vector<3x8xf32>, vector<3x8xf32> -> vector<3x8xf32>
    %c16 = arith.constant 16 : index
    %c0_102 = arith.constant 0 : index
    %300 = vector.load %arg12[%c16, %c0_102] : memref<32x32xf32, #tpu.memory_space<vmem>>, vector<8x32xf32>
    %cst_103 = arith.constant dense<0.000000e+00> : vector<3x32xf32>
    %301 = tpu.matmul %299, %300, %cst_103 {dimension_numbers = #tpu.dot_dimension_numbers<[1], [0], [0], [1], [0, 0, 1, 1], [], []>} : vector<3x8xf32>, vector<8x32xf32>, vector<3x32xf32> -> vector<3x32xf32>
    %302 = arith.addf %231, %301 : vector<3x32xf32>
    %303 = vector.extract_strided_slice %79 {offsets = [0, 24], sizes = [3, 8], strides = [1, 1]} : vector<3x32xf32> to vector<3x8xf32>
    %304 = vector.extract_strided_slice %75 {offsets = [0, 24], sizes = [3, 8], strides = [1, 1]} : vector<3x32xf32> to vector<3x8xf32>
    %cst_104 = arith.constant dense<0.000000e+00> : vector<3x3xf32>
    %305 = tpu.matmul %303, %304, %cst_104 {dimension_numbers = #tpu.dot_dimension_numbers<[1], [1], [0], [0], [0, 0, 1, 0], [], []>} : vector<3x8xf32>, vector<3x8xf32>, vector<3x3xf32> -> vector<3x3xf32>
    %306 = vector.extract_strided_slice %82 {offsets = [0, 24], sizes = [3, 8], strides = [1, 1]} : vector<3x32xf32> to vector<3x8xf32>
    %307 = vector.extract_strided_slice %85 {offsets = [0, 24], sizes = [5, 8], strides = [1, 1]} : vector<5x32xf32> to vector<5x8xf32>
    %cst_105 = arith.constant dense<0.000000e+00> : vector<3x5xf32>
    %308 = tpu.matmul %306, %307, %cst_105 {dimension_numbers = #tpu.dot_dimension_numbers<[1], [1], [0], [0], [0, 0, 1, 0], [], []>} : vector<3x8xf32>, vector<5x8xf32>, vector<3x5xf32> -> vector<3x5xf32>
    %cst_106 = arith.constant 0.000000e+00 : f32
    %309 = vector.broadcast %cst_106 : f32 to vector<3x3xf32>
    %c-2_i32_107 = arith.constant -2 : i32
    %310 = vector.broadcast %c-2_i32_107 : i32 to vector<3x3xi32>
    %311 = arith.cmpi eq, %88, %310 : vector<3x3xi32>
    %312 = vector.extract_strided_slice %308 {offsets = [0, 0], sizes = [3, 1], strides = [1, 1]} : vector<3x5xf32> to vector<3x1xf32>
    %cst_108 = arith.constant 0.000000e+00 : f32
    %313 = vector.shape_cast %312 : vector<3x1xf32> to vector<3x1xf32>
    %314 = vector.broadcast %313 : vector<3x1xf32> to vector<3x3xf32>
    %315 = vector.broadcast %cst_108 : f32 to vector<3x3xf32>
    %316 = arith.select %311, %314, %315 : vector<3x3xi1>, vector<3x3xf32>
    %317 = arith.addf %309, %316 : vector<3x3xf32>
    %c-1_i32_109 = arith.constant -1 : i32
    %318 = vector.broadcast %c-1_i32_109 : i32 to vector<3x3xi32>
    %319 = arith.cmpi eq, %88, %318 : vector<3x3xi32>
    %320 = vector.extract_strided_slice %308 {offsets = [0, 1], sizes = [3, 1], strides = [1, 1]} : vector<3x5xf32> to vector<3x1xf32>
    %cst_110 = arith.constant 0.000000e+00 : f32
    %321 = vector.shape_cast %320 : vector<3x1xf32> to vector<3x1xf32>
    %322 = vector.broadcast %321 : vector<3x1xf32> to vector<3x3xf32>
    %323 = vector.broadcast %cst_110 : f32 to vector<3x3xf32>
    %324 = arith.select %319, %322, %323 : vector<3x3xi1>, vector<3x3xf32>
    %325 = arith.addf %317, %324 : vector<3x3xf32>
    %c0_i32_111 = arith.constant 0 : i32
    %326 = vector.broadcast %c0_i32_111 : i32 to vector<3x3xi32>
    %327 = arith.cmpi eq, %88, %326 : vector<3x3xi32>
    %328 = vector.extract_strided_slice %308 {offsets = [0, 2], sizes = [3, 1], strides = [1, 1]} : vector<3x5xf32> to vector<3x1xf32>
    %cst_112 = arith.constant 0.000000e+00 : f32
    %329 = vector.shape_cast %328 : vector<3x1xf32> to vector<3x1xf32>
    %330 = vector.broadcast %329 : vector<3x1xf32> to vector<3x3xf32>
    %331 = vector.broadcast %cst_112 : f32 to vector<3x3xf32>
    %332 = arith.select %327, %330, %331 : vector<3x3xi1>, vector<3x3xf32>
    %333 = arith.addf %325, %332 : vector<3x3xf32>
    %c1_i32_113 = arith.constant 1 : i32
    %334 = vector.broadcast %c1_i32_113 : i32 to vector<3x3xi32>
    %335 = arith.cmpi eq, %88, %334 : vector<3x3xi32>
    %336 = vector.extract_strided_slice %308 {offsets = [0, 3], sizes = [3, 1], strides = [1, 1]} : vector<3x5xf32> to vector<3x1xf32>
    %cst_114 = arith.constant 0.000000e+00 : f32
    %337 = vector.shape_cast %336 : vector<3x1xf32> to vector<3x1xf32>
    %338 = vector.broadcast %337 : vector<3x1xf32> to vector<3x3xf32>
    %339 = vector.broadcast %cst_114 : f32 to vector<3x3xf32>
    %340 = arith.select %335, %338, %339 : vector<3x3xi1>, vector<3x3xf32>
    %341 = arith.addf %333, %340 : vector<3x3xf32>
    %c2_i32_115 = arith.constant 2 : i32
    %342 = vector.broadcast %c2_i32_115 : i32 to vector<3x3xi32>
    %343 = arith.cmpi eq, %88, %342 : vector<3x3xi32>
    %344 = vector.extract_strided_slice %308 {offsets = [0, 4], sizes = [3, 1], strides = [1, 1]} : vector<3x5xf32> to vector<3x1xf32>
    %cst_116 = arith.constant 0.000000e+00 : f32
    %345 = vector.shape_cast %344 : vector<3x1xf32> to vector<3x1xf32>
    %346 = vector.broadcast %345 : vector<3x1xf32> to vector<3x3xf32>
    %347 = vector.broadcast %cst_116 : f32 to vector<3x3xf32>
    %348 = arith.select %343, %346, %347 : vector<3x3xi1>, vector<3x3xf32>
    %349 = arith.addf %341, %348 : vector<3x3xf32>
    %350 = arith.addf %305, %349 : vector<3x3xf32>
    %cst_117 = arith.constant 0.353553385 : f32
    %351 = vector.broadcast %cst_117 : f32 to vector<3x3xf32>
    %352 = arith.mulf %350, %351 : vector<3x3xf32>
    %cst_118 = arith.constant 5.000000e-01 : f32
    %353 = vector.broadcast %cst_118 : f32 to vector<1x3xf32>
    %354 = arith.cmpf ogt, %87, %353 : vector<1x3xf32>
    %cst_119 = arith.constant -1.000000e+09 : f32
    %355 = vector.shape_cast %354 : vector<1x3xi1> to vector<1x3xi1>
    %356 = vector.broadcast %355 : vector<1x3xi1> to vector<3x3xi1>
    %357 = vector.broadcast %cst_119 : f32 to vector<3x3xf32>
    %358 = arith.select %356, %352, %357 : vector<3x3xi1>, vector<3x3xf32>
    %cst_120 = arith.constant dense<0xFF800000> : vector<3xf32>
    %359 = vector.multi_reduction <maximumf>, %358, %cst_120 [1] : vector<3x3xf32> to vector<3xf32>
    %360 = vector.shape_cast %359 : vector<3xf32> to vector<3x1xf32>
    %361 = vector.broadcast %360 : vector<3x1xf32> to vector<3x3xf32>
    %362 = arith.subf %358, %361 : vector<3x3xf32>
    %363 = math.exp %362 : vector<3x3xf32>
    %cst_121 = arith.constant dense<0.000000e+00> : vector<3xf32>
    %364 = vector.multi_reduction <add>, %363, %cst_121 [1] : vector<3x3xf32> to vector<3xf32>
    %365 = vector.shape_cast %364 : vector<3xf32> to vector<3x1xf32>
    %366 = tpu.reciprocal %365 {approx = true} : vector<3x1xf32> -> vector<3x1xf32>
    %367 = vector.broadcast %366 : vector<3x1xf32> to vector<3x3xf32>
    %368 = arith.mulf %363, %367 : vector<3x3xf32>
    %369 = vector.extract_strided_slice %76 {offsets = [0, 24], sizes = [3, 8], strides = [1, 1]} : vector<3x32xf32> to vector<3x8xf32>
    %cst_122 = arith.constant dense<0.000000e+00> : vector<3x8xf32>
    %370 = tpu.matmul %368, %369, %cst_122 {dimension_numbers = #tpu.dot_dimension_numbers<[1], [0], [0], [1], [0, 0, 1, 1], [], []>} : vector<3x3xf32>, vector<3x8xf32>, vector<3x8xf32> -> vector<3x8xf32>
    %c24 = arith.constant 24 : index
    %c0_123 = arith.constant 0 : index
    %371 = vector.load %arg12[%c24, %c0_123] : memref<32x32xf32, #tpu.memory_space<vmem>>, vector<8x32xf32>
    %cst_124 = arith.constant dense<0.000000e+00> : vector<3x32xf32>
    %372 = tpu.matmul %370, %371, %cst_124 {dimension_numbers = #tpu.dot_dimension_numbers<[1], [0], [0], [1], [0, 0, 1, 1], [], []>} : vector<3x8xf32>, vector<8x32xf32>, vector<3x32xf32> -> vector<3x32xf32>
    %373 = arith.addf %302, %372 : vector<3x32xf32>
    %374 = arith.addf %46, %373 : vector<3x32xf32>
    %c5 = arith.constant 5 : index
    %c0_125 = arith.constant 0 : index
    %375 = vector.load %arg4[%c5, %c0_125] : memref<21x32xf32, #tpu.memory_space<vmem>>, vector<1x32xf32>
    %376 = vector.broadcast %375 : vector<1x32xf32> to vector<3x32xf32>
    %377 = arith.addf %374, %376 : vector<3x32xf32>
    %c8_126 = arith.constant 8 : index
    %c0_127 = arith.constant 0 : index
    %378 = vector.load %arg4[%c8_126, %c0_127] : memref<21x32xf32, #tpu.memory_space<vmem>>, vector<1x32xf32>
    %c9 = arith.constant 9 : index
    %c0_128 = arith.constant 0 : index
    %379 = vector.load %arg4[%c9, %c0_128] : memref<21x32xf32, #tpu.memory_space<vmem>>, vector<1x32xf32>
    %cst_129 = arith.constant dense<0.000000e+00> : vector<3xf32>
    %380 = vector.multi_reduction <add>, %377, %cst_129 [1] : vector<3x32xf32> to vector<3xf32>
    %381 = vector.shape_cast %380 : vector<3xf32> to vector<3x1xf32>
    %cst_130 = arith.constant 3.200000e+01 : f32
    %382 = vector.broadcast %cst_130 : f32 to vector<3x1xf32>
    %383 = arith.divf %381, %382 : vector<3x1xf32>
    %384 = vector.broadcast %383 : vector<3x1xf32> to vector<3x32xf32>
    %385 = arith.subf %377, %384 : vector<3x32xf32>
    %386 = arith.mulf %385, %385 : vector<3x32xf32>
    %cst_131 = arith.constant dense<0.000000e+00> : vector<3xf32>
    %387 = vector.multi_reduction <add>, %386, %cst_131 [1] : vector<3x32xf32> to vector<3xf32>
    %388 = vector.shape_cast %387 : vector<3xf32> to vector<3x1xf32>
    %cst_132 = arith.constant 3.200000e+01 : f32
    %389 = vector.broadcast %cst_132 : f32 to vector<3x1xf32>
    %390 = arith.divf %388, %389 : vector<3x1xf32>
    %cst_133 = arith.constant 9.99999974E-6 : f32
    %391 = vector.broadcast %cst_133 : f32 to vector<3x1xf32>
    %392 = arith.addf %390, %391 : vector<3x1xf32>
    %393 = math.rsqrt %392 : vector<3x1xf32>
    %394 = vector.broadcast %393 : vector<3x1xf32> to vector<3x32xf32>
    %395 = arith.mulf %385, %394 : vector<3x32xf32>
    %396 = vector.broadcast %378 : vector<1x32xf32> to vector<3x32xf32>
    %397 = arith.mulf %395, %396 : vector<3x32xf32>
    %398 = vector.broadcast %379 : vector<1x32xf32> to vector<3x32xf32>
    %399 = arith.addf %397, %398 : vector<3x32xf32>
    %c0_134 = arith.constant 0 : index
    %c0_135 = arith.constant 0 : index
    %400 = vector.load %arg13[%c0_134, %c0_135] : memref<32x64xf32, #tpu.memory_space<vmem>>, vector<32x64xf32>
    %cst_136 = arith.constant dense<0.000000e+00> : vector<3x64xf32>
    %401 = tpu.matmul %399, %400, %cst_136 {dimension_numbers = #tpu.dot_dimension_numbers<[1], [0], [0], [1], [0, 0, 1, 1], [], []>} : vector<3x32xf32>, vector<32x64xf32>, vector<3x64xf32> -> vector<3x64xf32>
    %c0_137 = arith.constant 0 : index
    %c0_138 = arith.constant 0 : index
    %402 = vector.load %arg7[%c0_137, %c0_138] : memref<1x64xf32, #tpu.memory_space<vmem>>, vector<1x64xf32>
    %403 = vector.broadcast %402 : vector<1x64xf32> to vector<3x64xf32>
    %404 = arith.addf %401, %403 : vector<3x64xf32>
    %405 = vector.extract_strided_slice %404 {offsets = [0, 0], sizes = [3, 32], strides = [1, 1]} : vector<3x64xf32> to vector<3x32xf32>
    %406 = vector.extract_strided_slice %404 {offsets = [0, 32], sizes = [3, 32], strides = [1, 1]} : vector<3x64xf32> to vector<3x32xf32>
    %407 = arith.negf %406 : vector<3x32xf32>
    %408 = math.exp %407 : vector<3x32xf32>
    %cst_139 = arith.constant 1.000000e+00 : f32
    %409 = vector.broadcast %cst_139 : f32 to vector<3x32xf32>
    %410 = arith.addf %409, %408 : vector<3x32xf32>
    %411 = arith.divf %409, %410 : vector<3x32xf32>
    %412 = arith.mulf %405, %411 : vector<3x32xf32>
    %cst_140 = arith.constant 0.000000e+00 : f32
    %413 = vector.broadcast %cst_140 : f32 to vector<3x32xf32>
    %c-1_i32_141 = arith.constant -1 : i32
    %414 = vector.broadcast %c-1_i32_141 : i32 to vector<3x3xi32>
    %415 = arith.addi %2, %414 : vector<3x3xi32>
    %416 = arith.cmpi eq, %3, %415 : vector<3x3xi32>
    %417 = arith.extui %416 : vector<3x3xi1> to vector<3x3xi32>
    %418 = arith.sitofp %417 : vector<3x3xi32> to vector<3x3xf32>
    %cst_142 = arith.constant dense<0.000000e+00> : vector<3x32xf32>
    %419 = tpu.matmul %418, %412, %cst_142 {dimension_numbers = #tpu.dot_dimension_numbers<[1], [0], [0], [1], [0, 0, 1, 1], [], []>} : vector<3x3xf32>, vector<3x32xf32>, vector<3x32xf32> -> vector<3x32xf32>
    %c0_143 = arith.constant 0 : index
    %c0_144 = arith.constant 0 : index
    %420 = vector.load %arg14[%c0_143, %c0_144] : memref<3x32xf32, #tpu.memory_space<vmem>>, vector<1x32xf32>
    %421 = vector.broadcast %420 : vector<1x32xf32> to vector<3x32xf32>
    %422 = arith.mulf %419, %421 : vector<3x32xf32>
    %423 = arith.addf %413, %422 : vector<3x32xf32>
    %c0_i32_145 = arith.constant 0 : i32
    %424 = vector.broadcast %c0_i32_145 : i32 to vector<3x3xi32>
    %425 = arith.addi %2, %424 : vector<3x3xi32>
    %426 = arith.cmpi eq, %3, %425 : vector<3x3xi32>
    %427 = arith.extui %426 : vector<3x3xi1> to vector<3x3xi32>
    %428 = arith.sitofp %427 : vector<3x3xi32> to vector<3x3xf32>
    %cst_146 = arith.constant dense<0.000000e+00> : vector<3x32xf32>
    %429 = tpu.matmul %428, %412, %cst_146 {dimension_numbers = #tpu.dot_dimension_numbers<[1], [0], [0], [1], [0, 0, 1, 1], [], []>} : vector<3x3xf32>, vector<3x32xf32>, vector<3x32xf32> -> vector<3x32xf32>
    %c1_147 = arith.constant 1 : index
    %c0_148 = arith.constant 0 : index
    %430 = vector.load %arg14[%c1_147, %c0_148] : memref<3x32xf32, #tpu.memory_space<vmem>>, vector<1x32xf32>
    %431 = vector.broadcast %430 : vector<1x32xf32> to vector<3x32xf32>
    %432 = arith.mulf %429, %431 : vector<3x32xf32>
    %433 = arith.addf %423, %432 : vector<3x32xf32>
    %c1_i32_149 = arith.constant 1 : i32
    %434 = vector.broadcast %c1_i32_149 : i32 to vector<3x3xi32>
    %435 = arith.addi %2, %434 : vector<3x3xi32>
    %436 = arith.cmpi eq, %3, %435 : vector<3x3xi32>
    %437 = arith.extui %436 : vector<3x3xi1> to vector<3x3xi32>
    %438 = arith.sitofp %437 : vector<3x3xi32> to vector<3x3xf32>
    %cst_150 = arith.constant dense<0.000000e+00> : vector<3x32xf32>
    %439 = tpu.matmul %438, %412, %cst_150 {dimension_numbers = #tpu.dot_dimension_numbers<[1], [0], [0], [1], [0, 0, 1, 1], [], []>} : vector<3x3xf32>, vector<3x32xf32>, vector<3x32xf32> -> vector<3x32xf32>
    %c2_151 = arith.constant 2 : index
    %c0_152 = arith.constant 0 : index
    %440 = vector.load %arg14[%c2_151, %c0_152] : memref<3x32xf32, #tpu.memory_space<vmem>>, vector<1x32xf32>
    %441 = vector.broadcast %440 : vector<1x32xf32> to vector<3x32xf32>
    %442 = arith.mulf %439, %441 : vector<3x32xf32>
    %443 = arith.addf %433, %442 : vector<3x32xf32>
    %c10 = arith.constant 10 : index
    %c0_153 = arith.constant 0 : index
    %444 = vector.load %arg4[%c10, %c0_153] : memref<21x32xf32, #tpu.memory_space<vmem>>, vector<1x32xf32>
    %445 = vector.broadcast %444 : vector<1x32xf32> to vector<3x32xf32>
    %446 = arith.addf %443, %445 : vector<3x32xf32>
    %c11 = arith.constant 11 : index
    %c0_154 = arith.constant 0 : index
    %447 = vector.load %arg4[%c11, %c0_154] : memref<21x32xf32, #tpu.memory_space<vmem>>, vector<1x32xf32>
    %c14 = arith.constant 14 : index
    %c0_155 = arith.constant 0 : index
    %448 = vector.load %arg4[%c14, %c0_155] : memref<21x32xf32, #tpu.memory_space<vmem>>, vector<1x32xf32>
    %cst_156 = arith.constant 9.99999974E-6 : f32
    %449 = vector.broadcast %cst_156 : f32 to vector<1x32xf32>
    %450 = arith.addf %448, %449 : vector<1x32xf32>
    %451 = math.rsqrt %450 : vector<1x32xf32>
    %452 = arith.mulf %447, %451 : vector<1x32xf32>
    %c13 = arith.constant 13 : index
    %c0_157 = arith.constant 0 : index
    %453 = vector.load %arg4[%c13, %c0_157] : memref<21x32xf32, #tpu.memory_space<vmem>>, vector<1x32xf32>
    %454 = vector.broadcast %453 : vector<1x32xf32> to vector<3x32xf32>
    %455 = arith.subf %446, %454 : vector<3x32xf32>
    %456 = vector.broadcast %452 : vector<1x32xf32> to vector<3x32xf32>
    %457 = arith.mulf %455, %456 : vector<3x32xf32>
    %c12 = arith.constant 12 : index
    %c0_158 = arith.constant 0 : index
    %458 = vector.load %arg4[%c12, %c0_158] : memref<21x32xf32, #tpu.memory_space<vmem>>, vector<1x32xf32>
    %459 = vector.broadcast %458 : vector<1x32xf32> to vector<3x32xf32>
    %460 = arith.addf %457, %459 : vector<3x32xf32>
    %461 = arith.negf %460 : vector<3x32xf32>
    %462 = math.exp %461 : vector<3x32xf32>
    %cst_159 = arith.constant 1.000000e+00 : f32
    %463 = vector.broadcast %cst_159 : f32 to vector<3x32xf32>
    %464 = arith.addf %463, %462 : vector<3x32xf32>
    %465 = arith.divf %463, %464 : vector<3x32xf32>
    %466 = arith.mulf %460, %465 : vector<3x32xf32>
    %c0_160 = arith.constant 0 : index
    %c0_161 = arith.constant 0 : index
    %467 = vector.load %arg15[%c0_160, %c0_161] : memref<32x32xf32, #tpu.memory_space<vmem>>, vector<32x32xf32>
    %cst_162 = arith.constant dense<0.000000e+00> : vector<3x32xf32>
    %468 = tpu.matmul %466, %467, %cst_162 {dimension_numbers = #tpu.dot_dimension_numbers<[1], [0], [0], [1], [0, 0, 1, 1], [], []>} : vector<3x32xf32>, vector<32x32xf32>, vector<3x32xf32> -> vector<3x32xf32>
    %c15 = arith.constant 15 : index
    %c0_163 = arith.constant 0 : index
    %469 = vector.load %arg4[%c15, %c0_163] : memref<21x32xf32, #tpu.memory_space<vmem>>, vector<1x32xf32>
    %470 = vector.broadcast %469 : vector<1x32xf32> to vector<3x32xf32>
    %471 = arith.addf %468, %470 : vector<3x32xf32>
    %472 = arith.addf %377, %471 : vector<3x32xf32>
    %c16_164 = arith.constant 16 : index
    %c0_165 = arith.constant 0 : index
    %473 = vector.load %arg4[%c16_164, %c0_165] : memref<21x32xf32, #tpu.memory_space<vmem>>, vector<1x32xf32>
    %c17 = arith.constant 17 : index
    %c0_166 = arith.constant 0 : index
    %474 = vector.load %arg4[%c17, %c0_166] : memref<21x32xf32, #tpu.memory_space<vmem>>, vector<1x32xf32>
    %cst_167 = arith.constant dense<0.000000e+00> : vector<3xf32>
    %475 = vector.multi_reduction <add>, %472, %cst_167 [1] : vector<3x32xf32> to vector<3xf32>
    %476 = vector.shape_cast %475 : vector<3xf32> to vector<3x1xf32>
    %cst_168 = arith.constant 3.200000e+01 : f32
    %477 = vector.broadcast %cst_168 : f32 to vector<3x1xf32>
    %478 = arith.divf %476, %477 : vector<3x1xf32>
    %479 = vector.broadcast %478 : vector<3x1xf32> to vector<3x32xf32>
    %480 = arith.subf %472, %479 : vector<3x32xf32>
    %481 = arith.mulf %480, %480 : vector<3x32xf32>
    %cst_169 = arith.constant dense<0.000000e+00> : vector<3xf32>
    %482 = vector.multi_reduction <add>, %481, %cst_169 [1] : vector<3x32xf32> to vector<3xf32>
    %483 = vector.shape_cast %482 : vector<3xf32> to vector<3x1xf32>
    %cst_170 = arith.constant 3.200000e+01 : f32
    %484 = vector.broadcast %cst_170 : f32 to vector<3x1xf32>
    %485 = arith.divf %483, %484 : vector<3x1xf32>
    %cst_171 = arith.constant 9.99999974E-6 : f32
    %486 = vector.broadcast %cst_171 : f32 to vector<3x1xf32>
    %487 = arith.addf %485, %486 : vector<3x1xf32>
    %488 = math.rsqrt %487 : vector<3x1xf32>
    %489 = vector.broadcast %488 : vector<3x1xf32> to vector<3x32xf32>
    %490 = arith.mulf %480, %489 : vector<3x32xf32>
    %491 = vector.broadcast %473 : vector<1x32xf32> to vector<3x32xf32>
    %492 = arith.mulf %490, %491 : vector<3x32xf32>
    %493 = vector.broadcast %474 : vector<1x32xf32> to vector<3x32xf32>
    %494 = arith.addf %492, %493 : vector<3x32xf32>
    %c1_172 = arith.constant 1 : index
    %c0_173 = arith.constant 0 : index
    %c0_174 = arith.constant 0 : index
    %495 = vector.load %arg8[%c1_172, %c0_173, %c0_174] : memref<2x32x128xf32, #tpu.memory_space<vmem>>, vector<1x32x128xf32>
    %496 = vector.shape_cast %495 : vector<1x32x128xf32> to vector<32x128xf32>
    %cst_175 = arith.constant dense<0.000000e+00> : vector<3x128xf32>
    %497 = tpu.matmul %494, %496, %cst_175 {dimension_numbers = #tpu.dot_dimension_numbers<[1], [0], [0], [1], [0, 0, 1, 1], [], []>} : vector<3x32xf32>, vector<32x128xf32>, vector<3x128xf32> -> vector<3x128xf32>
    %c1_176 = arith.constant 1 : index
    %c0_177 = arith.constant 0 : index
    %498 = vector.load %arg5[%c1_176, %c0_177] : memref<2x128xf32, #tpu.memory_space<vmem>>, vector<1x128xf32>
    %499 = vector.broadcast %498 : vector<1x128xf32> to vector<3x128xf32>
    %500 = arith.addf %497, %499 : vector<3x128xf32>
    %501 = arith.negf %500 : vector<3x128xf32>
    %502 = math.exp %501 : vector<3x128xf32>
    %cst_178 = arith.constant 1.000000e+00 : f32
    %503 = vector.broadcast %cst_178 : f32 to vector<3x128xf32>
    %504 = arith.addf %503, %502 : vector<3x128xf32>
    %505 = arith.divf %503, %504 : vector<3x128xf32>
    %506 = arith.mulf %500, %505 : vector<3x128xf32>
    %c1_179 = arith.constant 1 : index
    %c0_180 = arith.constant 0 : index
    %c0_181 = arith.constant 0 : index
    %507 = vector.load %arg9[%c1_179, %c0_180, %c0_181] : memref<2x128x32xf32, #tpu.memory_space<vmem>>, vector<1x128x32xf32>
    %508 = vector.shape_cast %507 : vector<1x128x32xf32> to vector<128x32xf32>
    %cst_182 = arith.constant dense<0.000000e+00> : vector<3x32xf32>
    %509 = tpu.matmul %506, %508, %cst_182 {dimension_numbers = #tpu.dot_dimension_numbers<[1], [0], [0], [1], [0, 0, 1, 1], [], []>} : vector<3x128xf32>, vector<128x32xf32>, vector<3x32xf32> -> vector<3x32xf32>
    %c18 = arith.constant 18 : index
    %c0_183 = arith.constant 0 : index
    %510 = vector.load %arg4[%c18, %c0_183] : memref<21x32xf32, #tpu.memory_space<vmem>>, vector<1x32xf32>
    %511 = vector.broadcast %510 : vector<1x32xf32> to vector<3x32xf32>
    %512 = arith.addf %509, %511 : vector<3x32xf32>
    %cst_184 = arith.constant 5.000000e-01 : f32
    %513 = vector.broadcast %cst_184 : f32 to vector<3x32xf32>
    %514 = arith.mulf %513, %512 : vector<3x32xf32>
    %515 = arith.addf %472, %514 : vector<3x32xf32>
    %c19 = arith.constant 19 : index
    %c0_185 = arith.constant 0 : index
    %516 = vector.load %arg4[%c19, %c0_185] : memref<21x32xf32, #tpu.memory_space<vmem>>, vector<1x32xf32>
    %c20 = arith.constant 20 : index
    %c0_186 = arith.constant 0 : index
    %517 = vector.load %arg4[%c20, %c0_186] : memref<21x32xf32, #tpu.memory_space<vmem>>, vector<1x32xf32>
    %cst_187 = arith.constant dense<0.000000e+00> : vector<3xf32>
    %518 = vector.multi_reduction <add>, %515, %cst_187 [1] : vector<3x32xf32> to vector<3xf32>
    %519 = vector.shape_cast %518 : vector<3xf32> to vector<3x1xf32>
    %cst_188 = arith.constant 3.200000e+01 : f32
    %520 = vector.broadcast %cst_188 : f32 to vector<3x1xf32>
    %521 = arith.divf %519, %520 : vector<3x1xf32>
    %522 = vector.broadcast %521 : vector<3x1xf32> to vector<3x32xf32>
    %523 = arith.subf %515, %522 : vector<3x32xf32>
    %524 = arith.mulf %523, %523 : vector<3x32xf32>
    %cst_189 = arith.constant dense<0.000000e+00> : vector<3xf32>
    %525 = vector.multi_reduction <add>, %524, %cst_189 [1] : vector<3x32xf32> to vector<3xf32>
    %526 = vector.shape_cast %525 : vector<3xf32> to vector<3x1xf32>
    %cst_190 = arith.constant 3.200000e+01 : f32
    %527 = vector.broadcast %cst_190 : f32 to vector<3x1xf32>
    %528 = arith.divf %526, %527 : vector<3x1xf32>
    %cst_191 = arith.constant 9.99999974E-6 : f32
    %529 = vector.broadcast %cst_191 : f32 to vector<3x1xf32>
    %530 = arith.addf %528, %529 : vector<3x1xf32>
    %531 = math.rsqrt %530 : vector<3x1xf32>
    %532 = vector.broadcast %531 : vector<3x1xf32> to vector<3x32xf32>
    %533 = arith.mulf %523, %532 : vector<3x32xf32>
    %534 = vector.broadcast %516 : vector<1x32xf32> to vector<3x32xf32>
    %535 = arith.mulf %533, %534 : vector<3x32xf32>
    %536 = vector.broadcast %517 : vector<1x32xf32> to vector<3x32xf32>
    %537 = arith.addf %535, %536 : vector<3x32xf32>
    %c0_192 = arith.constant 0 : index
    %c0_193 = arith.constant 0 : index
    %c0_194 = arith.constant 0 : index
    %538 = vector.load %arg16[%c0_192, %c0_193, %c0_194] : memref<1x3x32xf32, #tpu.memory_space<vmem>>, vector<1x3x32xf32>
    %539 = vector.shape_cast %538 : vector<1x3x32xf32> to vector<3x32xf32>
    %540 = vector.shape_cast %537 : vector<3x32xf32> to vector<1x3x32xf32>
    tpu.vector_store %arg16[%c0_192, %c0_193, %c0_194], %540 {strides = array<i32>} : memref<1x3x32xf32, #tpu.memory_space<vmem>>, vector<1x3x32xf32>,
    return
  }
  func.func @transform_0(%arg0: i32) -> (i32, i32, i32) {
    %c0_i32 = arith.constant 0 : i32
    %c0_i32_0 = arith.constant 0 : i32
    %c0_i32_1 = arith.constant 0 : i32
    return %arg0, %c0_i32, %c0_i32_0 : i32, i32, i32
  }
  func.func @transform_1(%arg0: i32) -> (i32, i32, i32) {
    %c0_i32 = arith.constant 0 : i32
    %c0_i32_0 = arith.constant 0 : i32
    %c0_i32_1 = arith.constant 0 : i32
    return %arg0, %c0_i32, %c0_i32_0 : i32, i32, i32
  }
  func.func @transform_2(%arg0: i32) -> (i32, i32) {
    %c0_i32 = arith.constant 0 : i32
    %c0_i32_0 = arith.constant 0 : i32
    %c0_i32_1 = arith.constant 0 : i32
    return %c0_i32, %c0_i32_0 : i32, i32
  }
  func.func @transform_3(%arg0: i32) -> (i32, i32) {
    %c0_i32 = arith.constant 0 : i32
    %c0_i32_0 = arith.constant 0 : i32
    %c0_i32_1 = arith.constant 0 : i32
    return %c0_i32, %c0_i32_0 : i32, i32
  }
  func.func @transform_4(%arg0: i32) -> (i32, i32) {
    %c0_i32 = arith.constant 0 : i32
    %c0_i32_0 = arith.constant 0 : i32
    %c0_i32_1 = arith.constant 0 : i32
    return %c0_i32, %c0_i32_0 : i32, i32
  }
  func.func @transform_5(%arg0: i32) -> (i32, i32) {
    %c0_i32 = arith.constant 0 : i32
    %c0_i32_0 = arith.constant 0 : i32
    %c0_i32_1 = arith.constant 0 : i32
    return %c0_i32, %c0_i32_0 : i32, i32
  }
  func.func @transform_6(%arg0: i32) -> (i32, i32) {
    %c0_i32 = arith.constant 0 : i32
    %c0_i32_0 = arith.constant 0 : i32
    %c0_i32_1 = arith.constant 0 : i32
    return %c0_i32, %c0_i32_0 : i32, i32
  }
  func.func @transform_7(%arg0: i32) -> (i32, i32, i32) {
    %c0_i32 = arith.constant 0 : i32
    %c0_i32_0 = arith.constant 0 : i32
    %c0_i32_1 = arith.constant 0 : i32
    %c0_i32_2 = arith.constant 0 : i32
    return %c0_i32, %c0_i32_0, %c0_i32_1 : i32, i32, i32
  }
  func.func @transform_8(%arg0: i32) -> (i32, i32, i32) {
    %c0_i32 = arith.constant 0 : i32
    %c0_i32_0 = arith.constant 0 : i32
    %c0_i32_1 = arith.constant 0 : i32
    %c0_i32_2 = arith.constant 0 : i32
    return %c0_i32, %c0_i32_0, %c0_i32_1 : i32, i32, i32
  }
  func.func @transform_9(%arg0: i32) -> (i32, i32) {
    %c0_i32 = arith.constant 0 : i32
    %c0_i32_0 = arith.constant 0 : i32
    %c0_i32_1 = arith.constant 0 : i32
    return %c0_i32, %c0_i32_0 : i32, i32
  }
  func.func @transform_10(%arg0: i32) -> (i32, i32) {
    %c0_i32 = arith.constant 0 : i32
    %c0_i32_0 = arith.constant 0 : i32
    %c0_i32_1 = arith.constant 0 : i32
    return %c0_i32, %c0_i32_0 : i32, i32
  }
  func.func @transform_11(%arg0: i32) -> (i32, i32) {
    %c0_i32 = arith.constant 0 : i32
    %c0_i32_0 = arith.constant 0 : i32
    %c0_i32_1 = arith.constant 0 : i32
    return %c0_i32, %c0_i32_0 : i32, i32
  }
  func.func @transform_12(%arg0: i32) -> (i32, i32) {
    %c0_i32 = arith.constant 0 : i32
    %c0_i32_0 = arith.constant 0 : i32
    %c0_i32_1 = arith.constant 0 : i32
    return %c0_i32, %c0_i32_0 : i32, i32
  }
  func.func @transform_13(%arg0: i32) -> (i32, i32) {
    %c0_i32 = arith.constant 0 : i32
    %c0_i32_0 = arith.constant 0 : i32
    %c0_i32_1 = arith.constant 0 : i32
    return %c0_i32, %c0_i32_0 : i32, i32
  }
  func.func @transform_14(%arg0: i32) -> (i32, i32) {
    %c0_i32 = arith.constant 0 : i32
    %c0_i32_0 = arith.constant 0 : i32
    %c0_i32_1 = arith.constant 0 : i32
    return %c0_i32, %c0_i32_0 : i32, i32
  }
  func.func @transform_15(%arg0: i32) -> (i32, i32, i32) {
    %c0_i32 = arith.constant 0 : i32
    %c0_i32_0 = arith.constant 0 : i32
    %c0_i32_1 = arith.constant 0 : i32
    return %arg0, %c0_i32, %c0_i32_0 : i32, i32, i32
  }
}

</mosaic_0001>

<bundles_post_ra>
// kernel: conformer_forward.4
= control target key start
LH: loop header
LB: loop body
LE: loop exit
PB: predicated region body
PF: predicated region fallthrough
CT: control target
= control target key end

     0   :  { %s862_s12 = smov 0   ;;  %s864_s13 = smov 0   ;;  %s995_s0 = inlined_call_operand.vmem [shape: f32[98,9], index: 0, kind: input, shape index: {}]   ;;  %s996_s1 = inlined_call_operand.vmem [shape: f32[9,32], index: 1, kind: input, shape index: {}]   ;;  %s997_s2 = inlined_call_operand.vmem [shape: f32[1,32], index: 2, kind: input, shape index: {}]   ;;  %s998_s3 = inlined_call_operand.vmem [shape: f32[98,32], index: 3, kind: output, shape index: {}]  }
   0x1   :  { %s866_s14 = smov 0  }
   0x2 LB: > { %s875_s15 = sadd.s32 4294967295, %s806_s14   ;;  %s877_s16 = sadd.s32 1, %s806_s14   ;;  %s806_s14 = sphi %s866_s14, %s1005_s14   ;;  %s802_s13 = sphi %s864_s13, %s1004_s13   ;;  %s798_s12 = sphi %s862_s12, %s1003_s12  }
   0x3   : > { %s85_s17 = ssub.s32 %s806_s14, %s877_s16  ;;  %s88_s18 = sadd.s32 1, %s802_s13 }
   0x4   : > { %p86_p0 = scmp.eq.s32.totalorder %s85_s17, 0  ;;  %p98_p1 = scmp.ne.s32.totalorder %s802_s13, %s798_s12 }
   0x5   : > { %p99_p2 = scmp.eq.s32.totalorder %s875_s15, 1  ;;  %p594_p3 = scmp.ge.s32.totalorder %s806_s14, 1 }
   0x6   : > { %s885_s19 = scalar_select %p86_p0, %s802_s13, %s88_s18  }
   0x7   : > { %p887_p4 = por %p99_p2, %p98_p1  ;;  %p146_p5 = scmp.lt.s32.totalorder %s806_s14, 3 }
   0x9   : > { %p147_p6 = pnand %p594_p3, %p146_p5 }
   0xa   : > { %s898_s25 = smul.u32 (!%p147_p6), 7, %s875_s15  ;;  %s170_s4 = sand.u32 (!%p147_p6), 1, %s798_s12  }
   0xb   : > { %150 = sbr.rel (%p147_p6) target bundleno = 285 (0x11d), region = 32 }
   0xc   : > { %p178_p7 = scmp.lt.s32.totalorder (!%p147_p6), %s898_s25, 12  ;;  %s656_s5 = smul.u32 (!%p147_p6), 56, %s170_s4 }
   0xe   : > { %s923_s8 = scalar_lea.vmem (!%p147_p6), [#allocation2], %s656_s5  }
  0x10   : > { %v200_v0 = vld [vmem:[%s996_s1 + $0x8] sm:$0x1]  ;;  %vm230_vm0 = vcmask 1040384   ;;  %v840_v1 = vmov 0.0   ;;  %v199_v2 = vld [vmem:[%s996_s1] sm:$0xff]  ;;  %vm841_vm1 = vmmov 0  }
  0x11   : > { %627 = vmatprep.subr.mxu0 %v840_v1  ;;  %652 = vmatprep.subr.mxu1 %v840_v1  ;;  %s179_s26 = scalar_select %p178_p7, %s898_s25, 12  ;;  %vm208_vm2 = vcmask 72704   ;;  %v596_v10 = vld [vmem:[%s997_s2] ss:$0 sm:$0xff]  ;;  %vm341_vm3 = vcmask 261120  }
  0x12   : > { %628 = vmatpush3.msk.msra.mxu0 %vm230_vm0, %v200_v0  ;;  %654 = vmatpush3.msk.msra.mxu1 %vm230_vm0, %v200_v0  ;;  %s357_s9 = ssub.s32 (%p887_p4), 13, %s898_s25  ;;  %s617_s10 = smul.u32 (%p887_p4), 56, %s875_s15 }
  0x13   : > { %629 = vmatprep.subr.mxu0 %v840_v1  ;;  %631 = vmatprep.mubr.msk.f32.mxu0 %vm841_vm1, %v840_v1  ;;  %s595_s27 = sshll.u32 %s179_s26, 3  ;;  %p358_p8 = scmp.lt.s32.totalorder (%p887_p4), %s357_s9, 7 }
  0x14   : > { %630 = vmatpush3.msra.mxu0 %v199_v2  ;;  %653 = vmatprep.subr.mxu1 %v840_v1  ;;  %s181_s30 = scalar_lea.vmem %s995_s0, %s595_s27  ;;  %s946_s14 = scalar_lea.vmem (%p887_p4), %s998_s3, %s617_s10  }
  0x15   : > { %655 = vmatpush3.msra.mxu1 %v199_v2  ;;  %643 = vmatprep.mubr.msk.f32.mxu1 %vm841_vm1, %v840_v1  ;;  %v192_v3 = vld [vmem:[%s181_s30] sm:$0xff]  ;;  %v193_v5 = vld [vmem:[%s181_s30 + $0x8] sm:$0xff]  ;;  %v194_v7 = vld [vmem:[%s181_s30 + $0x10] sm:$0xff] }
  0x16   : > { %v196_v4 = vld [vmem:[%s181_s30 + $0x20] sm:$0xff]  ;;  %632 = vmatmul.mubr.msk.f32.vlgmr.msra.gmra.mxu0 %vm208_vm2, %v192_v3  ;;  %v197_v6 = vld [vmem:[%s181_s30 + $0x28] sm:$0xff]  ;;  %v198_v8 = vld [vmem:[%s181_s30 + $0x30] sm:$0xff] }
  0x17   : > { %644 = vmatmul.mubr.msk.f32.vlgmr.msra.gmra.mxu1 %vm208_vm2, %v196_v4  ;;  %634 = vmatprep.mubr.msk.f32.mxu0 %vm841_vm1, %v840_v1  ;;  %v195_v9 = vld [vmem:[%s181_s30 + $0x18] sm:$0xff] }
  0x18   : > { %646 = vmatprep.mubr.msk.f32.mxu1 %vm841_vm1, %v840_v1 }
  0x1a   : > { %635 = vmatmul.mubr.msk.f32.gmra.mxu0 %vm208_vm2, %v193_v5 }
  0x1b   : > { %647 = vmatmul.mubr.msk.f32.gmra.mxu1 %vm208_vm2, %v197_v6  ;;  %637 = vmatprep.mubr.msk.f32.mxu0 %vm841_vm1, %v840_v1 }
  0x1c   : > { %649 = vmatprep.mubr.msk.f32.mxu1 %vm841_vm1, %v840_v1 }
  0x1e   : > { %638 = vmatmul.mubr.msk.f32.gmra.mxu0 %vm208_vm2, %v194_v7 }
  0x1f   : > { %650 = vmatmul.mubr.msk.f32.gmra.mxu1 %vm208_vm2, %v198_v8  ;;  %640 = vmatprep.mubr.msk.f32.mxu0 %vm841_vm1, %v840_v1 }
  0x22   : > { %641 = vmatmul.mubr.msk.f32.gmra.mxu0 %vm208_vm2, %v195_v9 }
  0xd6   : > { %v300_v11 = vpop.f32.mrf.mxu0 }
  0xd7   : > { %v320_v12 = vpop.f32.mrf.mxu1  ;;  %v301_v13 = vadd.f32 %v596_v10, %v300_v11 }
  0xd8   : > { %v321_v14 = vadd.f32 %v596_v10, %v320_v12  ;;  %v633_v15 = vpop.f32.mrf.mxu0 }
  0xd9   : > { %v645_v16 = vpop.f32.mrf.mxu1  ;;  %v334_v17 = vmax.f32 %v301_v13, 0.0 }
  0xda   : > { %v338_v18 = vmax.f32 %v321_v14, 0.0  ;;  %v305_v19 = vpop.f32.mrf.mxu0 }
  0xdb   : > { %v325_v20 = vpop.f32.mrf.mxu1  ;;  %342 = vst.msk [vmem:[%s923_s8] sm:$0xff] %vm341_vm3, %v334_v17  ;;  %v306_v21 = vadd.f32 %v596_v10, %v305_v19 }
  0xdc   : > { %346 = vst.msk [vmem:[%s923_s8 + $0x20] sm:$0xff] %vm341_vm3, %v338_v18  ;;  %v326_v22 = vadd.f32 %v596_v10, %v325_v20  ;;  %v636_v23 = vpop.f32.mrf.mxu0 }
  0xdd   : > { %v648_v24 = vpop.f32.mrf.mxu1  ;;  %v335_v25 = vmax.f32 %v306_v21, 0.0 }
  0xde   : > { %v339_v26 = vmax.f32 %v326_v22, 0.0  ;;  %v310_v27 = vpop.f32.mrf.mxu0 }
  0xdf   : > { %v330_v28 = vpop.f32.mrf.mxu1  ;;  %343 = vst.msk [vmem:[%s923_s8 + $0x8] sm:$0xff] %vm341_vm3, %v335_v25  ;;  %v311_v29 = vadd.f32 %v596_v10, %v310_v27 }
  0xe0   : > { %347 = vst.msk [vmem:[%s923_s8 + $0x28] sm:$0xff] %vm341_vm3, %v339_v26  ;;  %v331_v30 = vadd.f32 %v596_v10, %v330_v28  ;;  %v639_v31 = vpop.f32.mrf.mxu0 }
  0xe1   : > { %v651_v32 = vpop.f32.mrf.mxu1  ;;  %v336_v33 = vmax.f32 %v311_v29, 0.0 }
  0xe2   : > { %v340_v34 = vmax.f32 %v331_v30, 0.0  ;;  %v315_v35 = vpop.f32.mrf.mxu0 }
  0xe3   : > { %344 = vst.msk [vmem:[%s923_s8 + $0x10] sm:$0xff] %vm341_vm3, %v336_v33  ;;  %v316_v36 = vadd.f32 %v596_v10, %v315_v35  ;;  %355 = sbr.rel (!%p887_p4) target bundleno = 285 (0x11d), region = 36 }
  0xe4   : > { %348 = vst.msk [vmem:[%s923_s8 + $0x30] sm:$0xff] %vm341_vm3, %v340_v34  ;;  %v642_v37 = vpop.f32.mrf.mxu0 }
  0xe5   : > { %v337_v38 = vmax.f32 %v316_v36, 0.0 }
  0xe7   : > { %345 = vst.msk [vmem:[%s923_s8 + $0x18] sm:$0xff] %vm341_vm3, %v337_v38 }
  0xe8   : > { %s1007_s9 = smov (!%p358_p8, %s357_s9), 7 }
  0xe9   : > { %s605_s17 = sshll.u32 %s1007_s9, 7 }
  0xea   : > { %p608_p9 = scmp.eq.s32.totalorder %s605_s17, 0 }
  0xeb   : > { %748 = sdivrem.u32 (!%p608_p9), %s1007_s9, 7 }
  0xec   : > { %366 = sbr.rel (%p608_p9) target bundleno = 285 (0x11d), region = 40 }
  0xf4   : > { %s952_s18 = spop.drf %748 }
  0xf5   : > { %p609_p10 = scmp.le.s32.totalorder %s952_s18, 0 }
  0xf6   : > { %s1000_s15 = smov (!%p609_p10), %s946_s14  ;;  %s1001_s20 = smov (!%p609_p10), %s923_s8 }
  0xf7   : > { %547 = sbr.rel (%p609_p10) target bundleno = 260 (0x104), region = 116  ;;  %s961_s21 = smov (!%p609_p10), 0  }
  0xf8   : > { %s963_s22 = smov (!%p609_p10), 0  }
  0xfc LB: >> { %v443_v39 = vld [vmem:[%s814_s20] sm:$0xff]  ;;  %v445_v40 = vld [vmem:[%s814_s20 + $0x8] sm:$0xff]  ;;  %v447_v41 = vld [vmem:[%s814_s20 + $0x10] sm:$0xff]  ;;  %s457_s23 = sadd.s32 1, %s818_s21  ;;  %s437_s22 = sadd.s32 1, %s822_s22   ;;  %s822_s22 = sphi %s963_s22, %s437_s22   ;;  %s818_s21 = sphi %s961_s21, %s1002_s21   ;;  %s814_s20 = sphi %s1001_s20, %s462_s20   ;;  %s810_s15 = sphi %s1000_s15, %s463_s15  }
  0xfd   : >> { %444 = vst [vmem:[%s810_s15] sm:$0xff] %v443_v39  ;;  %446 = vst [vmem:[%s810_s15 + $0x8] sm:$0xff] %v445_v40  ;;  %v449_v42 = vld [vmem:[%s814_s20 + $0x18] sm:$0xff]  ;;  %v451_v43 = vld [vmem:[%s814_s20 + $0x20] sm:$0xff]  ;;  %p458_p11 = scmp.ge.s32.totalorder %s457_s23, %s952_s18  ;;  %p436_p12 = scmp.ge.s32.totalorder %s437_s22, %s952_s18 }
  0xfe   : >> { %448 = vst [vmem:[%s810_s15 + $0x10] sm:$0xff] %v447_v41  ;;  %v453_v44 = vld [vmem:[%s814_s20 + $0x28] sm:$0xff]  ;;  %450 = vst [vmem:[%s810_s15 + $0x18] sm:$0xff] %v449_v42  ;;  %v455_v45 = vld [vmem:[%s814_s20 + $0x30] sm:$0xff] }
  0xff   : >> { %452 = vst [vmem:[%s810_s15 + $0x20] sm:$0xff] %v451_v43  ;;  %454 = vst [vmem:[%s810_s15 + $0x28] sm:$0xff] %v453_v44  ;;  %s1009_s23 = smov (%p458_p11, %s457_s23), 0  ;;  %439 = sbr.rel (!%p436_p12) target bundleno = 252 (0xfc), region = 122 }
 0x100   : >> { %456 = vst [vmem:[%s810_s15 + $0x30] sm:$0xff] %v455_v45  ;;  %s460_s24 = smul.u32 56, %s1009_s23  ;;  %s1002_s21 = smov %s1009_s23 }
 0x102   : >> { %s462_s20 = scalar_lea.vmem %s923_s8, %s460_s24 [#allocation2]   ;;  %s463_s15 = scalar_lea.vmem %s946_s14, %s460_s24  }
 0x104 PF: > { %750 = sdivrem.u32 %s1007_s9, 7 }
 0x105   : > { %s610_s25 = smul.u32 56, %s952_s18 }
 0x107   : > { %s468_s26 = scalar_lea.vmem %s923_s8, %s610_s25 [#allocation2]   ;;  %s470_s27 = scalar_lea.vmem %s946_s14, %s610_s25  }
 0x10d   : > { %s751_s28 = spop.drf %750 }
 0x10e   : > { %p612_p13 = scmp.le.s32.totalorder %s751_s28, 0 }
 0x10f   : > { %s824_s29 = smov (!%p612_p13), %s470_s27   ;;  %s828_s30 = smov (!%p612_p13), %s468_s26  }
 0x110   : > { %561 = sbr.rel (%p612_p13) target bundleno = 285 (0x11d), region = 127  ;;  %s832_s4 = smov (!%p612_p13), 0  }
 0x111   : > { %s836_s5 = smov (!%p612_p13), 0  }
 0x115 LB: >> { %v480_v46 = vld [vmem:[%s830_s30] sm:$0xff]  ;;  %s482_s6 = sadd.s32 1, %s834_s4  ;;  %s474_s5 = sadd.s32 1, %s838_s5   ;;  %s838_s5 = sphi %s836_s5, %s474_s5   ;;  %s834_s4 = sphi %s832_s4, %s833_s4   ;;  %s830_s30 = sphi %s828_s30, %s487_s30   ;;  %s826_s29 = sphi %s824_s29, %s488_s29  }
 0x116   : >> { %481 = vst [vmem:[%s826_s29] sm:$0xff] %v480_v46  ;;  %p483_p0 = scmp.ge.s32.totalorder %s482_s6, %s751_s28  ;;  %p473_p1 = scmp.ge.s32.totalorder %s474_s5, %s751_s28 }
 0x118   : >> { %s1011_s6 = smov (%p483_p0, %s482_s6), 0  ;;  %476 = sbr.rel (!%p473_p1) target bundleno = 277 (0x115), region = 133 }
 0x119   : >> { %s613_s7 = sshll.u32 %s1011_s6, 3  ;;  %s833_s4 = smov %s1011_s6  }
 0x11a   : >> { %s487_s30 = scalar_lea.vmem %s468_s26, %s613_s7 [#allocation2]   ;;  %s488_s29 = scalar_lea.vmem %s470_s27, %s613_s7  }
 0x11d PF: > { %p10_p2 = scmp.ge.s32.totalorder %s877_s16, 4   ;;  %s1003_s12 = smov %s802_s13 }
 0x11e   : > { %s1004_s13 = smov %s885_s19  ;;  %s1005_s14 = smov %s877_s16 }
 0x11f   :  { %12 = sbr.rel (!%p10_p2) target bundleno = 2 (0x2), region = 144 }

// kernel: conformer_forward.5
= control target key start
LH: loop header
LB: loop body
LE: loop exit
PB: predicated region body
PF: predicated region fallthrough
CT: control target
= control target key end

     0   :  { %s1289_s18 = smov 0   ;;  %s1695_s0 = inlined_call_operand.vmem [shape: f32[2,3,3,288], index: 0, kind: input, shape index: {}]   ;;  %s1696_s1 = inlined_call_operand.vmem [shape: f32[288,32], index: 1, kind: input, shape index: {}]   ;;  %s1697_s2 = inlined_call_operand.vmem [shape: f32[1,32], index: 2, kind: input, shape index: {}]   ;;  %s1698_s3 = inlined_call_operand.vmem [shape: f32[96,32], index: 3, kind: input, shape index: {}]   ;;  %s1699_s4 = inlined_call_operand.vmem [shape: f32[1,32], index: 4, kind: input, shape index: {}]   ;;  %s1700_s5 = inlined_call_operand.vmem [shape: f32[2,3,32], index: 5, kind: output, shape index: {}]  }
   0x1 LB: > { %s1013_s19 = sadd.s32 4294967295, %s1255_s18   ;;  %p1017_p0 = scmp.ge.s32.totalorder %s1255_s18, 1  ;;  %s1255_s18 = sphi %s1289_s18, %s15_s18  }
   0x2   : > { %p187_p1 = scmp.lt.s32.totalorder %s1255_s18, 3 }
   0x4   : > { %p188_p2 = pnand %p1017_p0, %p187_p1 }
   0x5   : > { %p214_p3 = scmp.lt.s32.totalorder (!%p188_p2), %s1013_s19, 1 }
   0x6   : > { %191 = sbr.rel (%p188_p2) target bundleno = 915 (0x393), region = 40 }
   0xb   : > { %v1300_v0 = vld [vmem:[%s1696_s1 + $0xf8] sm:$0xff]  ;;  %v1310_v2 = vld [vmem:[%s1696_s1 + $0xf0] sm:$0xff]  ;;  %v1257_v4 = vmov 0.0   ;;  %v1323_v5 = vld [vmem:[%s1696_s1 + $0xe8] sm:$0xff]  ;;  %s1702_s19 = smov (!%p214_p3, %s1013_s19), 1  ;;  %vm1258_vm0 = vmmov 0  }
   0xc   : > { %v1305_v1 = vld [vmem:[%s1696_s1 + $0x78] sm:$0xff]  ;;  %1034 = vmatprep.subr.mxu0 %v1300_v0  ;;  %v1316_v3 = vld [vmem:[%s1696_s1 + $0x70] sm:$0xff]  ;;  %1169 = vmatprep.subr.mxu1 %v1257_v4  ;;  %v1333_v6 = vld [vmem:[%s1696_s1 + $0x68] sm:$0xff]  ;;  %s1235_s9 = smul.u32 36, %s1702_s19  ;;  %vm280_vm1 = vcmask 261120   ;;  %vm958_vm2 = vcmask 256000  }
   0xd   : > { %1035 = vmatpush3.msra.mxu0 %v1305_v1  ;;  %1177 = vmatprep.mubr.msk.f32.mxu1 %vm1258_vm0, %v1257_v4  ;;  %v1339_v7 = vld [vmem:[%s1696_s1 + $0xe0] sm:$0xff]  ;;  %v1352_v9 = vld [vmem:[%s1696_s1 + $0xd8] sm:$0xff]  ;;  %v1364_v11 = vld [vmem:[%s1696_s1 + $0xd0] sm:$0xff] }
   0xe   : > { %1036 = vmatprep.subr.mxu0 %v1310_v2  ;;  %v1346_v8 = vld [vmem:[%s1696_s1 + $0x60] sm:$0xff]  ;;  %v1358_v10 = vld [vmem:[%s1696_s1 + $0x58] sm:$0xff]  ;;  %s1369_s22 = scalar_lea.vmem %s1695_s0, %s1235_s9  ;;  %v1375_v12 = vld [vmem:[%s1696_s1 + $0x50] sm:$0xff]  ;;  %s1019_s9 = sshll.u32 %s1702_s19, 2 }
   0xf   : > { %1037 = vmatpush3.msra.mxu0 %v1316_v3  ;;  %v1381_v13 = vld [vmem:[%s1696_s1 + $0xc8] sm:$0xff]  ;;  %v1386_v14 = vld [vmem:[%s1696_s1 + $0x118] sm:$0xff]  ;;  %v231_v16 = vld [vmem:[%s1369_s22] sm:$0x77]  ;;  %s222_s12 = scalar_lea.vmem %s1700_s5, %s1019_s9 }
  0x10   : > { %1038 = vmatprep.subr.mxu0 %v1323_v5  ;;  %v1392_v15 = vld [vmem:[%s1696_s1 + $0x48] sm:$0xff]  ;;  %1170 = vmatpush3.msra.mxu1 %v1386_v14  ;;  %v1399_v17 = vld [vmem:[%s1696_s1 + $0x110] sm:$0xff]  ;;  %v1405_v18 = vld [vmem:[%s1696_s1 + $0xc0] sm:$0xff]  ;;  %v278_v19 = vcombine.high %v231_v16, %v231_v16 }
  0x11   : > { %1039 = vmatpush3.msra.mxu0 %v1333_v6  ;;  %1171 = vmatprep.subr.mxu1 %v1257_v4  ;;  %v1412_v20 = vld [vmem:[%s1696_s1 + $0x40] sm:$0xff]  ;;  %v1418_v21 = vld [vmem:[%s1696_s1 + $0x108] sm:$0xff]  ;;  %v1424_v22 = vld [vmem:[%s1696_s1 + $0xb8] sm:$0xff] }
  0x12   : > { %1040 = vmatprep.subr.mxu0 %v1339_v7  ;;  %1172 = vmatpush3.msra.mxu1 %v1399_v17  ;;  %v1430_v23 = vld [vmem:[%s1696_s1 + $0x38] sm:$0xff]  ;;  %v1436_v24 = vld [vmem:[%s1696_s1 + $0x100] sm:$0xff]  ;;  %v1442_v25 = vld [vmem:[%s1696_s1 + $0xb0] sm:$0xff] }
  0x13   : > { %1041 = vmatpush3.msra.mxu0 %v1346_v8  ;;  %347 = vmatprep.mubr.f32.mxu0 %v278_v19  ;;  %v232_v26 = vld [vmem:[%s1369_s22 + $0x8] sm:$0x7]  ;;  %v1450_v27 = vld [vmem:[%s1696_s1 + $0x30] sm:$0xff]  ;;  %v1471_v30 = vld [vmem:[%s1696_s1 + $0xa0] sm:$0xff] }
  0x14   : > { %1042 = vmatprep.subr.mxu0 %v1352_v9  ;;  %1173 = vmatprep.subr.mxu1 %v1257_v4  ;;  %v1457_v28 = vld [vmem:[%s1696_s1 + $0xa8] sm:$0xff]  ;;  %v1478_v31 = vld [vmem:[%s1696_s1 + $0x20] sm:$0xff]  ;;  %v1486_v32 = vld [vmem:[%s1696_s1 + $0x98] sm:$0xff] }
  0x15   : > { %1043 = vmatpush3.msra.mxu0 %v1358_v10  ;;  %1174 = vmatpush3.msra.mxu1 %v1418_v21  ;;  %v1464_v29 = vld [vmem:[%s1696_s1 + $0x28] sm:$0xff]  ;;  %v1492_v33 = vld [vmem:[%s1696_s1 + $0x18] sm:$0xff]  ;;  %v1498_v34 = vld [vmem:[%s1696_s1 + $0x90] sm:$0xff] }
  0x16   : > { %1044 = vmatprep.subr.mxu0 %v1364_v11  ;;  %1175 = vmatprep.subr.mxu1 %v1257_v4  ;;  %v1504_v35 = vld [vmem:[%s1696_s1 + $0x10] sm:$0xff]  ;;  %v1510_v36 = vld [vmem:[%s1696_s1 + $0x88] sm:$0xff]  ;;  %v1522_v38 = vld [vmem:[%s1696_s1 + $0x80] sm:$0xff] }
  0x17   : > { %1045 = vmatpush3.msra.mxu0 %v1375_v12  ;;  %1176 = vmatpush3.msra.mxu1 %v1436_v24  ;;  %v1516_v37 = vld [vmem:[%s1696_s1 + $0x8] sm:$0xff]  ;;  %v1528_v39 = vld [vmem:[%s1696_s1] sm:$0xff]  ;;  %v427_v40 = vld [vmem:[%s1698_s3 + $0x18] sm:$0xff] }
  0x18   : > { %1046 = vmatprep.subr.mxu0 %v1381_v13  ;;  %1178 = vmatmul.mubr.msk.f32.vlgmr.msra.gmra.mxu1 %vm280_vm1, %v232_v26  ;;  %v426_v41 = vld [vmem:[%s1698_s3 + $0x10] sm:$0xff]  ;;  %v425_v42 = vld [vmem:[%s1698_s3 + $0x8] sm:$0xff]  ;;  %v424_v43 = vld [vmem:[%s1698_s3] sm:$0xff] }
  0x19   : > { %1047 = vmatpush3.msra.mxu0 %v1392_v15  ;;  %1180 = vmatprep.subr.mxu1 %v1257_v4  ;;  %v1555_v48 = vld [vmem:[%s1697_s2] ss:$0 sm:$0xff]  ;;  %v1024_v51 = vld [vmem:[%s1369_s22 + $0xc] sm:$0x77]  ;;  %v1025_v55 = vld [vmem:[%s1369_s22 + $0x14] sm:$0x7] }
  0x1a   : > { %1048 = vmatprep.subr.mxu0 %v1405_v18  ;;  %1188 = vmatprep.mubr.msk.f32.mxu1 %vm1258_vm0, %v1257_v4  ;;  %v507_v53 = vcombine.high %v1024_v51, %v1024_v51  ;;  %v655_v56 = vld [vmem:[%s1698_s3 + $0x38] sm:$0xff]  ;;  %v654_v57 = vld [vmem:[%s1698_s3 + $0x30] sm:$0xff]  ;;  %v653_v58 = vld [vmem:[%s1698_s3 + $0x28] sm:$0xff] }
  0x1b   : > { %1049 = vmatpush3.msra.mxu0 %v1412_v20  ;;  %1181 = vmatpush3.msra.mxu1 %v427_v40  ;;  %v652_v59 = vld [vmem:[%s1698_s3 + $0x20] sm:$0xff]  ;;  %v1028_v19 = vld [vmem:[%s1369_s22 + $0x18] sm:$0x77] }
  0x1c   : > { %1050 = vmatprep.subr.mxu0 %v1424_v22  ;;  %1182 = vmatprep.subr.mxu1 %v1257_v4  ;;  %v1029_v60 = vld [vmem:[%s1369_s22 + $0x20] sm:$0x7]  ;;  %v735_v40 = vcombine.high %v1028_v19, %v1028_v19 }
  0x1d   : > { %1051 = vmatpush3.msra.mxu0 %v1430_v23  ;;  %1183 = vmatpush3.msra.mxu1 %v426_v41 }
  0x1e   : > { %1052 = vmatprep.subr.mxu0 %v1442_v25  ;;  %1184 = vmatprep.subr.mxu1 %v1257_v4 }
  0x1f   : > { %1053 = vmatpush3.msra.mxu0 %v1450_v27  ;;  %1185 = vmatpush3.msra.mxu1 %v425_v42 }
  0x20   : > { %1054 = vmatprep.subr.mxu0 %v1457_v28  ;;  %1186 = vmatprep.subr.mxu1 %v1257_v4 }
  0x21   : > { %1055 = vmatpush3.msra.mxu0 %v1464_v29  ;;  %1187 = vmatpush3.msra.mxu1 %v424_v43 }
  0x22   : > { %1056 = vmatprep.subr.mxu0 %v1471_v30  ;;  %1079 = vmatprep.subr.mxu1 %v1300_v0 }
  0x23   : > { %1057 = vmatpush3.msra.mxu0 %v1478_v31 }
  0x24   : > { %1058 = vmatprep.subr.mxu0 %v1486_v32 }
  0x25   : > { %1059 = vmatpush3.msra.mxu0 %v1492_v33 }
  0x26   : > { %1060 = vmatprep.subr.mxu0 %v1498_v34 }
  0x27   : > { %1061 = vmatpush3.msra.mxu0 %v1504_v35 }
  0x28   : > { %1062 = vmatprep.subr.mxu0 %v1510_v36 }
  0x29   : > { %1063 = vmatpush3.msra.mxu0 %v1516_v37 }
  0x2a   : > { %1064 = vmatprep.subr.mxu0 %v1522_v38 }
  0x2b   : > { %1065 = vmatpush3.msra.mxu0 %v1528_v39 }
  0x2c   : > { %348 = vmatmul.mubr.f32.vlgmr.msra.gmra.mxu0 %v231_v16  ;;  %1202 = vmatprep.subr.mxu0 %v1257_v4 }
  0x2d   : > { %1210 = vmatprep.mubr.msk.f32.mxu0 %vm1258_vm0, %v1257_v4  ;;  %1203 = vmatpush3.msra.mxu0 %v655_v56 }
  0x2e   : > { %1204 = vmatprep.subr.mxu0 %v1257_v4 }
  0x2f   : > { %1205 = vmatpush3.msra.mxu0 %v654_v57 }
  0x30   : > { %1206 = vmatprep.subr.mxu0 %v1257_v4 }
  0x31   : > { %1207 = vmatpush3.msra.mxu0 %v653_v58 }
  0x32   : > { %1208 = vmatprep.subr.mxu0 %v1257_v4 }
  0x33   : > { %1209 = vmatpush3.msra.mxu0 %v652_v59 }
  0x34   : > { %1124 = vmatprep.subr.mxu0 %v1300_v0  ;;  %v883_v0 = vld [vmem:[%s1698_s3 + $0x58] sm:$0xff] }
  0xd8   : > { %v419_v44 = vpop.f32.mrf.mxu1 }
  0xda   : > { %v1179_v45 = vpop.f32.mrf.mxu1 }
  0xec   : > { %v1066_v46 = vpop.f32.mrf.mxu0 }
  0xee   : > { %v1067_v47 = vpop.f32.mrf.mxu0 }
  0xef   : > { %v1068_v49 = vadd.f32 %v1067_v47, %v1066_v46 }
  0xf1   : > { %v350_v50 = vadd.f32 %v1068_v49, %v1555_v48 }
  0xf3   : > { %v420_v52 = vadd.f32 %v419_v44, %v350_v50 }
  0xf5   : > { %v423_v54 = vmax.f32 %v420_v52, 0.0 }
  0xf7   : > { %1189 = vmatmul.mubr.msk.f32.vlgmr.msra.gmra.mxu1 %vm280_vm1, %v423_v54 }
  0xf8   : > { %1080 = vmatpush3.msra.mxu1 %v1305_v1  ;;  %575 = vmatprep.mubr.f32.mxu1 %v507_v53 }
  0xf9   : > { %1081 = vmatprep.subr.mxu1 %v1310_v2 }
  0xfa   : > { %1082 = vmatpush3.msra.mxu1 %v1316_v3 }
  0xfb   : > { %1083 = vmatprep.subr.mxu1 %v1323_v5 }
  0xfc   : > { %1084 = vmatpush3.msra.mxu1 %v1333_v6 }
  0xfd   : > { %1085 = vmatprep.subr.mxu1 %v1339_v7 }
  0xfe   : > { %1086 = vmatpush3.msra.mxu1 %v1346_v8 }
  0xff   : > { %1087 = vmatprep.subr.mxu1 %v1352_v9 }
 0x100   : > { %1088 = vmatpush3.msra.mxu1 %v1358_v10 }
 0x101   : > { %1089 = vmatprep.subr.mxu1 %v1364_v11 }
 0x102   : > { %1090 = vmatpush3.msra.mxu1 %v1375_v12 }
 0x103   : > { %1091 = vmatprep.subr.mxu1 %v1381_v13 }
 0x104   : > { %1092 = vmatpush3.msra.mxu1 %v1392_v15 }
 0x105   : > { %1093 = vmatprep.subr.mxu1 %v1405_v18 }
 0x106   : > { %1094 = vmatpush3.msra.mxu1 %v1412_v20 }
 0x107   : > { %1095 = vmatprep.subr.mxu1 %v1424_v22 }
 0x108   : > { %1096 = vmatpush3.msra.mxu1 %v1430_v23 }
 0x109   : > { %1097 = vmatprep.subr.mxu1 %v1442_v25 }
 0x10a   : > { %1098 = vmatpush3.msra.mxu1 %v1450_v27 }
 0x10b   : > { %1099 = vmatprep.subr.mxu1 %v1457_v28 }
 0x10c   : > { %1100 = vmatpush3.msra.mxu1 %v1464_v29 }
 0x10d   : > { %1101 = vmatprep.subr.mxu1 %v1471_v30 }
 0x10e   : > { %1102 = vmatpush3.msra.mxu1 %v1478_v31 }
 0x10f   : > { %1103 = vmatprep.subr.mxu1 %v1486_v32 }
 0x110   : > { %1104 = vmatpush3.msra.mxu1 %v1492_v33 }
 0x111   : > { %1105 = vmatprep.subr.mxu1 %v1498_v34 }
 0x112   : > { %1106 = vmatpush3.msra.mxu1 %v1504_v35 }
 0x113   : > { %1107 = vmatprep.subr.mxu1 %v1510_v36 }
 0x114   : > { %1108 = vmatpush3.msra.mxu1 %v1516_v37 }
 0x115   : > { %1109 = vmatprep.subr.mxu1 %v1522_v38 }
 0x116   : > { %1110 = vmatpush3.msra.mxu1 %v1528_v39 }
 0x117   : > { %576 = vmatmul.mubr.f32.vlgmr.msra.gmra.mxu1 %v1024_v51  ;;  %1191 = vmatprep.subr.mxu1 %v1257_v4 }
 0x118   : > { %1192 = vmatpush3.msra.mxu1 %v1386_v14  ;;  %1199 = vmatprep.mubr.msk.f32.mxu1 %vm1258_vm0, %v1257_v4 }
 0x119   : > { %1193 = vmatprep.subr.mxu1 %v1257_v4 }
 0x11a   : > { %1194 = vmatpush3.msra.mxu1 %v1399_v17 }
 0x11b   : > { %1195 = vmatprep.subr.mxu1 %v1257_v4 }
 0x11c   : > { %1196 = vmatpush3.msra.mxu1 %v1418_v21 }
 0x11d   : > { %1197 = vmatprep.subr.mxu1 %v1257_v4 }
 0x11e   : > { %1198 = vmatpush3.msra.mxu1 %v1436_v24 }
 0x11f   : > { %1200 = vmatmul.mubr.msk.f32.vlgmr.msra.gmra.mxu1 %vm280_vm1, %v1025_v55  ;;  %1213 = vmatprep.subr.mxu1 %v1257_v4 }
 0x120   : > { %1214 = vmatpush3.msra.mxu1 %v1386_v14  ;;  %1221 = vmatprep.mubr.msk.f32.mxu1 %vm1258_vm0, %v1257_v4 }
 0x121   : > { %1215 = vmatprep.subr.mxu1 %v1257_v4 }
 0x122   : > { %1216 = vmatpush3.msra.mxu1 %v1399_v17 }
 0x123   : > { %1217 = vmatprep.subr.mxu1 %v1257_v4 }
 0x124   : > { %1218 = vmatpush3.msra.mxu1 %v1418_v21 }
 0x125   : > { %1219 = vmatprep.subr.mxu1 %v1257_v4 }
 0x126   : > { %1220 = vmatpush3.msra.mxu1 %v1436_v24 }
 0x127   : > { %1224 = vmatprep.subr.mxu1 %v1257_v4  ;;  %1222 = vmatmul.mubr.msk.f32.vlgmr.msra.gmra.mxu1 %vm280_vm1, %v1029_v60 }
 0x128   : > { %1232 = vmatprep.mubr.msk.f32.mxu1 %vm1258_vm0, %v1257_v4  ;;  %1225 = vmatpush3.msra.mxu1 %v883_v0 }
 0x129   : > { %1226 = vmatprep.subr.mxu1 %v1257_v4 }
 0x1b7   : > { %v497_v61 = vpop.f32.mrf.mxu1 }
 0x1b9   : > { %v1190_v62 = vpop.f32.mrf.mxu1 }
 0x1d7   : > { %v1111_v63 = vpop.f32.mrf.mxu1 }
 0x1d9   : > { %v1112_v14 = vpop.f32.mrf.mxu1 }
 0x1da   : > { %v1113_v16 = vadd.f32 %v1112_v14, %v1111_v63 }
 0x1dc   : > { %v578_v17 = vadd.f32 %v1113_v16, %v1555_v48 }
 0x1df   : > { %v647_v21 = vpop.f32.mrf.mxu1 }
 0x1e0   : > { %v648_v24 = vadd.f32 %v647_v21, %v578_v17 }
 0x1e1   : > { %v1201_v26 = vpop.f32.mrf.mxu1 }
 0x1e2   : > { %v651_v41 = vmax.f32 %v648_v24, 0.0 }
 0x1e4   : > { %1211 = vmatmul.mubr.msk.f32.vlgmr.msra.gmra.mxu0 %vm280_vm1, %v651_v41 }
 0x1e5   : > { %1125 = vmatpush3.msra.mxu0 %v1305_v1  ;;  %803 = vmatprep.mubr.f32.mxu0 %v735_v40 }
 0x1e6   : > { %1126 = vmatprep.subr.mxu0 %v1310_v2  ;;  %v882_v2 = vld [vmem:[%s1698_s3 + $0x50] sm:$0xff] }
 0x1e7   : > { %1127 = vmatpush3.msra.mxu0 %v1316_v3  ;;  %v875_v1 = vpop.f32.mrf.mxu1  ;;  %1227 = vmatpush3.msra.mxu1 %v882_v2 }
 0x1e8   : > { %1128 = vmatprep.subr.mxu0 %v1323_v5  ;;  %1228 = vmatprep.subr.mxu1 %v1257_v4  ;;  %v881_v5 = vld [vmem:[%s1698_s3 + $0x48] sm:$0xff] }
 0x1e9   : > { %1129 = vmatpush3.msra.mxu0 %v1333_v6  ;;  %v1223_v3 = vpop.f32.mrf.mxu1  ;;  %1229 = vmatpush3.msra.mxu1 %v881_v5  ;;  %v880_v6 = vld [vmem:[%s1698_s3 + $0x40] sm:$0xff] }
 0x1ea   : > { %1130 = vmatprep.subr.mxu0 %v1339_v7  ;;  %1230 = vmatprep.subr.mxu1 %v1257_v4  ;;  %v1020_v7 = vld [vmem:[%s1699_s4] ss:$0 sm:$0xff] }
 0x1eb   : > { %1131 = vmatpush3.msra.mxu0 %v1346_v8  ;;  %1231 = vmatpush3.msra.mxu1 %v880_v6  ;;  %v501_v8 = vadd.f32 %v1020_v7, %v497_v61 }
 0x1ec   : > { %1132 = vmatprep.subr.mxu0 %v1352_v9 }
 0x1ed   : > { %1133 = vmatpush3.msra.mxu0 %v1358_v10 }
 0x1ee   : > { %1134 = vmatprep.subr.mxu0 %v1364_v11 }
 0x1ef   : > { %1135 = vmatpush3.msra.mxu0 %v1375_v12 }
 0x1f0   : > { %1136 = vmatprep.subr.mxu0 %v1381_v13 }
 0x1f1   : > { %1137 = vmatpush3.msra.mxu0 %v1392_v15 }
 0x1f2   : > { %1138 = vmatprep.subr.mxu0 %v1405_v18 }
 0x1f3   : > { %1139 = vmatpush3.msra.mxu0 %v1412_v20 }
 0x1f4   : > { %1140 = vmatprep.subr.mxu0 %v1424_v22 }
 0x1f5   : > { %1141 = vmatpush3.msra.mxu0 %v1430_v23 }
 0x1f6   : > { %1142 = vmatprep.subr.mxu0 %v1442_v25 }
 0x1f7   : > { %1143 = vmatpush3.msra.mxu0 %v1450_v27 }
 0x1f8   : > { %1144 = vmatprep.subr.mxu0 %v1457_v28 }
 0x1f9   : > { %1145 = vmatpush3.msra.mxu0 %v1464_v29 }
 0x1fa   : > { %1146 = vmatprep.subr.mxu0 %v1471_v30 }
 0x1fb   : > { %1147 = vmatpush3.msra.mxu0 %v1478_v31 }
 0x1fc   : > { %1148 = vmatprep.subr.mxu0 %v1486_v32 }
 0x1fd   : > { %1149 = vmatpush3.msra.mxu0 %v1492_v33 }
 0x1fe   : > { %1150 = vmatprep.subr.mxu0 %v1498_v34 }
 0x1ff   : > { %1151 = vmatpush3.msra.mxu0 %v1504_v35 }
 0x200   : > { %1152 = vmatprep.subr.mxu0 %v1510_v36 }
 0x201   : > { %1153 = vmatpush3.msra.mxu0 %v1516_v37 }
 0x202   : > { %1154 = vmatprep.subr.mxu0 %v1522_v38 }
 0x203   : > { %1155 = vmatpush3.msra.mxu0 %v1528_v39 }
 0x204   : > { %804 = vmatmul.mubr.f32.vlgmr.msra.gmra.mxu0 %v1028_v19 }
 0x2a4   : > { %v725_v9 = vpop.f32.mrf.mxu0 }
 0x2a5   : > { %v729_v10 = vadd.f32 %v725_v9, %v501_v8 }
 0x2a6   : > { %v1212_v11 = vpop.f32.mrf.mxu0 }
 0x2c4   : > { %v1156_v12 = vpop.f32.mrf.mxu0 }
 0x2c6   : > { %v1157_v13 = vpop.f32.mrf.mxu0 }
 0x2c7   : > { %v1158_v15 = vadd.f32 %v1157_v13, %v1156_v12 }
 0x2c9   : > { %v806_v18 = vadd.f32 %v1158_v15, %v1555_v48 }
 0x2cb   : > { %v876_v20 = vadd.f32 %v875_v1, %v806_v18 }
 0x2cd   : > { %v879_v4 = vmax.f32 %v876_v20, 0.0 }
 0x2cf   : > { %1233 = vmatmul.mubr.msk.f32.vlgmr.msra.gmra.mxu1 %vm280_vm1, %v879_v4 }
 0x38f   : > { %v953_v22 = vpop.f32.mrf.mxu1 }
 0x390   : > { %v957_v23 = vadd.f32 %v953_v22, %v729_v10 }
 0x391   : > { %v1234_v25 = vpop.f32.mrf.mxu1 }
 0x392   : > { %959 = vst.msk [vmem:[%s222_s12] sm:$0x7] %vm958_vm2, %v957_v23 }
 0x393 PF: > { %s15_s18 = sadd.s32 1, %s1255_s18  }
 0x394   : > { %p12_p4 = scmp.ge.s32.totalorder %s15_s18, 4  }
 0x396   :  { %14 = sbr.rel (!%p12_p4) target bundleno = 1 (0x1), region = 72 }

// kernel: conformer_forward.6
= control target key start
LH: loop header
LB: loop body
LE: loop exit
PB: predicated region body
PF: predicated region fallthrough
CT: control target
= control target key end

     0   :  { %s3768_s18 = smov 0   ;;  %s4412_s0 = inlined_call_operand.vmem [shape: f32[2,3,32], index: 0, kind: input, shape index: {}]   ;;  %s4413_s1 = inlined_call_operand.vmem [shape: f32[2,1,3], index: 1, kind: input, shape index: {}]   ;;  %s4414_s2 = inlined_call_operand.vmem [shape: f32[5,32], index: 2, kind: input, shape index: {}]   ;;  %s4415_s3 = inlined_call_operand.vmem [shape: f32[21,32], index: 3, kind: input, shape index: {}]   ;;  %s4416_s4 = inlined_call_operand.vmem [shape: f32[2,128], index: 4, kind: input, shape index: {}]   ;;  %s4417_s5 = inlined_call_operand.vmem [shape: f32[1,96], index: 5, kind: input, shape index: {}]   ;;  %s4418_s6 = inlined_call_operand.vmem [shape: f32[1,64], index: 6, kind: input, shape index: {}]   ;;  %s4419_s7 = inlined_call_operand.vmem [shape: f32[2,32,128], index: 7, kind: input, shape index: {}]   ;;  %s4420_s8 = inlined_call_operand.vmem [shape: f32[2,128,32], index: 8, kind: input, shape index: {}]   ;;  %s4421_s9 = inlined_call_operand.vmem [shape: f32[32,96], index: 9, kind: input, shape index: {}]   ;;  %s4422_s10 = inlined_call_operand.vmem [shape: f32[32,32], index: 10, kind: input, shape index: {}]   ;;  %s4423_s11 = inlined_call_operand.vmem [shape: f32[32,32], index: 11, kind: input, shape index: {}]   ;;  %s4424_s12 = inlined_call_operand.vmem [shape: f32[32,64], index: 12, kind: input, shape index: {}]   ;;  %s4425_s13 = inlined_call_operand.vmem [shape: f32[3,32], index: 13, kind: input, shape index: {}]   ;;  %s4426_s14 = inlined_call_operand.vmem [shape: f32[32,32], index: 14, kind: input, shape index: {}]   ;;  %s4427_s15 = inlined_call_operand.vmem [shape: f32[2,3,32], index: 15, kind: output, shape index: {}]  }
   0x1 LB: > { %s3136_s19 = sadd.s32 4294967295, %s3668_s18   ;;  %p3140_p0 = scmp.ge.s32.totalorder %s3668_s18, 1  ;;  %s3668_s18 = sphi %s3768_s18, %s25_s18  }
   0x2   : > { %p444_p1 = scmp.lt.s32.totalorder %s3668_s18, 3 }
   0x4   : > { %p445_p2 = pnand %p3140_p0, %p444_p1 }
   0x5   : > { %p493_p3 = scmp.lt.s32.totalorder (!%p445_p2), %s3136_s19, 1  ;;  %s3674_s24 = smov (!%p445_p2), 96  }
   0x6   : > { %448 = sbr.rel (%p445_p2) target bundleno = 6649 (0x19f9), region = 80  ;;  %s3678_s17 = smov (!%p445_p2), 120  }
   0x7   : > { %s3679_s21 = smov (!%p445_p2), 64   ;;  %s3680_s22 = smov (!%p445_p2), 88  }
   0x8   : > { %s3682_s25 = smov (!%p445_p2), 56   ;;  %s3683_s26 = smov (!%p445_p2), 80  }
   0xb   : > { %s4429_s19 = smov (!%p493_p3, %s3136_s19), 1  ;;  %vm511_vm0 = vcmask 256000   ;;  %v539_v7 = vld [vmem:[%s4419_s7 + $0x18] sm:$0xff]  ;;  %v3670_v8 = vmov 0.0   ;;  %v538_v9 = vld [vmem:[%s4419_s7 + $0x10] sm:$0xff]  ;;  %vm3671_vm1 = vmmov 0  }
   0xc   : > { %s3141_s20 = sshll.u32 %s4429_s19, 2  ;;  %3340 = vmatprep.subr.mxu0 %v3670_v8  ;;  %3348 = vmatprep.mubr.msk.f32.mxu0 %vm3671_vm1, %v3670_v8  ;;  %v537_v10 = vld [vmem:[%s4419_s7 + $0x8] sm:$0xff]  ;;  %v536_v11 = vld [vmem:[%s4419_s7] sm:$0xff]  ;;  %vm545_vm2 = vcmask 261120   ;;  %v641_v21 = vld [vmem:[%s4420_s8 + $0x78] sm:$0xff]  ;;  %vm920_vm3 = vcmask 64512   ;;  %s499_s16 = scalar_lea.vmem %s4413_s1, %s4429_s19 }
   0xd   : > { %s496_s23 = scalar_lea.vmem %s4412_s0, %s3141_s20  ;;  %3341 = vmatpush3.msra.mxu0 %v539_v7  ;;  %3351 = vmatprep.subr.mxu1 %v3670_v8  ;;  %v3143_v16 = vld [vmem:[%s4415_s3] ss:$0 sm:$0xff]  ;;  %v3144_v18 = vld [vmem:[%s4415_s3 + $0x1] ss:$0 sm:$0xff]  ;;  %v640_v22 = vld [vmem:[%s4420_s8 + $0x70] sm:$0xff]  ;;  %vm1120_vm11 = vcmask 18432   ;;  %s503_s29 = scalar_lea.vmem %s4427_s15, %s3141_s20 }
   0xe   : > { %v3784_v0 = vld [vmem:[%s496_s23] sm:$0x7]  ;;  %3342 = vmatprep.subr.mxu0 %v3670_v8  ;;  %3383 = vmatprep.mubr.msk.f32.mxu1 %vm3671_vm1, %v3670_v8  ;;  %v639_v23 = vld [vmem:[%s4420_s8 + $0x68] sm:$0xff]  ;;  %v637_v25 = vld [vmem:[%s4420_s8 + $0x58] sm:$0xff]  ;;  %vm1138_vm12 = vcmask 1042432   ;;  %vm1134_vm13 = vcmask 23552  }
   0xf   : > { %v512_v1 = vsel %vm511_vm0, %v3784_v0, 0.0  ;;  %3343 = vmatpush3.msra.mxu0 %v538_v9  ;;  %3352 = vmatpush3.msra.mxu1 %v641_v21  ;;  %v638_v24 = vld [vmem:[%s4420_s8 + $0x60] sm:$0xff]  ;;  %v636_v26 = vld [vmem:[%s4420_s8 + $0x50] sm:$0xff]  ;;  %v635_v27 = vld [vmem:[%s4420_s8 + $0x48] sm:$0xff]  ;;  %s3681_s23 = smov 112  }
  0x10   : > { %513 = vadd.xlane.f32.xlu0 %v512_v1  ;;  %3344 = vmatprep.subr.mxu0 %v3670_v8  ;;  %v634_v28 = vld [vmem:[%s4420_s8 + $0x40] sm:$0xff]  ;;  %v633_v29 = vld [vmem:[%s4420_s8 + $0x38] sm:$0xff]  ;;  %v632_v30 = vld [vmem:[%s4420_s8 + $0x30] sm:$0xff] }
  0x11   : > { %3345 = vmatpush3.msra.mxu0 %v537_v10  ;;  %3353 = vmatprep.subr.mxu1 %v3670_v8  ;;  %v631_v31 = vld [vmem:[%s4420_s8 + $0x28] sm:$0xff]  ;;  %v630_v32 = vld [vmem:[%s4420_s8 + $0x20] sm:$0xff]  ;;  %v629_v33 = vld [vmem:[%s4420_s8 + $0x18] sm:$0xff] }
  0x12   : > { %3346 = vmatprep.subr.mxu0 %v3670_v8  ;;  %3354 = vmatpush3.msra.mxu1 %v640_v22  ;;  %v628_v34 = vld [vmem:[%s4420_s8 + $0x10] sm:$0xff]  ;;  %v627_v35 = vld [vmem:[%s4420_s8 + $0x8] sm:$0xff]  ;;  %v626_v36 = vld [vmem:[%s4420_s8] sm:$0xff] }
  0x13   : > { %3347 = vmatpush3.msra.mxu0 %v536_v11  ;;  %3355 = vmatprep.subr.mxu1 %v3670_v8  ;;  %v3145_v37 = vld [vmem:[%s4416_s4] ss:$0 sm:$0xff]  ;;  %v3148_v46 = vld [vmem:[%s4415_s3 + $0x2] ss:$0 sm:$0xff]  ;;  %v747_v58 = vld [vmem:[%s4421_s9 + $0x18] sm:$0xff] }
  0x14   : > { %3386 = vmatprep.subr.mxu0 %v3670_v8  ;;  %3356 = vmatpush3.msra.mxu1 %v639_v23  ;;  %v746_v59 = vld [vmem:[%s4421_s9 + $0x10] sm:$0xff]  ;;  %v745_v60 = vld [vmem:[%s4421_s9 + $0x8] sm:$0xff]  ;;  %v744_v61 = vld [vmem:[%s4421_s9] sm:$0xff] }
  0x15   : > { %3357 = vmatprep.subr.mxu1 %v3670_v8  ;;  %v844_v7 = vld [vmem:[%s4422_s10 + $0x18] sm:$0xff]  ;;  %v843_v9 = vld [vmem:[%s4422_s10 + $0x10] sm:$0xff]  ;;  %v842_v10 = vld [vmem:[%s4422_s10 + $0x8] sm:$0xff] }
  0x16   : > { %3358 = vmatpush3.msra.mxu1 %v638_v24  ;;  %v841_v11 = vld [vmem:[%s4422_s10] sm:$0xff] }
  0x17   : > { %3359 = vmatprep.subr.mxu1 %v3670_v8  ;;  %v3153_v23 = vld [vmem:[%s4415_s3 + $0x6] ss:$0 sm:$0xff] }
  0x18   : > { %3360 = vmatpush3.msra.mxu1 %v637_v25 }
  0x19   : > { %3361 = vmatprep.subr.mxu1 %v3670_v8 }
  0x1a   : > { %3362 = vmatpush3.msra.mxu1 %v636_v26 }
  0x1b   : > { %3363 = vmatprep.subr.mxu1 %v3670_v8 }
  0x1c   : > { %3364 = vmatpush3.msra.mxu1 %v635_v27 }
  0x1d   : > { %3365 = vmatprep.subr.mxu1 %v3670_v8 }
  0x1e   : > { %3366 = vmatpush3.msra.mxu1 %v634_v28  ;;  %v3675_v28 = vmov 1  }
  0x1f   : > { %3367 = vmatprep.subr.mxu1 %v3670_v8 }
  0x20   : > { %3368 = vmatpush3.msra.mxu1 %v633_v29  ;;  %v3676_v29 = vmov 2  }
  0x21   : > { %3369 = vmatprep.subr.mxu1 %v3670_v8 }
  0x22   : > { %3370 = vmatpush3.msra.mxu1 %v632_v30  ;;  %v3677_v30 = vmov 4  }
  0x23   : > { %3371 = vmatprep.subr.mxu1 %v3670_v8 }
  0x24   : > { %3372 = vmatpush3.msra.mxu1 %v631_v31 }
  0x25   : > { %3373 = vmatprep.subr.mxu1 %v3670_v8 }
  0x26   : > { %3374 = vmatpush3.msra.mxu1 %v630_v32 }
  0x27   : > { %3375 = vmatprep.subr.mxu1 %v3670_v8 }
  0x28   : > { %3376 = vmatpush3.msra.mxu1 %v629_v33  ;;  %v505_v33 = vlaneseq }
  0x29   : > { %3377 = vmatprep.subr.mxu1 %v3670_v8 }
  0x2a   : > { %3378 = vmatpush3.msra.mxu1 %v628_v34  ;;  %v3988_v34 = vshrl.u32 %v505_v33, 7 }
  0x2b   : > { %3379 = vmatprep.subr.mxu1 %v3670_v8 }
  0x2c   : > { %3380 = vmatpush3.msra.mxu1 %v627_v35  ;;  %v3990_v35 = vand.u32 127, %v505_v33 }
  0x2d   : > { %3381 = vmatprep.subr.mxu1 %v3670_v8 }
  0x2e   : > { %3382 = vmatpush3.msra.mxu1 %v626_v36 }
  0x2f   : > { %3433 = vmatprep.subr.mxu1 %v3670_v8 }
  0x99   : > { %v514_v2 = vpop.xlane.xlu0 %513 }
  0x9a   : > { %v516_v3 = vmul.f32 0.03125, %v514_v2  ;;  %v3149_v2 = vld [vmem:[%s4415_s3 + $0x3] ss:$0 sm:$0xff] }
  0x9c   : > { %v517_v4 = vsub.f32 %v3784_v0, %v516_v3 }
  0x9e   : > { %v518_v5 = vmul.f32 %v517_v4, %v517_v4 }
  0xa0   : > { %v519_v6 = vsel %vm511_vm0, %v518_v5, 0.0 }
  0xa1   : > { %520 = vadd.xlane.f32.xlu0 %v519_v6 }
 0x12a   : > { %v521_v12 = vpop.xlane.xlu0 %520 }
 0x12b   : > { %v522_v13 = vmul.f32 0.03125, %v521_v12  ;;  %v840_v12 = vld [vmem:[%s4414_s2] sm:$0x1f] }
 0x12d   : > { %v523_v14 = vadd.f32 1e-05, %v522_v13  ;;  %v3672_v13 = vmov 3  }
 0x12e   : > { %3600 = vset.pattern.permute.xlu0 %v3672_v13 }
 0x12f   : > { %3618 = vrsqrt.f32 %v523_v14  ;;  %v3673_v14 = vmov 0  }
 0x130   : > { %3597 = vset.pattern.permute.xlu1 %v3673_v14 }
 0x13c   : > { %v3619_v15 = vpop.eup %3618 }
 0x13d   : > { %v525_v17 = vmul.f32 %v3619_v15, %v517_v4  ;;  %v3150_v4 = vld [vmem:[%s4415_s3 + $0x4] ss:$0 sm:$0xff]  ;;  %v3151_v15 = vld [vmem:[%s4417_s5] ss:$0 sm:$0xff] }
 0x13f   : > { %v530_v19 = vmul.f32 %v3143_v16, %v525_v17 }
 0x141   : > { %v535_v20 = vadd.f32 %v3144_v18, %v530_v19  ;;  %v3154_v19 = vld [vmem:[%s4415_s3 + $0x7] ss:$0 sm:$0xff] }
 0x143   : > { %3349 = vmatmul.mubr.msk.f32.vlgmr.msra.gmra.mxu0 %vm545_vm2, %v535_v20 }
 0x144   : > { %3394 = vmatprep.mubr.msk.f32.mxu0 %vm3671_vm1, %v3670_v8  ;;  %3387 = vmatpush3.msra.mxu0 %v747_v58 }
 0x145   : > { %3388 = vmatprep.subr.mxu0 %v3670_v8 }
 0x146   : > { %3389 = vmatpush3.msra.mxu0 %v746_v59 }
 0x147   : > { %3390 = vmatprep.subr.mxu0 %v3670_v8 }
 0x148   : > { %3391 = vmatpush3.msra.mxu0 %v745_v60 }
 0x149   : > { %3392 = vmatprep.subr.mxu0 %v3670_v8 }
 0x14a   : > { %3393 = vmatpush3.msra.mxu0 %v744_v61 }
 0x14b   : > { %3397 = vmatprep.subr.mxu0 %v3670_v8 }
 0x203   : > { %v615_v38 = vpop.f32.mrf.mxu0 }
 0x204   : > { %v616_v39 = vadd.f32 %v3145_v37, %v615_v38  ;;  %v3994_v37 = vsub.s32 %v3990_v35, %v3988_v34 }
 0x205   : > { %v3350_v40 = vpop.f32.mrf.mxu0 }
 0x206   : > { %v3147_v41 = vmul.f32 -1.442695, %v616_v39  ;;  %vm1005_vm4 = vcmp.eq.s32.totalorder %v3994_v37, 4294967295  ;;  %vm997_vm5 = vcmp.eq.s32.totalorder %v3994_v37, 4294967294  ;;  %vm1012_vm6 = vcmp.eq.s32.totalorder %v3994_v37, 0 }
 0x207   : > { %vm1019_vm8 = vcmp.eq.s32.totalorder %v3994_v37, 1  ;;  %vm1026_vm9 = vcmp.eq.s32.totalorder %v3994_v37, 2 }
 0x208   : > { %3620 = vpow2.f32 %v3147_v41 }
 0x215   : > { %v3621_v42 = vpop.eup %3620 }
 0x216   : > { %v622_v43 = vadd.f32 1.0, %v3621_v42 }
 0x218   : > { %3622 = vrcp.f32 %v622_v43 }
 0x225   : > { %v3623_v44 = vpop.eup %3622 }
 0x226   : > { %v625_v45 = vmul.f32 %v3623_v44, %v616_v39  ;;  %v918_v39 = vld [vmem:[%s499_s16] sm:$0x1]  ;;  %s3684_s16 = smov 104  }
 0x227   : > { %vm1112_vm7 = vcmp.gt.f32.partialorder %v918_v39, 0.5 }
 0x228   : > { %3384 = vmatmul.mubr.f32.vlgmr.msra.gmra.mxu1 %v625_v45 }
 0x229   : > { %3435 = vmatprep.mubr.msk.f32.mxu1 %vm3671_vm1, %v3670_v8 }
 0x2e8   : > { %v713_v47 = vpop.f32.mrf.mxu1 }
 0x2e9   : > { %v714_v48 = vadd.f32 %v3148_v46, %v713_v47  ;;  %v1116_v47 = vsub.s32 0, %v3988_v34 }
 0x2ea   : > { %v3385_v49 = vpop.f32.mrf.mxu1 }
 0x2eb   : > { %v717_v50 = vmul.f32 0.5, %v714_v48  ;;  %v1113_v49 = vsel %vm1112_vm7, 1, %v3673_v14 }
 0x2ed   : > { %v3894_v51 = vadd.f32 %v717_v50, %v3784_v0 }
 0x2ef   : > { %v721_v52 = vsel %vm511_vm0, %v3894_v51, 0.0 }
 0x2f0   : > { %722 = vadd.xlane.f32.xlu1 %v721_v52 }
 0x379   : > { %v723_v53 = vpop.xlane.xlu1 %722 }
 0x37a   : > { %v724_v54 = vmul.f32 0.03125, %v723_v53 }
 0x37c   : > { %v725_v55 = vsub.f32 %v3894_v51, %v724_v54  ;;  %v4019_v54 = vrot.slane %v1113_v49, %v1116_v47 }
 0x37e   : > { %v726_v56 = vmul.f32 %v725_v55, %v725_v55  ;;  %vm1118_vm10 = vcmp.eq.s32.totalorder %v4019_v54, 1 }
 0x380   : > { %v727_v57 = vsel %vm511_vm0, %v726_v56, 0.0 }
 0x381   : > { %728 = vadd.xlane.f32.xlu1 %v727_v57 }
 0x40a   : > { %v729_v62 = vpop.xlane.xlu1 %728 }
 0x40b   : > { %v730_v63 = vmul.f32 0.03125, %v729_v62 }
 0x40d   : > { %v731_v0 = vadd.f32 1e-05, %v730_v63 }
 0x40f   : > { %3624 = vrsqrt.f32 %v731_v0 }
 0x41c   : > { %v3625_v1 = vpop.eup %3624 }
 0x41d   : > { %v733_v3 = vmul.f32 %v3625_v1, %v725_v55 }
 0x41f   : > { %v738_v5 = vmul.f32 %v3149_v2, %v733_v3 }
 0x421   : > { %v743_v6 = vadd.f32 %v3150_v4, %v738_v5 }
 0x423   : > { %3395 = vmatmul.mubr.msk.f32.vlgmr.msra.gmra.mxu0 %vm545_vm2, %v743_v6 }
 0x424   : > { %3398 = vmatpush3.msra.mxu0 %v844_v7  ;;  %3405 = vmatprep.mubr.msk.f32.mxu0 %vm3671_vm1, %v3670_v8 }
 0x425   : > { %3399 = vmatprep.subr.mxu0 %v3670_v8 }
 0x426   : > { %3400 = vmatpush3.msra.mxu0 %v843_v9 }
 0x427   : > { %3401 = vmatprep.subr.mxu0 %v3670_v8 }
 0x428   : > { %3402 = vmatpush3.msra.mxu0 %v842_v10 }
 0x429   : > { %3403 = vmatprep.subr.mxu0 %v3670_v8 }
 0x42a   : > { %3404 = vmatpush3.msra.mxu0 %v841_v11 }
 0x42b   : > { %3406 = vmatmul.mubr.msk.f32.vlgmr.msra.gmra.mxu0 %vm545_vm2, %v840_v12  ;;  %3408 = vmatprep.subr.mxu0 %v3670_v8 }
 0x42c   : > { %3410 = vmatprep.mubr.msk.f32.mxu0 %vm3671_vm1, %v3670_v8 }
 0x4e3   : > { %v824_v16 = vpop.f32.mrf.mxu0 }
 0x4e4   : > { %v3952_v17 = vadd.f32 %v3151_v15, %v824_v16 }
 0x4e5   : > { %v3396_v18 = vpop.f32.mrf.mxu0 }
 0x4e6   : > { %1034 = vrot.lane.b32.xlu0 %v3952_v17, %s3674_s24  ;;  %v3964_v22 = vadd.f32 %v3154_v19, %v3952_v17  ;;  %v3976_v25 = vadd.f32 %v3153_v23, %v3952_v17 }
 0x4eb   : > { %v3959_v20 = vpop.f32.mrf.mxu0 }
 0x4ec   : > { %3409 = vmatpush3.xpose.msk.msra.mxu0 %vm920_vm3, %v3959_v20 }
 0x4ed   : > { %v3407_v21 = vpop.f32.mrf.mxu0  ;;  %3413 = vmatprep.subr.mxu0 %v3670_v8 }
 0x4ef   : > { %3411 = vmatmul.mubr.msk.f32.vlgmr.msra.gmra.mxu0 %vm920_vm3, %v3964_v22 }
 0x4f0   : > { %3415 = vmatprep.mubr.msk.f32.mxu0 %vm3671_vm1, %v3670_v8 }
 0x558   : > { %v1035_v24 = vpop.permute.xlu0 %1034 }
 0x559   : > { %3414 = vmatpush3.xpose.msk.msra.mxu0 %vm920_vm3, %v1035_v24 }
 0x55a   : > { %3418 = vmatprep.subr.mxu0 %v3670_v8 }
 0x55c   : > { %3416 = vmatmul.mubr.msk.f32.vlgmr.msra.gmra.mxu0 %vm920_vm3, %v3976_v25 }
 0x55d   : > { %3420 = vmatprep.mubr.msk.f32.mxu0 %vm3671_vm1, %v3670_v8 }
 0x5af   : > { %v993_v26 = vpop.f32.mrf.mxu0 }
 0x5b0   : > { %1021 = vperm.xlu0 %3600, %v993_v26   ;;  %1000 = vperm.xlu1 %3597, %v993_v26  }
 0x5b1   : > { %v3412_v27 = vpop.f32.mrf.mxu0 }
 0x5b4   : > { %3598 = vset.pattern.permute.xlu1 %v3675_v28  ;;  %3602 = vset.pattern.permute.xlu0 %v3673_v14 }
 0x5b5   : > { %1007 = vperm.xlu1 %3598, %v993_v26  }
 0x5b9   : > { %3599 = vset.pattern.permute.xlu1 %v3676_v29 }
 0x5ba   : > { %1014 = vperm.xlu1 %3599, %v993_v26  }
 0x5be   : > { %3601 = vset.pattern.permute.xlu1 %v3677_v30 }
 0x5bf   : > { %1028 = vperm.xlu1 %3601, %v993_v26  }
 0x5c3   : > { %3603 = vset.pattern.permute.xlu1 %v3675_v28 }
 0x61c   : > { %v1107_v31 = vpop.f32.mrf.mxu0 }
 0x61e   : > { %v3417_v32 = vpop.f32.mrf.mxu0 }
 0x62b   : > { %v1001_v36 = vpop.permute.xlu1 %1000  ;;  %v1022_v42 = vpop.permute.xlu0 %1021 }
 0x62c   : > { %v1003_v41 = vsel %vm997_vm5, %v1001_v36, 0.0  ;;  %v1024_v48 = vsel %vm1019_vm8, %v1022_v42, 0.0 }
 0x630   : > { %v1008_v38 = vpop.permute.xlu1 %1007 }
 0x631   : > { %v1010_v40 = vsel %vm1005_vm4, %v1008_v38, 0.0 }
 0x632   : > { %v1011_v43 = vadd.f32 %v1010_v40, %v1003_v41 }
 0x635   : > { %v1015_v44 = vpop.permute.xlu1 %1014 }
 0x636   : > { %v1017_v45 = vsel %vm1012_vm6, %v1015_v44, 0.0 }
 0x637   : > { %v1018_v46 = vadd.f32 %v1017_v45, %v1011_v43 }
 0x639   : > { %v1025_v50 = vadd.f32 %v1024_v48, %v1018_v46 }
 0x63a   : > { %v1029_v52 = vpop.permute.xlu1 %1028 }
 0x63b   : > { %v1031_v53 = vsel %vm1026_vm9, %v1029_v52, 0.0 }
 0x63c   : > { %v1032_v55 = vadd.f32 %v1031_v53, %v1025_v50  ;;  %v1489_v53 = vld [vmem:[%s4423_s11 + $0x8] sm:$0xff] }
 0x63e   : > { %v1108_v56 = vadd.f32 %v1107_v31, %v1032_v55 }
 0x640   : > { %v1111_v57 = vmul.f32 0.35355338, %v1108_v56 }
 0x642   : > { %v1119_v58 = vsel %vm1118_vm10, %v1111_v57, -1e+09 }
 0x643   : > { %v1121_v59 = vsel %vm1120_vm11, %v1119_v58, -inf }
 0x644   : > { %1122 = vmax.xlane.f32.xlu1 %v1121_v59 }
 0x655   : > { %1214 = vrot.lane.b32.xlu1 %v3959_v20, %s3678_s17 }
 0x659   : > { %1212 = vrot.lane.b32.xlu1 %v3964_v22, %s3678_s17 }
 0x65d   : > { %1321 = vrot.lane.b32.xlu1 %v3976_v25, %s3678_s17  ;;  %s3685_s17 = smov 48  }
 0x6cd   : > { %v1123_v60 = vpop.xlane.xlu1 %1122 }
 0x6ce   : > { %v1124_v61 = vsub.f32 %v1119_v58, %v1123_v60  ;;  %v1211_v60 = vld [vmem:[%s4423_s11] sm:$0xff] }
 0x6d0   : > { %v1125_v62 = vmul.f32 1.442695, %v1124_v61 }
 0x6d1   : > { %v1215_v3 = vpop.permute.xlu1 %1214 }
 0x6d2   : > { %3626 = vpow2.f32 %v1125_v62 }
 0x6d5   : > { %v1213_v6 = vpop.permute.xlu1 %1212 }
 0x6d9   : > { %v1322_v9 = vpop.permute.xlu1 %1321 }
 0x6df   : > { %v3627_v63 = vpop.eup %3626 }
 0x6e0   : > { %v1127_v0 = vsel %vm1120_vm11, %v3627_v63, 0.0 }
 0x6e1   : > { %1128 = vadd.xlane.f32.xlu0 %v1127_v0 }
 0x6f7   : > { %1132 = vrot.lane.b32.xlu0 %v3952_v17, %s3679_s21  ;;  %s3686_s21 = smov 72  }
 0x6fb   : > { %1323 = vrot.lane.b32.xlu0 %v3952_v17, %s3680_s22 }
 0x76a   : > { %v1129_v1 = vpop.xlane.xlu0 %1128 }
 0x76b   : > { %3628 = vrcp.f32 %v1129_v1 }
 0x76e   : > { %v1133_v2 = vpop.permute.xlu0 %1132 }
 0x76f   : > { %3419 = vmatpush3.msk.msra.mxu0 %vm1138_vm12, %v1133_v2 }
 0x770   : > { %3423 = vmatprep.subr.mxu0 %v3670_v8 }
 0x772   : > { %v1324_v7 = vpop.permute.xlu0 %1323 }
 0x778   : > { %v3629_v4 = vpop.eup %3628 }
 0x779   : > { %v1131_v5 = vmul.f32 %v3629_v4, %v3627_v63 }
 0x77b   : > { %3421 = vmatmul.mubr.msk.f32.vlgmr.msra.gmra.mxu0 %vm1134_vm13, %v1131_v5 }
 0x77c   : > { %3424 = vmatpush3.xpose.msk.msra.mxu0 %vm920_vm3, %v1215_v3  ;;  %3425 = vmatprep.mubr.msk.f32.mxu0 %vm3671_vm1, %v3670_v8 }
 0x77d   : > { %3428 = vmatprep.subr.mxu0 %v3670_v8 }
 0x77f   : > { %3426 = vmatmul.mubr.msk.f32.vlgmr.msra.gmra.mxu0 %vm920_vm3, %v1213_v6 }
 0x780   : > { %3429 = vmatpush3.xpose.msk.msra.mxu0 %vm920_vm3, %v1324_v7  ;;  %3430 = vmatprep.mubr.msk.f32.mxu0 %vm3671_vm1, %v3670_v8 }
 0x781   : > { %3438 = vmatprep.subr.mxu0 %v3670_v8 }
 0x783   : > { %3431 = vmatmul.mubr.msk.f32.vlgmr.msra.gmra.mxu0 %vm920_vm3, %v1322_v9 }
 0x784   : > { %3440 = vmatprep.mubr.msk.f32.mxu0 %vm3671_vm1, %v3670_v8  ;;  %3439 = vmatpush3.msra.mxu0 %v1489_v53 }
 0x785   : > { %3448 = vmatprep.subr.mxu0 %v3670_v8 }
 0x83b   : > { %v4046_v10 = vpop.f32.mrf.mxu0 }
 0x83d   : > { %v3422_v11 = vpop.f32.mrf.mxu0 }
 0x83f   : > { %v1286_v12 = vpop.f32.mrf.mxu0 }
 0x840   : > { %1298 = vperm.xlu1 %3603, %v1286_v12   ;;  %1292 = vperm.xlu0 %3602, %v1286_v12  }
 0x841   : > { %v3427_v15 = vpop.f32.mrf.mxu0 }
 0x843   : > { %v1395_v16 = vpop.f32.mrf.mxu0 }
 0x844   : > { %3604 = vset.pattern.permute.xlu1 %v3676_v29  ;;  %3605 = vset.pattern.permute.xlu0 %v3672_v13 }
 0x845   : > { %1304 = vperm.xlu1 %3604, %v1286_v12   ;;  %1310 = vperm.xlu0 %3605, %v1286_v12   ;;  %v3432_v18 = vpop.f32.mrf.mxu0 }
 0x849   : > { %3606 = vset.pattern.permute.xlu1 %v3677_v30  ;;  %3607 = vset.pattern.permute.xlu0 %v3673_v14 }
 0x84a   : > { %1316 = vperm.xlu1 %3606, %v1286_v12  }
 0x84e   : > { %3608 = vset.pattern.permute.xlu1 %v3675_v28 }
 0x8bb   : > { %v1299_v19 = vpop.permute.xlu1 %1298  ;;  %v1293_v21 = vpop.permute.xlu0 %1292 }
 0x8bc   : > { %v1301_v23 = vsel %vm1005_vm4, %v1299_v19, 0.0  ;;  %v1295_v24 = vsel %vm997_vm5, %v1293_v21, 0.0 }
 0x8bd   : > { %v1302_v26 = vadd.f32 %v1301_v23, %v1295_v24 }
 0x8c0   : > { %v1305_v27 = vpop.permute.xlu1 %1304  ;;  %v1311_v31 = vpop.permute.xlu0 %1310 }
 0x8c1   : > { %v1307_v32 = vsel %vm1012_vm6, %v1305_v27, 0.0  ;;  %v1313_v36 = vsel %vm1019_vm8, %v1311_v31, 0.0 }
 0x8c2   : > { %v1308_v33 = vadd.f32 %v1307_v32, %v1302_v26 }
 0x8c4   : > { %v1314_v38 = vadd.f32 %v1313_v36, %v1308_v33 }
 0x8c5   : > { %v1317_v39 = vpop.permute.xlu1 %1316 }
 0x8c6   : > { %v1319_v40 = vsel %vm1026_vm9, %v1317_v39, 0.0 }
 0x8c7   : > { %v1320_v41 = vadd.f32 %v1319_v40, %v1314_v38 }
 0x8c9   : > { %v1396_v42 = vadd.f32 %v1395_v16, %v1320_v41 }
 0x8cb   : > { %v1399_v43 = vmul.f32 0.35355338, %v1396_v42 }
 0x8cd   : > { %v1400_v44 = vsel %vm1118_vm10, %v1399_v43, -1e+09 }
 0x8ce   : > { %v1401_v45 = vsel %vm1120_vm11, %v1400_v44, -inf }
 0x8cf   : > { %1402 = vmax.xlane.f32.xlu1 %v1401_v45 }
 0x8e0   : > { %1638 = vrot.lane.b32.xlu1 %v3959_v20, %s3681_s23 }
 0x8e4   : > { %1636 = vrot.lane.b32.xlu1 %v3964_v22, %s3681_s23 }
 0x8e8   : > { %1745 = vrot.lane.b32.xlu1 %v3976_v25, %s3681_s23 }
 0x958   : > { %v1403_v46 = vpop.xlane.xlu1 %1402 }
 0x959   : > { %v1404_v48 = vsub.f32 %v1400_v44, %v1403_v46 }
 0x95b   : > { %v1405_v49 = vmul.f32 1.442695, %v1404_v48 }
 0x95c   : > { %v1639_v57 = vpop.permute.xlu1 %1638 }
 0x95d   : > { %3630 = vpow2.f32 %v1405_v49 }
 0x960   : > { %v1637_v61 = vpop.permute.xlu1 %1636 }
 0x964   : > { %v1746_v63 = vpop.permute.xlu1 %1745 }
 0x96a   : > { %v3631_v50 = vpop.eup %3630 }
 0x96b   : > { %v1407_v52 = vsel %vm1120_vm11, %v3631_v50, 0.0 }
 0x96c   : > { %1408 = vadd.xlane.f32.xlu0 %v1407_v52 }
 0x982   : > { %1412 = vrot.lane.b32.xlu0 %v3952_v17, %s3682_s25  ;;  %s3687_s25 = smov 40  }
 0x986   : > { %1747 = vrot.lane.b32.xlu0 %v3952_v17, %s3683_s26 }
 0x9f5   : > { %v1409_v55 = vpop.xlane.xlu0 %1408 }
 0x9f6   : > { %3632 = vrcp.f32 %v1409_v55 }
 0x9f9   : > { %v1413_v56 = vpop.permute.xlu0 %1412 }
 0x9fa   : > { %3434 = vmatpush3.msk.msra.mxu1 %vm1138_vm12, %v1413_v56 }
 0x9fb   : > { %3443 = vmatprep.subr.mxu1 %v3670_v8 }
 0x9fd   : > { %v1748_v62 = vpop.permute.xlu0 %1747 }
 0xa03   : > { %v3633_v58 = vpop.eup %3632 }
 0xa04   : > { %v1411_v59 = vmul.f32 %v3633_v58, %v3631_v50 }
 0xa06   : > { %3436 = vmatmul.mubr.msk.f32.vlgmr.msra.gmra.mxu1 %vm1134_vm13, %v1411_v59 }
 0xa07   : > { %3444 = vmatpush3.msra.mxu1 %v1211_v60  ;;  %3445 = vmatprep.mubr.msk.f32.mxu1 %vm3671_vm1, %v3670_v8 }
 0xa08   : > { %3453 = vmatprep.subr.mxu1 %v3670_v8 }
 0xa0a   : > { %3446 = vmatmul.mubr.msk.f32.vlgmr.msra.gmra.mxu1 %vm920_vm3, %v4046_v10 }
 0xa0b   : > { %3454 = vmatpush3.xpose.msk.msra.mxu1 %vm920_vm3, %v1748_v62  ;;  %3455 = vmatprep.mubr.msk.f32.mxu1 %vm3671_vm1, %v3670_v8 }
 0xa0c   : > { %3463 = vmatprep.subr.mxu1 %v3670_v8 }
 0xa0e   : > { %3456 = vmatmul.mubr.msk.f32.vlgmr.msra.gmra.mxu1 %vm920_vm3, %v1746_v63 }
 0xa0f   : > { %3465 = vmatprep.mubr.msk.f32.mxu1 %vm3671_vm1, %v3670_v8 }
 0xac6   : > { %v1485_v0 = vpop.f32.mrf.mxu1 }
 0xac7   : > { %3441 = vmatmul.mubr.msk.f32.vlgmr.msra.gmra.mxu0 %vm920_vm3, %v1485_v0 }
 0xac8   : > { %3449 = vmatpush3.xpose.msk.msra.mxu0 %vm920_vm3, %v1639_v57  ;;  %v3437_v1 = vpop.f32.mrf.mxu1  ;;  %3450 = vmatprep.mubr.msk.f32.mxu0 %vm3671_vm1, %v3670_v8 }
 0xac9   : > { %3458 = vmatprep.subr.mxu0 %v3670_v8 }
 0xaca   : > { %v4099_v2 = vpop.f32.mrf.mxu1 }
 0xacb   : > { %3451 = vmatmul.mubr.msk.f32.vlgmr.msra.gmra.mxu0 %vm920_vm3, %v1637_v61 }
 0xacc   : > { %v3447_v3 = vpop.f32.mrf.mxu1  ;;  %3460 = vmatprep.mubr.msk.f32.mxu0 %vm3671_vm1, %v3670_v8 }
 0xace   : > { %v1819_v4 = vpop.f32.mrf.mxu1 }
 0xad0   : > { %v3457_v5 = vpop.f32.mrf.mxu1 }
 0xb87   : > { %v4104_v6 = vpop.f32.mrf.mxu0 }
 0xb89   : > { %v3442_v7 = vpop.f32.mrf.mxu0 }
 0xb8b   : > { %v1710_v9 = vpop.f32.mrf.mxu0 }
 0xb8c   : > { %1722 = vperm.xlu1 %3608, %v1710_v9   ;;  %1716 = vperm.xlu0 %3607, %v1710_v9  }
 0xb8d   : > { %v3452_v10 = vpop.f32.mrf.mxu0 }
 0xb90   : > { %3609 = vset.pattern.permute.xlu1 %v3676_v29  ;;  %3610 = vset.pattern.permute.xlu0 %v3672_v13 }
 0xb91   : > { %1728 = vperm.xlu1 %3609, %v1710_v9   ;;  %1734 = vperm.xlu0 %3610, %v1710_v9  }
 0xb95   : > { %3611 = vset.pattern.permute.xlu1 %v3677_v30  ;;  %3612 = vset.pattern.permute.xlu0 %v3673_v14 }
 0xb96   : > { %1740 = vperm.xlu1 %3611, %v1710_v9  }
 0xb9a   : > { %3613 = vset.pattern.permute.xlu1 %v3675_v28 }
 0xc07   : > { %v1723_v11 = vpop.permute.xlu1 %1722  ;;  %v1717_v12 = vpop.permute.xlu0 %1716 }
 0xc08   : > { %v1725_v15 = vsel %vm1005_vm4, %v1723_v11, 0.0  ;;  %v1719_v16 = vsel %vm997_vm5, %v1717_v12, 0.0 }
 0xc09   : > { %v1726_v18 = vadd.f32 %v1725_v15, %v1719_v16 }
 0xc0c   : > { %v1729_v19 = vpop.permute.xlu1 %1728  ;;  %v1735_v21 = vpop.permute.xlu0 %1734 }
 0xc0d   : > { %v1731_v23 = vsel %vm1012_vm6, %v1729_v19, 0.0  ;;  %v1737_v14 = vsel %vm1019_vm8, %v1735_v21, 0.0 }
 0xc0e   : > { %v1732_v24 = vadd.f32 %v1731_v23, %v1726_v18 }
 0xc10   : > { %v1738_v26 = vadd.f32 %v1737_v14, %v1732_v24 }
 0xc11   : > { %v1741_v28 = vpop.permute.xlu1 %1740 }
 0xc12   : > { %v1743_v27 = vsel %vm1026_vm9, %v1741_v28, 0.0  ;;  %v2265_v28 = vld [vmem:[%s4423_s11 + $0x18] sm:$0xff] }
 0xc13   : > { %v1744_v31 = vadd.f32 %v1743_v27, %v1738_v26 }
 0xc15   : > { %v1820_v32 = vadd.f32 %v1819_v4, %v1744_v31 }
 0xc17   : > { %v1823_v33 = vmul.f32 0.35355338, %v1820_v32 }
 0xc19   : > { %v1824_v36 = vsel %vm1118_vm10, %v1823_v33, -1e+09  ;;  %v3184_v33 = vld [vmem:[%s4415_s3 + $0x5] ss:$0 sm:$0xff] }
 0xc1a   : > { %v1825_v38 = vsel %vm1120_vm11, %v1824_v36, -inf }
 0xc1b   : > { %1826 = vmax.xlane.f32.xlu1 %v1825_v38 }
 0xc2c   : > { %1990 = vrot.lane.b32.xlu1 %v3959_v20, %s3684_s16  ;;  %v1913_v20 = vld [vmem:[%s4423_s11 + $0x10] sm:$0xff] }
 0xc2d   : > { %3464 = vmatpush3.msra.mxu1 %v1913_v20 }
 0xc2e   : > { %3473 = vmatprep.subr.mxu1 %v3670_v8 }
 0xc30   : > { %1988 = vrot.lane.b32.xlu1 %v3964_v22, %s3684_s16 }
 0xc34   : > { %2097 = vrot.lane.b32.xlu1 %v3976_v25, %s3684_s16 }
 0xca4   : > { %v1827_v39 = vpop.xlane.xlu1 %1826 }
 0xca5   : > { %v1828_v40 = vsub.f32 %v1824_v36, %v1827_v39 }
 0xca7   : > { %v1829_v41 = vmul.f32 1.442695, %v1828_v40 }
 0xca8   : > { %v1991_v45 = vpop.permute.xlu1 %1990 }
 0xca9   : > { %3634 = vpow2.f32 %v1829_v41 }
 0xcac   : > { %v1989_v48 = vpop.permute.xlu1 %1988 }
 0xcb0   : > { %v2098_v53 = vpop.permute.xlu1 %2097 }
 0xcb6   : > { %v3635_v42 = vpop.eup %3634 }
 0xcb7   : > { %v1831_v43 = vsel %vm1120_vm11, %v3635_v42, 0.0 }
 0xcb8   : > { %1832 = vadd.xlane.f32.xlu0 %v1831_v43 }
 0xcce   : > { %1836 = vrot.lane.b32.xlu0 %v3952_v17, %s3685_s17 }
 0xcd2   : > { %2099 = vrot.lane.b32.xlu0 %v3952_v17, %s3686_s21 }
 0xd41   : > { %v1833_v22 = vpop.xlane.xlu0 %1832 }
 0xd42   : > { %3636 = vrcp.f32 %v1833_v22 }
 0xd45   : > { %v1837_v25 = vpop.permute.xlu0 %1836 }
 0xd46   : > { %3459 = vmatpush3.msk.msra.mxu0 %vm1138_vm12, %v1837_v25  ;;  %v2375_v25 = vld [vmem:[%s4424_s12 + $0x18] sm:$0xff] }
 0xd47   : > { %3468 = vmatprep.subr.mxu0 %v3670_v8 }
 0xd49   : > { %v2100_v50 = vpop.permute.xlu0 %2099 }
 0xd4f   : > { %v3637_v44 = vpop.eup %3636 }
 0xd50   : > { %v1835_v46 = vmul.f32 %v3637_v44, %v3635_v42  ;;  %v2373_v44 = vld [vmem:[%s4424_s12 + $0x8] sm:$0xff] }
 0xd52   : > { %3461 = vmatmul.mubr.msk.f32.vlgmr.msra.gmra.mxu0 %vm1134_vm13, %v1835_v46 }
 0xd53   : > { %3469 = vmatpush3.xpose.msk.msra.mxu0 %vm920_vm3, %v1991_v45  ;;  %3470 = vmatprep.mubr.msk.f32.mxu0 %vm3671_vm1, %v3670_v8  ;;  %v2372_v45 = vld [vmem:[%s4424_s12] sm:$0xff] }
 0xd54   : > { %3478 = vmatprep.subr.mxu0 %v3670_v8 }
 0xd56   : > { %3471 = vmatmul.mubr.msk.f32.vlgmr.msra.gmra.mxu0 %vm920_vm3, %v1989_v48 }
 0xd57   : > { %3480 = vmatprep.mubr.msk.f32.mxu0 %vm3671_vm1, %v3670_v8 }
 0xe12   : > { %v1909_v49 = vpop.f32.mrf.mxu0 }
 0xe13   : > { %3466 = vmatmul.mubr.msk.f32.vlgmr.msra.gmra.mxu1 %vm920_vm3, %v1909_v49 }
 0xe14   : > { %3474 = vmatpush3.xpose.msk.msra.mxu1 %vm920_vm3, %v2100_v50  ;;  %v3462_v52 = vpop.f32.mrf.mxu0  ;;  %3475 = vmatprep.mubr.msk.f32.mxu1 %vm3671_vm1, %v3670_v8 }
 0xe15   : > { %3483 = vmatprep.subr.mxu1 %v3670_v8  ;;  %v3185_v52 = vld [vmem:[%s4415_s3 + $0x8] ss:$0 sm:$0xff] }
 0xe16   : > { %v2062_v55 = vpop.f32.mrf.mxu0 }
 0xe17   : > { %3476 = vmatmul.mubr.msk.f32.vlgmr.msra.gmra.mxu1 %vm920_vm3, %v2098_v53  ;;  %2074 = vperm.xlu1 %3613, %v2062_v55  }
 0xe18   : > { %2068 = vperm.xlu0 %3612, %v2062_v55   ;;  %v3472_v56 = vpop.f32.mrf.mxu0  ;;  %3485 = vmatprep.mubr.msk.f32.mxu1 %vm3671_vm1, %v3670_v8 }
 0xe19   : > { %3484 = vmatpush3.msra.mxu1 %v2265_v28 }
 0xe1a   : > { %3499 = vmatprep.subr.mxu1 %v3670_v8 }
 0xe1b   : > { %3614 = vset.pattern.permute.xlu1 %v3676_v29 }
 0xe1c   : > { %3615 = vset.pattern.permute.xlu0 %v3672_v13  ;;  %2080 = vperm.xlu1 %3614, %v2062_v55  }
 0xe1d   : > { %2086 = vperm.xlu0 %3615, %v2062_v55  }
 0xe20   : > { %3616 = vset.pattern.permute.xlu1 %v3677_v30 }
 0xe21   : > { %2092 = vperm.xlu1 %3616, %v2062_v55   ;;  %3617 = vset.pattern.permute.xlu0 %v3677_v30  ;;  %v1633_v30 = vadd.f32 %v4099_v2, %v4104_v6  ;;  %v3186_v55 = vld [vmem:[%s4415_s3 + $0x9] ss:$0 sm:$0xff] }
 0xe92   : > { %v2075_v57 = vpop.permute.xlu1 %2074 }
 0xe93   : > { %v2069_v58 = vpop.permute.xlu0 %2068  ;;  %v2077_v60 = vsel %vm1005_vm4, %v2075_v57, 0.0 }
 0xe94   : > { %v2071_v61 = vsel %vm997_vm5, %v2069_v58, 0.0  ;;  %v3187_v58 = vld [vmem:[%s4418_s6] ss:$0 sm:$0xff] }
 0xe95   : > { %v2078_v13 = vadd.f32 %v2077_v60, %v2071_v61 }
 0xe97   : > { %v2081_v59 = vpop.permute.xlu1 %2080 }
 0xe98   : > { %v2083_v29 = vsel %vm1012_vm6, %v2081_v59, 0.0  ;;  %v2087_v63 = vpop.permute.xlu0 %2086 }
 0xe99   : > { %v2084_v62 = vadd.f32 %v2083_v29, %v2078_v13  ;;  %v2089_v1 = vsel %vm1019_vm8, %v2087_v63, 0.0 }
 0xe9b   : > { %v2090_v3 = vadd.f32 %v2089_v1, %v2084_v62  ;;  %v2637_v1 = vadd.s32 1, %v3988_v34 }
 0xe9c   : > { %v2093_v0 = vpop.permute.xlu1 %2092 }
 0xe9d   : > { %v2095_v4 = vsel %vm1026_vm9, %v2093_v0, 0.0  ;;  %v2467_v0 = vadd.s32 4294967295, %v3988_v34  ;;  %vm2638_vm15 = vcmp.eq.s32.totalorder %v3990_v35, %v2637_v1  ;;  %v3209_v1 = vld [vmem:[%s4415_s3 + $0x11] ss:$0 sm:$0xff] }
 0xe9e   : > { %v2096_v10 = vadd.f32 %v2095_v4, %v2090_v3 }
 0xe9f   : > { %vm2468_vm14 = vcmp.eq.s32.totalorder %v3990_v35, %v2467_v0 }
 0xea0   : > { %v3190_v4 = vsel %vm2468_vm14, 1.0, %v3670_v8 }
 0xed3   : > { %v1983_v5 = vpop.f32.mrf.mxu1 }
 0xed4   : > { %v1987_v7 = vadd.f32 %v1983_v5, %v1633_v30  ;;  %v3198_v5 = vsel %vm2638_vm15, 1.0, %v3670_v8 }
 0xed5   : > { %v3467_v9 = vpop.f32.mrf.mxu1 }
 0xed6   : > { %v2758_v9 = vld [vmem:[%s4426_s14 + $0x10] sm:$0xff] }
 0xed7   : > { %v2171_v11 = vpop.f32.mrf.mxu1 }
 0xed8   : > { %v2172_v12 = vadd.f32 %v2171_v11, %v2096_v10  ;;  %v2757_v10 = vld [vmem:[%s4426_s14 + $0x8] sm:$0xff]  ;;  %v2756_v11 = vld [vmem:[%s4426_s14] sm:$0xff] }
 0xed9   : > { %v3477_v15 = vpop.f32.mrf.mxu1 }
 0xeda   : > { %v2175_v16 = vmul.f32 0.35355338, %v2172_v12  ;;  %v2728_v12 = vld [vmem:[%s4415_s3 + $0xe] sm:$0x1] }
 0xedb   : > { %v2729_v15 = vadd.f32 1e-05, %v2728_v12  ;;  %v3225_v12 = vld [vmem:[%s4420_s8 + $0xc0] sm:$0xff] }
 0xedc   : > { %v2176_v18 = vsel %vm1118_vm10, %v2175_v16, -1e+09 }
 0xedd   : > { %v2177_v19 = vsel %vm1120_vm11, %v2176_v18, -inf }
 0xede   : > { %2178 = vmax.xlane.f32.xlu1 %v2177_v19 }
 0xf67   : > { %v2179_v21 = vpop.xlane.xlu1 %2178 }
 0xf68   : > { %v2180_v2 = vsub.f32 %v2176_v18, %v2179_v21  ;;  %v3193_v18 = vld [vmem:[%s4425_s13] ss:$0 sm:$0xff]  ;;  %v3197_v21 = vld [vmem:[%s4425_s13 + $0x1] ss:$0 sm:$0xff] }
 0xf6a   : > { %v2181_v6 = vmul.f32 1.442695, %v2180_v2 }
 0xf6c   : > { %3638 = vpow2.f32 %v2181_v6  ;;  %v3201_v6 = vld [vmem:[%s4425_s13 + $0x2] ss:$0 sm:$0xff] }
 0xf79   : > { %v3639_v37 = vpop.eup %3638 }
 0xf7a   : > { %v2183_v23 = vsel %vm1120_vm11, %v3639_v37, 0.0 }
 0xf7b   : > { %2184 = vadd.xlane.f32.xlu0 %v2183_v23  ;;  %v2727_v23 = vld [vmem:[%s4415_s3 + $0xb] sm:$0x1] }
 0xf91   : > { %2188 = vrot.lane.b32.xlu0 %v3952_v17, %s3687_s25 }
0x1004   : > { %v2185_v24 = vpop.xlane.xlu0 %2184 }
0x1005   : > { %3640 = vrcp.f32 %v2185_v24 }
0x1008   : > { %v2189_v14 = vpop.permute.xlu0 %2188 }
0x1009   : > { %3479 = vmatpush3.msk.msra.mxu0 %vm1138_vm12, %v2189_v14 }
0x100a   : > { %3488 = vmatprep.subr.mxu0 %v3670_v8 }
0x1012   : > { %v3641_v54 = vpop.eup %3640 }
0x1013   : > { %v2187_v26 = vmul.f32 %v3641_v54, %v3639_v37 }
0x1015   : > { %3481 = vmatmul.mubr.msk.f32.vlgmr.msra.gmra.mxu0 %vm1134_vm13, %v2187_v26 }
0x1016   : > { %3496 = vmatprep.mubr.msk.f32.mxu0 %vm3671_vm1, %v3670_v8  ;;  %3489 = vmatpush3.msra.mxu0 %v2375_v25 }
0x1017   : > { %3490 = vmatprep.subr.mxu0 %v3670_v8 }
0x10d5   : > { %v2261_v17 = vpop.f32.mrf.mxu0 }
0x10d6   : > { %3486 = vmatmul.mubr.msk.f32.vlgmr.msra.gmra.mxu1 %vm920_vm3, %v2261_v17  ;;  %vm2554_vm3 = vcmp.eq.s32.totalorder %v3990_v35, %v3988_v34  ;;  %v2759_v35 = vld [vmem:[%s4426_s14 + $0x18] sm:$0xff]  ;;  %v3206_v34 = vld [vmem:[%s4415_s3 + $0xf] ss:$0 sm:$0xff] }
0x10d7   : > { %v3482_v27 = vpop.f32.mrf.mxu0  ;;  %3501 = vmatprep.mubr.msk.f32.mxu1 %vm3671_vm1, %v3670_v8 }
0x1196   : > { %v2335_v31 = vpop.f32.mrf.mxu1 }
0x1197   : > { %v2339_v32 = vadd.f32 %v2335_v31, %v1987_v7  ;;  %v3194_v7 = vsel %vm2554_vm3, 1.0, %v3670_v8 }
0x1198   : > { %v3487_v36 = vpop.f32.mrf.mxu1 }
0x1199   : > { %v2340_v38 = vadd.f32 %v2339_v32, %v3894_v51  ;;  %v2374_v51 = vld [vmem:[%s4424_s12 + $0x10] sm:$0xff]  ;;  %v3202_v32 = vld [vmem:[%s4415_s3 + $0xa] ss:$0 sm:$0xff]  ;;  %v3203_v36 = vld [vmem:[%s4415_s3 + $0xd] ss:$0 sm:$0xff] }
0x119a   : > { %3491 = vmatpush3.msra.mxu0 %v2374_v51 }
0x119b   : > { %v4189_v39 = vadd.f32 %v3184_v33, %v2340_v38  ;;  %3492 = vmatprep.subr.mxu0 %v3670_v8 }
0x119c   : > { %3493 = vmatpush3.msra.mxu0 %v2373_v44 }
0x119d   : > { %v2349_v40 = vsel %vm511_vm0, %v4189_v39, 0.0  ;;  %3494 = vmatprep.subr.mxu0 %v3670_v8 }
0x119e   : > { %2350 = vadd.xlane.f32.xlu1 %v2349_v40  ;;  %3495 = vmatpush3.msra.mxu0 %v2372_v45 }
0x119f   : > { %3509 = vmatprep.subr.mxu0 %v3670_v8 }
0x1227   : > { %v2351_v41 = vpop.xlane.xlu1 %2350 }
0x1228   : > { %v2352_v42 = vmul.f32 0.03125, %v2351_v41 }
0x122a   : > { %v2353_v43 = vsub.f32 %v4189_v39, %v2352_v42  ;;  %v3204_v42 = vld [vmem:[%s4415_s3 + $0xc] ss:$0 sm:$0xff] }
0x122c   : > { %v2354_v20 = vmul.f32 %v2353_v43, %v2353_v43 }
0x122e   : > { %v2355_v22 = vsel %vm511_vm0, %v2354_v20, 0.0 }
0x122f   : > { %2356 = vadd.xlane.f32.xlu1 %v2355_v22 }
0x12b8   : > { %v2357_v46 = vpop.xlane.xlu1 %2356 }
0x12b9   : > { %v2358_v48 = vmul.f32 0.03125, %v2357_v46 }
0x12bb   : > { %v2359_v49 = vadd.f32 1e-05, %v2358_v48 }
0x12bd   : > { %3642 = vrsqrt.f32 %v2359_v49 }
0x12ca   : > { %v3643_v50 = vpop.eup %3642 }
0x12cb   : > { %v2361_v53 = vmul.f32 %v3643_v50, %v2353_v43 }
0x12cd   : > { %v2366_v56 = vmul.f32 %v3185_v52, %v2361_v53 }
0x12cf   : > { %v2371_v57 = vadd.f32 %v3186_v55, %v2366_v56 }
0x12d1   : > { %3497 = vmatmul.mubr.msk.f32.vlgmr.msra.gmra.mxu0 %vm545_vm2, %v2371_v57 }
0x12d2   : > { %3511 = vmatprep.mubr.msk.f32.mxu0 %vm3671_vm1, %v3670_v8 }
0x1391   : > { %v2452_v59 = vpop.f32.mrf.mxu0 }
0x1392   : > { %v2453_v60 = vadd.f32 %v3187_v58, %v2452_v59  ;;  %v3213_v58 = vld [vmem:[%s4419_s7 + $0x38] sm:$0xff]  ;;  %v3211_v59 = vld [vmem:[%s4419_s7 + $0x28] sm:$0xff] }
0x1393   : > { %v3498_v61 = vpop.f32.mrf.mxu0 }
0x1394   : > { %v3189_v29 = vmul.f32 -1.442695, %v2453_v60 }
0x1396   : > { %3644 = vpow2.f32 %v3189_v29 }
0x13a3   : > { %v3645_v13 = vpop.eup %3644 }
0x13a4   : > { %v2459_v62 = vadd.f32 1.0, %v3645_v13 }
0x13a6   : > { %3646 = vrcp.f32 %v2459_v62 }
0x13a7   : > { %3648 = vrsqrt.f32 %v2729_v15  ;;  %v3224_v15 = vld [vmem:[%s4420_s8 + $0xb8] sm:$0xff] }
0x13b3   : > { %v3647_v63 = vpop.eup %3646 }
0x13b4   : > { %2463 = vrot.lane.b32.xlu1 %v3647_v63, %s3674_s24  ;;  %v3649_v37 = vpop.eup %3648  ;;  %v3208_v63 = vld [vmem:[%s4415_s3 + $0x10] ss:$0 sm:$0xff] }
0x13b5   : > { %v2731_v27 = vmul.f32 %v3649_v37, %v2727_v23  ;;  %v3217_v37 = vld [vmem:[%s4420_s8 + $0x80] sm:$0xff] }
0x13b6   : > { %v3214_v23 = vld [vmem:[%s4416_s4 + $0x1] ss:$0 sm:$0xff] }
0x13b7   : > { %v2741_v38 = vrot.slane %v2731_v27, %v1116_v47 }
0x1426   : > { %v2464_v30 = vpop.permute.xlu1 %2463 }
0x1427   : > { %v2466_v3 = vmul.f32 %v2464_v30, %v2453_v60  ;;  %v3210_v60 = vld [vmem:[%s4419_s7 + $0x20] sm:$0xff] }
0x1429   : > { %3500 = vmatpush3.msk.msra.mxu1 %vm1138_vm12, %v2466_v3  ;;  %3510 = vmatpush3.msk.msra.mxu0 %vm1138_vm12, %v2466_v3 }
0x142a   : > { %3502 = vmatmul.mubr.msk.f32.vlgmr.msra.gmra.mxu1 %vm1134_vm13, %v3190_v4  ;;  %3504 = vmatprep.subr.mxu1 %v3670_v8  ;;  %v3232_v4 = vld [vmem:[%s4420_s8 + $0xf8] sm:$0xff] }
0x142b   : > { %3505 = vmatpush3.msk.msra.mxu1 %vm1138_vm12, %v2466_v3  ;;  %3506 = vmatprep.mubr.msk.f32.mxu1 %vm3671_vm1, %v3670_v8 }
0x142c   : > { %3512 = vmatmul.mubr.msk.f32.vlgmr.msra.gmra.mxu0 %vm1134_vm13, %v3198_v5  ;;  %3514 = vmatprep.subr.mxu0 %v3670_v8  ;;  %v3231_v5 = vld [vmem:[%s4420_s8 + $0xf0] sm:$0xff] }
0x142d   : > { %3522 = vmatprep.mubr.msk.f32.mxu0 %vm3671_vm1, %v3670_v8  ;;  %3536 = vmatprep.subr.mxu1 %v3670_v8 }
0x142e   : > { %3507 = vmatmul.mubr.msk.f32.vlgmr.msra.gmra.mxu1 %vm1134_vm13, %v3194_v7  ;;  %3515 = vmatpush3.msra.mxu0 %v2759_v35  ;;  %v3230_v7 = vld [vmem:[%s4420_s8 + $0xe8] sm:$0xff]  ;;  %v3229_v35 = vld [vmem:[%s4420_s8 + $0xe0] sm:$0xff] }
0x142f   : > { %3568 = vmatprep.mubr.msk.f32.mxu1 %vm3671_vm1, %v3670_v8  ;;  %3516 = vmatprep.subr.mxu0 %v3670_v8 }
0x1430   : > { %3517 = vmatpush3.msra.mxu0 %v2758_v9  ;;  %3537 = vmatpush3.msra.mxu1 %v3232_v4  ;;  %v3228_v9 = vld [vmem:[%s4420_s8 + $0xd8] sm:$0xff] }
0x1431   : > { %3518 = vmatprep.subr.mxu0 %v3670_v8  ;;  %3538 = vmatprep.subr.mxu1 %v3670_v8 }
0x1432   : > { %3519 = vmatpush3.msra.mxu0 %v2757_v10  ;;  %3539 = vmatpush3.msra.mxu1 %v3231_v5  ;;  %v3227_v10 = vld [vmem:[%s4420_s8 + $0xd0] sm:$0xff] }
0x1433   : > { %3520 = vmatprep.subr.mxu0 %v3670_v8  ;;  %3540 = vmatprep.subr.mxu1 %v3670_v8 }
0x1434   : > { %3521 = vmatpush3.msra.mxu0 %v2756_v11  ;;  %3541 = vmatpush3.msra.mxu1 %v3230_v7  ;;  %v3226_v11 = vld [vmem:[%s4420_s8 + $0xc8] sm:$0xff] }
0x1435   : > { %3525 = vmatprep.subr.mxu0 %v3670_v8  ;;  %3542 = vmatprep.subr.mxu1 %v3670_v8 }
0x1436   : > { %3543 = vmatpush3.msra.mxu1 %v3229_v35 }
0x1437   : > { %3544 = vmatprep.subr.mxu1 %v3670_v8 }
0x1438   : > { %3545 = vmatpush3.msra.mxu1 %v3228_v9 }
0x1439   : > { %3546 = vmatprep.subr.mxu1 %v3670_v8 }
0x143a   : > { %3547 = vmatpush3.msra.mxu1 %v3227_v10 }
0x143b   : > { %3548 = vmatprep.subr.mxu1 %v3670_v8 }
0x143c   : > { %3549 = vmatpush3.msra.mxu1 %v3226_v11 }
0x143d   : > { %3550 = vmatprep.subr.mxu1 %v3670_v8 }
0x143e   : > { %3551 = vmatpush3.msra.mxu1 %v3225_v12 }
0x143f   : > { %3552 = vmatprep.subr.mxu1 %v3670_v8 }
0x1440   : > { %3553 = vmatpush3.msra.mxu1 %v3224_v15 }
0x1441   : > { %3554 = vmatprep.subr.mxu1 %v3670_v8 }
0x14ea   : > { %v2543_v16 = vpop.f32.mrf.mxu1 }
0x14eb   : > { %v2552_v54 = vmul.f32 %v3193_v18, %v2543_v16  ;;  %v3223_v16 = vld [vmem:[%s4420_s8 + $0xb0] sm:$0xff]  ;;  %v3222_v18 = vld [vmem:[%s4420_s8 + $0xa8] sm:$0xff] }
0x14ec   : > { %v3503_v19 = vpop.f32.mrf.mxu1  ;;  %v2710_v2 = vpop.f32.mrf.mxu0  ;;  %3555 = vmatpush3.msra.mxu1 %v3223_v16 }
0x14ed   : > { %v2719_v28 = vmul.f32 %v3201_v6, %v2710_v2  ;;  %3556 = vmatprep.subr.mxu1 %v3670_v8  ;;  %v3221_v19 = vld [vmem:[%s4420_s8 + $0xa0] sm:$0xff]  ;;  %v3219_v2 = vld [vmem:[%s4420_s8 + $0x90] sm:$0xff]  ;;  %v3218_v6 = vld [vmem:[%s4420_s8 + $0x88] sm:$0xff] }
0x14ee   : > { %v2626_v24 = vpop.f32.mrf.mxu1  ;;  %v3513_v14 = vpop.f32.mrf.mxu0  ;;  %3557 = vmatpush3.msra.mxu1 %v3222_v18 }
0x14ef   : > { %v2635_v26 = vmul.f32 %v3197_v21, %v2626_v24  ;;  %3558 = vmatprep.subr.mxu1 %v3670_v8  ;;  %v3220_v21 = vld [vmem:[%s4420_s8 + $0x98] sm:$0xff] }
0x14f0   : > { %v3508_v17 = vpop.f32.mrf.mxu1  ;;  %3559 = vmatpush3.msra.mxu1 %v3221_v19 }
0x14f1   : > { %v2636_v31 = vadd.f32 %v2635_v26, %v2552_v54  ;;  %3560 = vmatprep.subr.mxu1 %v3670_v8 }
0x14f2   : > { %3561 = vmatpush3.msra.mxu1 %v3220_v21 }
0x14f3   : > { %v2720_v33 = vadd.f32 %v2719_v28, %v2636_v31  ;;  %3562 = vmatprep.subr.mxu1 %v3670_v8 }
0x14f4   : > { %3563 = vmatpush3.msra.mxu1 %v3219_v2 }
0x14f5   : > { %v2726_v40 = vadd.f32 %v3202_v32, %v2720_v33  ;;  %3564 = vmatprep.subr.mxu1 %v3670_v8 }
0x14f6   : > { %3565 = vmatpush3.msra.mxu1 %v3218_v6 }
0x14f7   : > { %v2737_v41 = vsub.f32 %v2726_v40, %v3203_v36  ;;  %3566 = vmatprep.subr.mxu1 %v3670_v8 }
0x14f8   : > { %3567 = vmatpush3.msra.mxu1 %v3217_v37 }
0x14f9   : > { %v2742_v43 = vmul.f32 %v2741_v38, %v2737_v41 }
0x14fb   : > { %v2748_v20 = vadd.f32 %v3204_v42, %v2742_v43 }
0x14fd   : > { %v3205_v22 = vmul.f32 -1.442695, %v2748_v20 }
0x14ff   : > { %3650 = vpow2.f32 %v3205_v22 }
0x150c   : > { %v3651_v25 = vpop.eup %3650 }
0x150d   : > { %v2752_v51 = vadd.f32 1.0, %v3651_v25 }
0x150f   : > { %3652 = vrcp.f32 %v2752_v51 }
0x151c   : > { %v3653_v44 = vpop.eup %3652 }
0x151d   : > { %v2755_v45 = vmul.f32 %v3653_v44, %v2748_v20 }
0x151f   : > { %3523 = vmatmul.mubr.msk.f32.vlgmr.msra.gmra.mxu0 %vm545_vm2, %v2755_v45 }
0x1520   : > { %3533 = vmatprep.mubr.msk.f32.mxu0 %vm3671_vm1, %v3670_v8  ;;  %3526 = vmatpush3.msra.mxu0 %v3213_v58 }
0x1521   : > { %3527 = vmatprep.subr.mxu0 %v3670_v8 }
0x15df   : > { %v2834_v47 = vpop.f32.mrf.mxu0 }
0x15e0   : > { %v2835_v46 = vadd.f32 %v3206_v34, %v2834_v47  ;;  %v3234_v47 = vld [vmem:[%s4415_s3 + $0x13] ss:$0 sm:$0xff] }
0x15e1   : > { %v3524_v48 = vpop.f32.mrf.mxu0 }
0x15e2   : > { %v4297_v49 = vadd.f32 %v2835_v46, %v4189_v39  ;;  %v3212_v39 = vld [vmem:[%s4419_s7 + $0x30] sm:$0xff] }
0x15e3   : > { %3528 = vmatpush3.msra.mxu0 %v3212_v39  ;;  %v3235_v48 = vld [vmem:[%s4415_s3 + $0x14] ss:$0 sm:$0xff] }
0x15e4   : > { %v2841_v50 = vsel %vm511_vm0, %v4297_v49, 0.0  ;;  %3529 = vmatprep.subr.mxu0 %v3670_v8 }
0x15e5   : > { %2842 = vadd.xlane.f32.xlu0 %v2841_v50  ;;  %3530 = vmatpush3.msra.mxu0 %v3211_v59 }
0x15e6   : > { %3531 = vmatprep.subr.mxu0 %v3670_v8  ;;  %v3233_v8 = vld [vmem:[%s4415_s3 + $0x12] ss:$0 sm:$0xff] }
0x15e7   : > { %3532 = vmatpush3.msra.mxu0 %v3210_v60 }
0x166e   : > { %v2843_v52 = vpop.xlane.xlu0 %2842 }
0x166f   : > { %v2844_v53 = vmul.f32 0.03125, %v2843_v52 }
0x1671   : > { %v2845_v55 = vsub.f32 %v4297_v49, %v2844_v53 }
0x1673   : > { %v2846_v56 = vmul.f32 %v2845_v55, %v2845_v55 }
0x1675   : > { %v2847_v57 = vsel %vm511_vm0, %v2846_v56, 0.0 }
0x1676   : > { %2848 = vadd.xlane.f32.xlu1 %v2847_v57 }
0x16ff   : > { %v2849_v61 = vpop.xlane.xlu1 %2848 }
0x1700   : > { %v2850_v29 = vmul.f32 0.03125, %v2849_v61 }
0x1702   : > { %v2851_v13 = vadd.f32 1e-05, %v2850_v29 }
0x1704   : > { %3654 = vrsqrt.f32 %v2851_v13 }
0x1711   : > { %v3655_v62 = vpop.eup %3654 }
0x1712   : > { %v2853_v0 = vmul.f32 %v3655_v62, %v2845_v55 }
0x1714   : > { %v2858_v30 = vmul.f32 %v3208_v63, %v2853_v0 }
0x1716   : > { %v2863_v3 = vadd.f32 %v3209_v1, %v2858_v30 }
0x1718   : > { %3534 = vmatmul.mubr.msk.f32.vlgmr.msra.gmra.mxu0 %vm545_vm2, %v2863_v3 }
0x17d8   : > { %v2943_v24 = vpop.f32.mrf.mxu0 }
0x17d9   : > { %v2944_v14 = vadd.f32 %v3214_v23, %v2943_v24 }
0x17da   : > { %v3535_v54 = vpop.f32.mrf.mxu0 }
0x17db   : > { %v3216_v26 = vmul.f32 -1.442695, %v2944_v14 }
0x17dd   : > { %3656 = vpow2.f32 %v3216_v26 }
0x17ea   : > { %v3657_v28 = vpop.eup %3656 }
0x17eb   : > { %v2950_v17 = vadd.f32 1.0, %v3657_v28 }
0x17ed   : > { %3658 = vrcp.f32 %v2950_v17 }
0x17fa   : > { %v3659_v27 = vpop.eup %3658 }
0x17fb   : > { %v2953_v31 = vmul.f32 %v3659_v27, %v2944_v14 }
0x17fd   : > { %3569 = vmatmul.mubr.f32.vlgmr.msra.gmra.mxu1 %v2953_v31 }
0x18bd   : > { %v3042_v32 = vpop.f32.mrf.mxu1 }
0x18be   : > { %v3043_v33 = vadd.f32 %v3233_v8, %v3042_v32 }
0x18bf   : > { %v3570_v36 = vpop.f32.mrf.mxu1 }
0x18c0   : > { %v3046_v38 = vmul.f32 0.5, %v3043_v33 }
0x18c2   : > { %v3047_v40 = vadd.f32 %v3046_v38, %v4297_v49 }
0x18c4   : > { %v3050_v41 = vsel %vm511_vm0, %v3047_v40, 0.0 }
0x18c5   : > { %3051 = vadd.xlane.f32.xlu0 %v3050_v41 }
0x194e   : > { %v3052_v42 = vpop.xlane.xlu0 %3051 }
0x194f   : > { %v3053_v43 = vmul.f32 0.03125, %v3052_v42 }
0x1951   : > { %v3054_v20 = vsub.f32 %v3047_v40, %v3053_v43 }
0x1953   : > { %v3055_v22 = vmul.f32 %v3054_v20, %v3054_v20 }
0x1955   : > { %v3056_v25 = vsel %vm511_vm0, %v3055_v22, 0.0 }
0x1956   : > { %3057 = vadd.xlane.f32.xlu0 %v3056_v25 }
0x19df   : > { %v3058_v51 = vpop.xlane.xlu0 %3057 }
0x19e0   : > { %v3059_v44 = vmul.f32 0.03125, %v3058_v51 }
0x19e2   : > { %v3060_v45 = vadd.f32 1e-05, %v3059_v44 }
0x19e4   : > { %3660 = vrsqrt.f32 %v3060_v45 }
0x19f1   : > { %v3661_v34 = vpop.eup %3660 }
0x19f2   : > { %v3062_v46 = vmul.f32 %v3661_v34, %v3054_v20 }
0x19f4   : > { %v3067_v49 = vmul.f32 %v3234_v47, %v3062_v46 }
0x19f6   : > { %v3072_v50 = vadd.f32 %v3235_v48, %v3067_v49 }
0x19f8   : > { %3073 = vst.msk [vmem:[%s503_s29] sm:$0x7] %vm511_vm0, %v3072_v50 }
0x19f9 PF: > { %s25_s18 = sadd.s32 1, %s3668_s18  }
0x19fa   : > { %p22_p4 = scmp.ge.s32.totalorder %s25_s18, 4  }
0x19fc   :  { %24 = sbr.rel (!%p22_p4) target bundleno = 1 (0x1), region = 115 }

</bundles_post_ra>
